<compile_context>
chip_gen: v7x
topology: tpu7x:2x2x1
jax: 0.10.0
libtpu: 0.0.40
codegen_flags: <defaults>
</compile_context>

<pallas_src>
import jax
import jax.numpy as jnp
from jax.experimental import pallas as pl
from jax.experimental.pallas import tpu as pltpu  # noqa: F401  (TPU backend)

CLASSES = 10
OUT_PAD = 128                      # lane-padded classifier width (sliced to CLASSES)
D_IN, D_H1, D_H2 = 3072, 512, 256
BN_EPS = 1e-5


def mlp_kernel(x_ref, w1_ref, b1_ref, w2_ref, b2_ref, w3_ref, b3_ref, o_ref):
    # Layer 1: Linear (BN folded into w1/b1) -> ReLU. bf16 operands, f32 accum.
    h = jnp.dot(x_ref[...], w1_ref[...], preferred_element_type=jnp.float32)
    h = jnp.maximum(h + b1_ref[...], 0.0)                 # f32 VPU math
    # Layer 2: Linear (BN folded) -> ReLU.
    h = jnp.dot(h.astype(jnp.bfloat16), w2_ref[...],
                preferred_element_type=jnp.float32)
    h = jnp.maximum(h + b2_ref[...], 0.0)
    # TODO(synk): nn.Dropout(p=0.3) is identity in eval mode; train-mode random
    # masking (pltpu.prng_random_bits) not implemented here.
    # Layer 3: final Linear (output lane-padded to OUT_PAD).
    o_ref[...] = (jnp.dot(h.astype(jnp.bfloat16), w3_ref[...],
                          preferred_element_type=jnp.float32) + b3_ref[...])


def _full_spec(shape):
    # Single grid point: the whole array is one VMEM block.
    return pl.BlockSpec(shape, lambda: (0,) * len(shape))


def fold_params(params):
    """Fold eval-mode BatchNorm into the linear layers and cast weights to bf16.

    Linear weights are stored [in, out]; BN scale multiplies output columns.
    Biases stay f32; the classifier is lane-padded to OUT_PAD columns.
    """
    w1, b1, s1, t1, w2, b2, s2, t2, w3, b3 = params
    w1f = (w1 * s1).astype(jnp.bfloat16)
    b1f = (b1 * s1 + t1).astype(jnp.float32)
    w2f = (w2 * s2).astype(jnp.bfloat16)
    b2f = (b2 * s2 + t2).astype(jnp.float32)
    w3p = jnp.zeros((D_H2, OUT_PAD), jnp.float32).at[:, :CLASSES].set(w3)
    b3p = jnp.zeros((1, OUT_PAD), jnp.float32).at[:, :CLASSES].set(b3)
    return w1f, b1f, w2f, b2f, w3p.astype(jnp.bfloat16), b3p


def mlp_forward(x, folded):
    """x: [B, C, H, W] float32 with C*H*W == 3072. Returns [B, CLASSES] f32."""
    B = x.shape[0]
    x2 = x.reshape(B, -1).astype(jnp.float32)             # Flatten(start_dim=1)
    assert x2.shape[1] == D_IN
    B_pad = max(16, ((B + 15) // 16) * 16)                 # bf16 sublane tile
    x2 = jnp.pad(x2, ((0, B_pad - B), (0, 0))).astype(jnp.bfloat16)

    w1, b1, w2, b2, w3, b3 = folded

    out = pl.pallas_call(
        mlp_kernel,
        out_shape=jax.ShapeDtypeStruct((B_pad, OUT_PAD), jnp.float32),
        in_specs=[
            _full_spec((B_pad, D_IN)),
            _full_spec((D_IN, D_H1)), _full_spec((1, D_H1)),
            _full_spec((D_H1, D_H2)), _full_spec((1, D_H2)),
            _full_spec((D_H2, OUT_PAD)), _full_spec((1, OUT_PAD)),
        ],
        out_specs=_full_spec((B_pad, OUT_PAD)),
    )(x2, w1, b1, w2, b2, w3, b3)

    return out[:B, :CLASSES]


def init_params(key):
    """Deterministic synthetic parameters with the module's shapes.

    Linear weights stored as [in, out] (transposed vs. PyTorch's [out, in]).
    BatchNorm1d (eval) expressed as scale = gamma/sqrt(var+eps),
                                     shift = beta - running_mean*scale.
    """
    ks = jax.random.split(key, 12)

    def linear(kw, kb, din, dout):
        lim = 1.0 / jnp.sqrt(din)
        w = jax.random.uniform(kw, (din, dout), jnp.float32, -lim, lim)
        b = jax.random.uniform(kb, (1, dout), jnp.float32, -lim, lim)
        return w, b

    def bn(kg, kb, km, n):
        gamma = 1.0 + 0.1 * jax.random.normal(kg, (1, n), jnp.float32)
        beta = 0.1 * jax.random.normal(kb, (1, n), jnp.float32)
        running_mean = 0.05 * jax.random.normal(km, (1, n), jnp.float32)
        running_var = jnp.ones((1, n), jnp.float32)
        scale = gamma / jnp.sqrt(running_var + BN_EPS)
        shift = beta - running_mean * scale
        return scale, shift

    w1, b1 = linear(ks[0], ks[1], D_IN, D_H1)
    s1, t1 = bn(ks[2], ks[3], ks[4], D_H1)
    w2, b2 = linear(ks[5], ks[6], D_H1, D_H2)
    s2, t2 = bn(ks[7], ks[8], ks[9], D_H2)
    w3, b3 = linear(ks[10], ks[11], D_H2, CLASSES)
    return (w1, b1, s1, t1, w2, b2, s2, t2, w3, b3)


def _reference(x, params):
    """Pure-JAX f32 reference of the PyTorch forward (eval mode)."""
    w1, b1, s1, t1, w2, b2, s2, t2, w3, b3 = params
    h = x.reshape(x.shape[0], -1).astype(jnp.float32)
    h = jnp.maximum((h @ w1 + b1) * s1 + t1, 0.0)
    h = jnp.maximum((h @ w2 + b2) * s2 + t2, 0.0)
    return h @ w3 + b3


if __name__ == "__main__":
    key = jax.random.PRNGKey(0)
    kx, kp = jax.random.split(key)
    # B=2, C=3, H=W=32  ->  flattened feature dim = 3072 as the module requires.
    x = jax.random.normal(kx, (2, 3, 32, 32), dtype=jnp.float32)
    params = init_params(kp)
    folded = fold_params(params)       # one-time host-side prep (BN fold + bf16)

    y = jax.jit(mlp_forward)(x, folded)
    jax.block_until_ready(y)

    assert y.shape == (2, CLASSES) and y.dtype == jnp.float32
    y_ref = _reference(x, params)
    assert jnp.allclose(y, y_ref, rtol=5e-2, atol=5e-2)
    print("KERNEL_OK")
</pallas_src>

<mosaic_0001>
module attributes {stable_mosaic.version = 11 : i64} {
  func.func @mlp_kernel(%arg0: memref<16x3072xbf16, #tpu.memory_space<vmem>>, %arg1: memref<3072x512xbf16, #tpu.memory_space<vmem>>, %arg2: memref<1x512xf32, #tpu.memory_space<vmem>>, %arg3: memref<512x256xbf16, #tpu.memory_space<vmem>>, %arg4: memref<1x256xf32, #tpu.memory_space<vmem>>, %arg5: memref<256x128xbf16, #tpu.memory_space<vmem>>, %arg6: memref<1x128xf32, #tpu.memory_space<vmem>>, %arg7: memref<16x128xf32, #tpu.memory_space<vmem>>) attributes {dimension_semantics = [], scalar_prefetch = 0 : i64, scratch_operands = 0 : i64, tpu.core_type = #tpu.core_type<tc>} {
    %c0 = arith.constant 0 : index
    %c0_0 = arith.constant 0 : index
    %0 = vector.load %arg0[%c0, %c0_0] : memref<16x3072xbf16, #tpu.memory_space<vmem>>, vector<16x3072xbf16>
    %c0_1 = arith.constant 0 : index
    %c0_2 = arith.constant 0 : index
    %1 = vector.load %arg1[%c0_1, %c0_2] : memref<3072x512xbf16, #tpu.memory_space<vmem>>, vector<3072x512xbf16>
    %cst = arith.constant dense<0.000000e+00> : vector<16x512xf32>
    %2 = tpu.matmul %0, %1, %cst {dimension_numbers = #tpu.dot_dimension_numbers<[1], [0], [0], [1], [0, 0, 1, 1], [], []>} : vector<16x3072xbf16>, vector<3072x512xbf16>, vector<16x512xf32> -> vector<16x512xf32>
    %c0_3 = arith.constant 0 : index
    %c0_4 = arith.constant 0 : index
    %3 = vector.load %arg2[%c0_3, %c0_4] : memref<1x512xf32, #tpu.memory_space<vmem>>, vector<1x512xf32>
    %4 = vector.broadcast %3 : vector<1x512xf32> to vector<16x512xf32>
    %5 = arith.addf %2, %4 : vector<16x512xf32>
    %cst_5 = arith.constant 0.000000e+00 : f32
    %6 = vector.broadcast %cst_5 : f32 to vector<16x512xf32>
    %7 = arith.maximumf %5, %6 : vector<16x512xf32>
    %8 = arith.truncf %7 : vector<16x512xf32> to vector<16x512xbf16>
    %c0_6 = arith.constant 0 : index
    %c0_7 = arith.constant 0 : index
    %9 = vector.load %arg3[%c0_6, %c0_7] : memref<512x256xbf16, #tpu.memory_space<vmem>>, vector<512x256xbf16>
    %cst_8 = arith.constant dense<0.000000e+00> : vector<16x256xf32>
    %10 = tpu.matmul %8, %9, %cst_8 {dimension_numbers = #tpu.dot_dimension_numbers<[1], [0], [0], [1], [0, 0, 1, 1], [], []>} : vector<16x512xbf16>, vector<512x256xbf16>, vector<16x256xf32> -> vector<16x256xf32>
    %c0_9 = arith.constant 0 : index
    %c0_10 = arith.constant 0 : index
    %11 = vector.load %arg4[%c0_9, %c0_10] : memref<1x256xf32, #tpu.memory_space<vmem>>, vector<1x256xf32>
    %12 = vector.broadcast %11 : vector<1x256xf32> to vector<16x256xf32>
    %13 = arith.addf %10, %12 : vector<16x256xf32>
    %cst_11 = arith.constant 0.000000e+00 : f32
    %14 = vector.broadcast %cst_11 : f32 to vector<16x256xf32>
    %15 = arith.maximumf %13, %14 : vector<16x256xf32>
    %16 = arith.truncf %15 : vector<16x256xf32> to vector<16x256xbf16>
    %c0_12 = arith.constant 0 : index
    %c0_13 = arith.constant 0 : index
    %17 = vector.load %arg5[%c0_12, %c0_13] : memref<256x128xbf16, #tpu.memory_space<vmem>>, vector<256x128xbf16>
    %cst_14 = arith.constant dense<0.000000e+00> : vector<16x128xf32>
    %18 = tpu.matmul %16, %17, %cst_14 {dimension_numbers = #tpu.dot_dimension_numbers<[1], [0], [0], [1], [0, 0, 1, 1], [], []>} : vector<16x256xbf16>, vector<256x128xbf16>, vector<16x128xf32> -> vector<16x128xf32>
    %c0_15 = arith.constant 0 : index
    %c0_16 = arith.constant 0 : index
    %19 = vector.load %arg6[%c0_15, %c0_16] : memref<1x128xf32, #tpu.memory_space<vmem>>, vector<1x128xf32>
    %20 = vector.broadcast %19 : vector<1x128xf32> to vector<16x128xf32>
    %21 = arith.addf %18, %20 : vector<16x128xf32>
    %c0_17 = arith.constant 0 : index
    %c0_18 = arith.constant 0 : index
    %22 = vector.load %arg7[%c0_17, %c0_18] : memref<16x128xf32, #tpu.memory_space<vmem>>, vector<16x128xf32>
    tpu.vector_store %arg7[%c0_17, %c0_18], %21 {strides = array<i32>} : memref<16x128xf32, #tpu.memory_space<vmem>>, vector<16x128xf32>,
    return
  }
}

</mosaic_0001>

<bundles_post_ra>
// kernel: mlp_forward.1
= control target key start
LH: loop header
LB: loop body
LE: loop exit
PB: predicated region body
PF: predicated region fallthrough
CT: control target
= control target key end

     0   :  { %12 = vsyncpa [#allocation3], 0  ;;  %s9416_s0 = inlined_call_operand.vmem [shape: bf16[16,3072], index: 0, kind: input, shape index: {}]   ;;  %s9417_s1 = inlined_call_operand.hbm [shape: bf16[3072,512], index: 1, kind: input, shape index: {}]   ;;  %s9418_s2 = inlined_call_operand.hbm [shape: f32[1,512], index: 2, kind: input, shape index: {}]   ;;  %s9419_s3 = inlined_call_operand.hbm [shape: bf16[512,256], index: 3, kind: input, shape index: {}]   ;;  %s9420_s4 = inlined_call_operand.hbm [shape: f32[1,256], index: 4, kind: input, shape index: {}]   ;;  %s9421_s5 = inlined_call_operand.hbm [shape: bf16[256,128], index: 5, kind: input, shape index: {}]   ;;  %s9422_s6 = inlined_call_operand.hbm [shape: f32[1,128], index: 6, kind: input, shape index: {}]   ;;  %s9423_s7 = inlined_call_operand.vmem [shape: f32[16,128], index: 7, kind: output, shape index: {}]  }
   0x1   :  { %13 = vsyncpa [#allocation5], 0 }
   0x2   :  { %14 = vsyncpa [#allocation8], 0 }
   0x3   :  { %15 = vsyncpa [#allocation11], 0  ;;  %s9010_s24 = smov [#allocation4]   ;;  %s9011_s26 = smov [#allocation7]  }
   0x4   :  { %s36_s25 = sshll.u32 %s9010_s24, 4  ;;  %s58_s27 = sshll.u32 %s9011_s26, 4  ;;  %s37_s25 = int_to_ptr.vmem [resolvable:$true] %s36_s25  ;;  %s59_s27 = int_to_ptr.vmem [resolvable:$true] %s58_s27 }
   0x5   :  { %s8870_s30 = scalar_lea.hbm %s9418_s2, 64 }
   0x6   :  { %p8871_p0 = scmp.ne.s32.totalorder %s9418_s2, %s8870_s30  ;;  %p8874_p1 = scmp.lt.u32.totalorder %s8870_s30, %s9418_s2 }
   0x8   :  { %p8876_p2 = pnand %p8874_p1, %p8871_p0 }
   0xa   :  { %8879 = shalt.err (!%p8876_p2)
}
   0xb   :  { %s8880_s12 = scalar_lea.vmem %s37_s25, 64  ;;  %p8885_p4 = scmp.lt.s32.totalorder %s37_s25, %s37_s25 }
   0xc   :  { %p8881_p3 = scmp.ne.s32.totalorder %s37_s25, %s8880_s12  ;;  %p8886_p5 = scmp.lt.s32.totalorder %s8880_s12, %s8880_s12 }
   0xe   :  { %p8887_p6 = por %p8886_p5, %p8885_p4 }
  0x10   :  { %p8888_p7 = pnand %p8887_p6, %p8881_p3 }
  0x12   :  { %8891 = shalt.err (!%p8888_p7)
}
  0x13   :  { %39 = dma.hbm_to_vmem [thread:$0]  %s9418_s2, 64, %s37_s25, [#allocation5]  }
  0x14   :  { %s8892_s17 = scalar_lea.hbm %s9420_s4, 32 }
  0x15   :  { %p8893_p8 = scmp.ne.s32.totalorder %s9420_s4, %s8892_s17  ;;  %p8896_p9 = scmp.lt.u32.totalorder %s8892_s17, %s9420_s4 }
  0x17   :  { %p8898_p10 = pnand %p8896_p9, %p8893_p8 }
  0x19   :  { %8901 = shalt.err (!%p8898_p10)
}
  0x1a   :  { %s8902_s22 = scalar_lea.vmem %s59_s27, 32  ;;  %p8907_p12 = scmp.lt.s32.totalorder %s59_s27, %s59_s27 }
  0x1b   :  { %p8903_p11 = scmp.ne.s32.totalorder %s59_s27, %s8902_s22  ;;  %p8908_p13 = scmp.lt.s32.totalorder %s8902_s22, %s8902_s22 }
  0x1d   :  { %p8909_p0 = por %p8908_p13, %p8907_p12 }
  0x1f   :  { %p8910_p1 = pnand %p8909_p0, %p8903_p11 }
  0x21   :  { %8913 = shalt.err (!%p8910_p1)
}
  0x22   :  { %61 = dma.hbm_to_vmem [thread:$0]  %s9420_s4, 32, %s59_s27, [#allocation8]  }
  0x23   :  { %s9012_s24 = smov [#allocation2]   ;;  %s8914_s29 = scalar_lea.hbm %s9417_s1, 98304 }
  0x24   :  { %s23_s25 = sshll.u32 %s9012_s24, 4  ;;  %p8915_p2 = scmp.ne.s32.totalorder %s9417_s1, %s8914_s29  ;;  %s24_s25 = int_to_ptr.vmem [resolvable:$true] %s23_s25 }
  0x25   :  { %p8918_p3 = scmp.lt.u32.totalorder %s8914_s29, %s9417_s1 }
  0x27   :  { %p8920_p4 = pnand %p8918_p3, %p8915_p2 }
  0x29   :  { %8923 = shalt.err (!%p8920_p4)
}
  0x2a   :  { %s8924_s11 = scalar_lea.vmem %s24_s25, 98304  ;;  %p8929_p6 = scmp.lt.s32.totalorder %s24_s25, %s24_s25 }
  0x2b   :  { %p8925_p5 = scmp.ne.s32.totalorder %s24_s25, %s8924_s11  ;;  %p8930_p7 = scmp.lt.s32.totalorder %s8924_s11, %s8924_s11 }
  0x2d   :  { %p8931_p8 = por %p8930_p7, %p8929_p6 }
  0x2f   :  { %p8932_p9 = pnand %p8931_p8, %p8925_p5 }
  0x31   :  { %8935 = shalt.err (!%p8932_p9)
}
  0x32   :  { %s9013_s4 = smov 256   ;;  %s9014_s27 = smov 16  }
  0x33   :  { %29 = dma.hbm_to_vmem [thread:$0]  %s9417_s1, 98304, %s24_s25, [#allocation3], %s9013_s4, %s9013_s4, %s9014_s27  }
  0x34   :  { %s9015_s14 = smov [#allocation6]   ;;  %s8936_s18 = scalar_lea.hbm %s9419_s3, 8192 }
  0x35   :  { %s45_s15 = sshll.u32 %s9015_s14, 4  ;;  %p8937_p10 = scmp.ne.s32.totalorder %s9419_s3, %s8936_s18  ;;  %s46_s15 = int_to_ptr.vmem [resolvable:$true] %s45_s15 }
  0x36   :  { %p8940_p11 = scmp.lt.u32.totalorder %s8936_s18, %s9419_s3 }
  0x38   :  { %p8942_p12 = pnand %p8940_p11, %p8937_p10 }
  0x3a   :  { %8945 = shalt.err (!%p8942_p12)
}
  0x3b   :  { %s8946_s2 = scalar_lea.vmem %s46_s15, 8192  ;;  %p8951_p0 = scmp.lt.s32.totalorder %s46_s15, %s46_s15 }
  0x3c   :  { %p8947_p13 = scmp.ne.s32.totalorder %s46_s15, %s8946_s2  ;;  %p8952_p1 = scmp.lt.s32.totalorder %s8946_s2, %s8946_s2 }
  0x3e   :  { %p8953_p2 = por %p8952_p1, %p8951_p0 }
  0x40   :  { %p8954_p3 = pnand %p8953_p2, %p8947_p13 }
  0x42   :  { %8957 = shalt.err (!%p8954_p3)
}
  0x43   :  { %s9016_s1 = smov 128   ;;  %s9017_s23 = smov 8  }
  0x44   :  { %51 = dma.hbm_to_vmem [thread:$0]  %s9419_s3, 8192, %s46_s15, [#allocation5], %s9016_s1, %s9016_s1, %s9017_s23  }
  0x45   :  { %s9018_s26 = smov [#allocation9]   ;;  %s8958_s8 = scalar_lea.hbm %s9421_s5, 2048 }
  0x46   :  { %s67_s28 = sshll.u32 %s9018_s26, 4  ;;  %p8959_p4 = scmp.ne.s32.totalorder %s9421_s5, %s8958_s8  ;;  %s68_s28 = int_to_ptr.vmem [resolvable:$true] %s67_s28 }
  0x47   :  { %p8962_p5 = scmp.lt.u32.totalorder %s8958_s8, %s9421_s5 }
  0x49   :  { %p8964_p6 = pnand %p8962_p5, %p8959_p4 }
  0x4b   :  { %8967 = shalt.err (!%p8964_p6)
}
  0x4c   :  { %s8968_s27 = scalar_lea.vmem %s68_s28, 2048  ;;  %p8973_p8 = scmp.lt.s32.totalorder %s68_s28, %s68_s28 }
  0x4d   :  { %p8969_p7 = scmp.ne.s32.totalorder %s68_s28, %s8968_s27  ;;  %p8974_p9 = scmp.lt.s32.totalorder %s8968_s27, %s8968_s27 }
  0x4f   :  { %p8975_p10 = por %p8974_p9, %p8973_p8 }
  0x51   :  { %p8976_p11 = pnand %p8975_p10, %p8969_p7 }
  0x53   :  { %8979 = shalt.err (!%p8976_p11)
}
  0x54   :  { %s9019_s3 = smov 64   ;;  %s9020_s12 = smov 4  }
  0x55   :  { %73 = dma.hbm_to_vmem [thread:$0]  %s9421_s5, 2048, %s68_s28, [#allocation8], %s9019_s3, %s9019_s3, %s9020_s12  }
  0x56   :  { %s9021_s15 = smov [#allocation10]   ;;  %s8980_s19 = scalar_lea.hbm %s9422_s6, 16 }
  0x57   :  { %s80_s16 = sshll.u32 %s9021_s15, 4  ;;  %p8981_p12 = scmp.ne.s32.totalorder %s9422_s6, %s8980_s19  ;;  %s81_s16 = int_to_ptr.vmem [resolvable:$true] %s80_s16 }
  0x58   :  { %p8984_p13 = scmp.lt.u32.totalorder %s8980_s19, %s9422_s6 }
  0x5a   :  { %p8986_p0 = pnand %p8984_p13, %p8981_p12 }
  0x5c   :  { %8989 = shalt.err (!%p8986_p0)
}
  0x5d   :  { %s8990_s1 = scalar_lea.vmem %s81_s16, 16  ;;  %s8994_s5 = scalar_lea.vmem %s81_s16, 32 }
  0x5e   :  { %p8991_p1 = scmp.ne.s32.totalorder %s81_s16, %s8990_s1  ;;  %p8995_p2 = scmp.lt.s32.totalorder %s81_s16, %s81_s16 }
  0x5f   :  { %p8996_p3 = scmp.lt.s32.totalorder %s8994_s5, %s8990_s1 }
  0x61   :  { %p8997_p4 = por %p8996_p3, %p8995_p2 }
  0x63   :  { %p8998_p5 = pnand %p8997_p4, %p8991_p1 }
  0x65   :  { %9001 = shalt.err (!%p8998_p5)
}
  0x66   :  { %83 = dma.hbm_to_vmem [thread:$0]  %s9422_s6, 16, %s81_s16, [#allocation11]  }
  0x67   :  { %9002 = dma.done.wait [#allocation3], 98304  }
  0x68   :  { %9003 = vsyncadd [#allocation3], 4294868992 }
  0x69   :  { %9004 = dma.done.wait [#allocation5], 8256  }
  0x6a   :  { %9005 = vsyncadd [#allocation5], 4294959040 }
  0x6b   :  { %9006 = dma.done.wait [#allocation8], 2080  }
  0x6c   :  { %9007 = vsyncadd [#allocation8], 4294965216 }
  0x6d   :  { %9008 = dma.done.wait [#allocation11], 16  }
  0x6e   :  { %9009 = vsyncadd [#allocation11], 4294967280  ;;  %v7606_v0 = vld [vmem:[#allocation2 + $0x4] ss:$16 sps:$4 sm:$0xff]   ;;  %v7610_v2 = vld [vmem:[#allocation2] ss:$16 sps:$4 sm:$0xff]  }
  0x6f   :  { %v7608_v1 = vld [vmem:[#allocation2 + $0x204] ss:$16 sps:$4 sm:$0xff]   ;;  %4877 = vmatprep.subr.bf16.mxu1 %v7606_v0  ;;  %v7611_v3 = vld [vmem:[#allocation2 + $0x200] ss:$16 sps:$4 sm:$0xff]   ;;  %v104_v50 = vld [vmem:[%s9416_s0 + $0x8] sm:$0xff] }
  0x70   :  { %4920 = vmatprep.subr.bf16.mxu0 %v7608_v1  ;;  %v7612_v4 = vld [vmem:[#allocation2 + $0x24] ss:$16 sps:$4 sm:$0xff]   ;;  %4878 = vmatpush1.bf16.msra.mxu1 %v7610_v2  ;;  %v7616_v6 = vld [vmem:[#allocation2 + $0x20] ss:$16 sps:$4 sm:$0xff]   ;;  %v116_v51 = vld [vmem:[%s9416_s0 + $0x68] sm:$0xff] }
  0x71   :  { %4921 = vmatpush1.bf16.msra.mxu0 %v7611_v3  ;;  %v7614_v5 = vld [vmem:[#allocation2 + $0x224] ss:$16 sps:$4 sm:$0xff]   ;;  %4879 = vmatprep.subr.bf16.mxu1 %v7612_v4  ;;  %v7617_v7 = vld [vmem:[#allocation2 + $0x220] ss:$16 sps:$4 sm:$0xff]   ;;  %v9146_v55 = vcombine.high %v104_v50, %v116_v51 }
  0x72   :  { %4922 = vmatprep.subr.bf16.mxu0 %v7614_v5  ;;  %v7618_v8 = vld [vmem:[#allocation2 + $0x44] ss:$16 sps:$4 sm:$0xff]   ;;  %v7622_v10 = vld [vmem:[#allocation2 + $0x40] ss:$16 sps:$4 sm:$0xff]  }
  0x73   :  { %v7620_v9 = vld [vmem:[#allocation2 + $0x244] ss:$16 sps:$4 sm:$0xff]   ;;  %v7623_v11 = vld [vmem:[#allocation2 + $0x240] ss:$16 sps:$4 sm:$0xff]   ;;  %4952 = vmatprep.mubr.bf16.mxu0 %v9146_v55 }
  0x74   :  { %4880 = vmatpush1.bf16.msra.mxu1 %v7616_v6  ;;  %v7624_v12 = vld [vmem:[#allocation2 + $0x64] ss:$16 sps:$4 sm:$0xff]   ;;  %v7628_v14 = vld [vmem:[#allocation2 + $0x60] ss:$16 sps:$4 sm:$0xff]  }
  0x75   :  { %4923 = vmatpush1.bf16.msra.mxu0 %v7617_v7  ;;  %4881 = vmatprep.subr.bf16.mxu1 %v7618_v8  ;;  %v7626_v13 = vld [vmem:[#allocation2 + $0x264] ss:$16 sps:$4 sm:$0xff]   ;;  %v7629_v15 = vld [vmem:[#allocation2 + $0x260] ss:$16 sps:$4 sm:$0xff]   ;;  %v7707_v7 = vld [vmem:[#allocation2 + $0xc] ss:$16 sps:$4 sm:$0xff]  }
  0x76   :  { %4924 = vmatprep.subr.bf16.mxu0 %v7620_v9  ;;  %v7630_v16 = vld [vmem:[#allocation2 + $0x84] ss:$16 sps:$4 sm:$0xff]   ;;  %v7634_v18 = vld [vmem:[#allocation2 + $0x80] ss:$16 sps:$4 sm:$0xff]   ;;  %v9151_v9 = vcombine.low %v104_v50, %v116_v51  ;;  %v7759_v50 = vld [vmem:[#allocation2 + $0x128] ss:$16 sps:$4 sm:$0xff]  }
  0x77   :  { %v7632_v17 = vld [vmem:[#allocation2 + $0x284] ss:$16 sps:$4 sm:$0xff]   ;;  %v7635_v19 = vld [vmem:[#allocation2 + $0x280] ss:$16 sps:$4 sm:$0xff]  }
  0x78   :  { %4882 = vmatpush1.bf16.msra.mxu1 %v7622_v10  ;;  %v7636_v20 = vld [vmem:[#allocation2 + $0xa4] ss:$16 sps:$4 sm:$0xff]   ;;  %v7640_v22 = vld [vmem:[#allocation2 + $0xa0] ss:$16 sps:$4 sm:$0xff]  }
  0x79   :  { %4925 = vmatpush1.bf16.msra.mxu0 %v7623_v11  ;;  %4883 = vmatprep.subr.bf16.mxu1 %v7624_v12  ;;  %v7638_v21 = vld [vmem:[#allocation2 + $0x2a4] ss:$16 sps:$4 sm:$0xff]   ;;  %v7641_v23 = vld [vmem:[#allocation2 + $0x2a0] ss:$16 sps:$4 sm:$0xff]   ;;  %v7705_v11 = vld [vmem:[#allocation2 + $0x8] ss:$16 sps:$4 sm:$0xff]  }
  0x7a   :  { %4926 = vmatprep.subr.bf16.mxu0 %v7626_v13  ;;  %v7642_v24 = vld [vmem:[#allocation2 + $0xc4] ss:$16 sps:$4 sm:$0xff]   ;;  %v7646_v26 = vld [vmem:[#allocation2 + $0xc0] ss:$16 sps:$4 sm:$0xff]   ;;  %v7713_v13 = vld [vmem:[#allocation2 + $0x2c] ss:$16 sps:$4 sm:$0xff]  }
  0x7b   :  { %v7644_v25 = vld [vmem:[#allocation2 + $0x2c4] ss:$16 sps:$4 sm:$0xff]   ;;  %v7647_v27 = vld [vmem:[#allocation2 + $0x2c0] ss:$16 sps:$4 sm:$0xff]  }
  0x7c   :  { %4884 = vmatpush1.bf16.msra.mxu1 %v7628_v14  ;;  %v7648_v28 = vld [vmem:[#allocation2 + $0xe4] ss:$16 sps:$4 sm:$0xff]   ;;  %v7652_v30 = vld [vmem:[#allocation2 + $0xe0] ss:$16 sps:$4 sm:$0xff]  }
  0x7d   :  { %4927 = vmatpush1.bf16.msra.mxu0 %v7629_v15  ;;  %4885 = vmatprep.subr.bf16.mxu1 %v7630_v16  ;;  %v7650_v29 = vld [vmem:[#allocation2 + $0x2e4] ss:$16 sps:$4 sm:$0xff]   ;;  %v7653_v31 = vld [vmem:[#allocation2 + $0x2e0] ss:$16 sps:$4 sm:$0xff]   ;;  %v7711_v15 = vld [vmem:[#allocation2 + $0x28] ss:$16 sps:$4 sm:$0xff]  }
  0x7e   :  { %4928 = vmatprep.subr.bf16.mxu0 %v7632_v17  ;;  %v7654_v32 = vld [vmem:[#allocation2 + $0x104] ss:$16 sps:$4 sm:$0xff]   ;;  %v7658_v34 = vld [vmem:[#allocation2 + $0x100] ss:$16 sps:$4 sm:$0xff]   ;;  %v7719_v17 = vld [vmem:[#allocation2 + $0x4c] ss:$16 sps:$4 sm:$0xff]  }
  0x7f   :  { %v7656_v33 = vld [vmem:[#allocation2 + $0x304] ss:$16 sps:$4 sm:$0xff]   ;;  %v7659_v35 = vld [vmem:[#allocation2 + $0x300] ss:$16 sps:$4 sm:$0xff]  }
  0x80   :  { %4886 = vmatpush1.bf16.msra.mxu1 %v7634_v18  ;;  %v7660_v36 = vld [vmem:[#allocation2 + $0x124] ss:$16 sps:$4 sm:$0xff]   ;;  %v7664_v38 = vld [vmem:[#allocation2 + $0x120] ss:$16 sps:$4 sm:$0xff]  }
  0x81   :  { %4929 = vmatpush1.bf16.msra.mxu0 %v7635_v19  ;;  %4887 = vmatprep.subr.bf16.mxu1 %v7636_v20  ;;  %v7662_v37 = vld [vmem:[#allocation2 + $0x324] ss:$16 sps:$4 sm:$0xff]   ;;  %v7665_v39 = vld [vmem:[#allocation2 + $0x320] ss:$16 sps:$4 sm:$0xff]   ;;  %v7717_v19 = vld [vmem:[#allocation2 + $0x48] ss:$16 sps:$4 sm:$0xff]  }
  0x82   :  { %4930 = vmatprep.subr.bf16.mxu0 %v7638_v21  ;;  %v7666_v40 = vld [vmem:[#allocation2 + $0x144] ss:$16 sps:$4 sm:$0xff]   ;;  %v7670_v42 = vld [vmem:[#allocation2 + $0x140] ss:$16 sps:$4 sm:$0xff]   ;;  %v7725_v21 = vld [vmem:[#allocation2 + $0x6c] ss:$16 sps:$4 sm:$0xff]  }
  0x83   :  { %v7668_v41 = vld [vmem:[#allocation2 + $0x344] ss:$16 sps:$4 sm:$0xff]   ;;  %v7671_v43 = vld [vmem:[#allocation2 + $0x340] ss:$16 sps:$4 sm:$0xff]  }
  0x84   :  { %4888 = vmatpush1.bf16.msra.mxu1 %v7640_v22  ;;  %v7672_v44 = vld [vmem:[#allocation2 + $0x164] ss:$16 sps:$4 sm:$0xff]   ;;  %v7676_v46 = vld [vmem:[#allocation2 + $0x160] ss:$16 sps:$4 sm:$0xff]  }
  0x85   :  { %4931 = vmatpush1.bf16.msra.mxu0 %v7641_v23  ;;  %4889 = vmatprep.subr.bf16.mxu1 %v7642_v24  ;;  %v7674_v45 = vld [vmem:[#allocation2 + $0x364] ss:$16 sps:$4 sm:$0xff]   ;;  %v7677_v47 = vld [vmem:[#allocation2 + $0x360] ss:$16 sps:$4 sm:$0xff]   ;;  %v7723_v23 = vld [vmem:[#allocation2 + $0x68] ss:$16 sps:$4 sm:$0xff]  }
  0x86   :  { %4932 = vmatprep.subr.bf16.mxu0 %v7644_v25  ;;  %v103_v48 = vld [vmem:[%s9416_s0] sm:$0xff]  ;;  %v7731_v25 = vld [vmem:[#allocation2 + $0x8c] ss:$16 sps:$4 sm:$0xff]  }
  0x87   :  { %v115_v49 = vld [vmem:[%s9416_s0 + $0x60] sm:$0xff] }
  0x88   :  { %4890 = vmatpush1.bf16.msra.mxu1 %v7646_v26  ;;  %v7678_v52 = vld [vmem:[#allocation2 + $0x184] ss:$16 sps:$4 sm:$0xff]   ;;  %v6596_v53 = vcombine.high %v103_v48, %v115_v49  ;;  %v7682_v56 = vld [vmem:[#allocation2 + $0x180] ss:$16 sps:$4 sm:$0xff]   ;;  %v9149_v8 = vcombine.low %v103_v48, %v115_v49  ;;  %v7761_v48 = vld [vmem:[#allocation2 + $0x12c] ss:$16 sps:$4 sm:$0xff]  }
  0x89   :  { %4933 = vmatpush1.bf16.msra.mxu0 %v7647_v27  ;;  %4891 = vmatprep.subr.bf16.mxu1 %v7648_v28  ;;  %v7680_v54 = vld [vmem:[#allocation2 + $0x384] ss:$16 sps:$4 sm:$0xff]   ;;  %v7683_v57 = vld [vmem:[#allocation2 + $0x380] ss:$16 sps:$4 sm:$0xff]   ;;  %v7729_v27 = vld [vmem:[#allocation2 + $0x88] ss:$16 sps:$4 sm:$0xff]  }
  0x8a   :  { %4934 = vmatprep.subr.bf16.mxu0 %v7650_v29  ;;  %4909 = vmatprep.mubr.bf16.mxu1 %v6596_v53  ;;  %v7684_v58 = vld [vmem:[#allocation2 + $0x1a4] ss:$16 sps:$4 sm:$0xff]   ;;  %v7688_v60 = vld [vmem:[#allocation2 + $0x1a0] ss:$16 sps:$4 sm:$0xff]   ;;  %v7737_v29 = vld [vmem:[#allocation2 + $0xac] ss:$16 sps:$4 sm:$0xff]  }
  0x8b   :  { %v7686_v59 = vld [vmem:[#allocation2 + $0x3a4] ss:$16 sps:$4 sm:$0xff]   ;;  %v7689_v61 = vld [vmem:[#allocation2 + $0x3a0] ss:$16 sps:$4 sm:$0xff]  }
  0x8c   :  { %4892 = vmatpush1.bf16.msra.mxu1 %v7652_v30  ;;  %v7690_v62 = vld [vmem:[#allocation2 + $0x1c4] ss:$16 sps:$4 sm:$0xff]   ;;  %v7694_v0 = vld [vmem:[#allocation2 + $0x1c0] ss:$16 sps:$4 sm:$0xff]  }
  0x8d   :  { %4935 = vmatpush1.bf16.msra.mxu0 %v7653_v31  ;;  %4893 = vmatprep.subr.bf16.mxu1 %v7654_v32  ;;  %v7692_v63 = vld [vmem:[#allocation2 + $0x3c4] ss:$16 sps:$4 sm:$0xff]   ;;  %v7695_v1 = vld [vmem:[#allocation2 + $0x3c0] ss:$16 sps:$4 sm:$0xff]   ;;  %v7735_v31 = vld [vmem:[#allocation2 + $0xa8] ss:$16 sps:$4 sm:$0xff]  }
  0x8e   :  { %4936 = vmatprep.subr.bf16.mxu0 %v7656_v33  ;;  %v7696_v2 = vld [vmem:[#allocation2 + $0x1e4] ss:$16 sps:$4 sm:$0xff]   ;;  %v7700_v4 = vld [vmem:[#allocation2 + $0x1e0] ss:$16 sps:$4 sm:$0xff]   ;;  %v7743_v33 = vld [vmem:[#allocation2 + $0xcc] ss:$16 sps:$4 sm:$0xff]  }
  0x8f   :  { %v7698_v3 = vld [vmem:[#allocation2 + $0x3e4] ss:$16 sps:$4 sm:$0xff]   ;;  %v7701_v5 = vld [vmem:[#allocation2 + $0x3e0] ss:$16 sps:$4 sm:$0xff]  }
  0x90   :  { %4894 = vmatpush1.bf16.msra.mxu1 %v7658_v34  ;;  %v7704_v6 = vld [vmem:[#allocation2 + $0x404] ss:$16 sps:$4 sm:$0xff]   ;;  %v7702_v10 = vld [vmem:[#allocation2 + $0x400] ss:$16 sps:$4 sm:$0xff]  }
  0x91   :  { %4937 = vmatpush1.bf16.msra.mxu0 %v7659_v35  ;;  %4895 = vmatprep.subr.bf16.mxu1 %v7660_v36  ;;  %v7710_v12 = vld [vmem:[#allocation2 + $0x424] ss:$16 sps:$4 sm:$0xff]   ;;  %v7708_v14 = vld [vmem:[#allocation2 + $0x420] ss:$16 sps:$4 sm:$0xff]  }
  0x92   :  { %4938 = vmatprep.subr.bf16.mxu0 %v7662_v37  ;;  %v7716_v16 = vld [vmem:[#allocation2 + $0x444] ss:$16 sps:$4 sm:$0xff]   ;;  %v7714_v18 = vld [vmem:[#allocation2 + $0x440] ss:$16 sps:$4 sm:$0xff]   ;;  %v7741_v37 = vld [vmem:[#allocation2 + $0xc8] ss:$16 sps:$4 sm:$0xff]  }
  0x93   :  { %v7722_v20 = vld [vmem:[#allocation2 + $0x464] ss:$16 sps:$4 sm:$0xff]   ;;  %v7720_v22 = vld [vmem:[#allocation2 + $0x460] ss:$16 sps:$4 sm:$0xff]  }
  0x94   :  { %4896 = vmatpush1.bf16.msra.mxu1 %v7664_v38  ;;  %v7728_v24 = vld [vmem:[#allocation2 + $0x484] ss:$16 sps:$4 sm:$0xff]   ;;  %v7726_v26 = vld [vmem:[#allocation2 + $0x480] ss:$16 sps:$4 sm:$0xff]  }
  0x95   :  { %4939 = vmatpush1.bf16.msra.mxu0 %v7665_v39  ;;  %4897 = vmatprep.subr.bf16.mxu1 %v7666_v40  ;;  %v7734_v28 = vld [vmem:[#allocation2 + $0x4a4] ss:$16 sps:$4 sm:$0xff]   ;;  %v7732_v30 = vld [vmem:[#allocation2 + $0x4a0] ss:$16 sps:$4 sm:$0xff]   ;;  %v7749_v40 = vld [vmem:[#allocation2 + $0xec] ss:$16 sps:$4 sm:$0xff]  }
  0x96   :  { %4940 = vmatprep.subr.bf16.mxu0 %v7668_v41  ;;  %v7740_v32 = vld [vmem:[#allocation2 + $0x4c4] ss:$16 sps:$4 sm:$0xff]   ;;  %v7738_v36 = vld [vmem:[#allocation2 + $0x4c0] ss:$16 sps:$4 sm:$0xff]  }
  0x97   :  { %v9158_v34 = vld [vmem:[%s9416_s0 + $0x10] sm:$0xff] }
  0x98   :  { %4898 = vmatpush1.bf16.msra.mxu1 %v7670_v42  ;;  %v9163_v35 = vld [vmem:[%s9416_s0 + $0x70] sm:$0xff]  ;;  %v7747_v42 = vld [vmem:[#allocation2 + $0xe8] ss:$16 sps:$4 sm:$0xff]  }
  0x99   :  { %4941 = vmatpush1.bf16.msra.mxu0 %v7671_v43  ;;  %4899 = vmatprep.subr.bf16.mxu1 %v7672_v44  ;;  %v9167_v38 = vcombine.high %v9158_v34, %v9163_v35  ;;  %v7746_v39 = vld [vmem:[#allocation2 + $0x4e4] ss:$16 sps:$4 sm:$0xff]   ;;  %v7744_v41 = vld [vmem:[#allocation2 + $0x4e0] ss:$16 sps:$4 sm:$0xff]   ;;  %v7755_v44 = vld [vmem:[#allocation2 + $0x10c] ss:$16 sps:$4 sm:$0xff]  }
  0x9a   :  { %4942 = vmatprep.subr.bf16.mxu0 %v7674_v45  ;;  %v7752_v43 = vld [vmem:[#allocation2 + $0x504] ss:$16 sps:$4 sm:$0xff]   ;;  %v7750_v45 = vld [vmem:[#allocation2 + $0x500] ss:$16 sps:$4 sm:$0xff]  }
  0x9b   :  { %v7756_v49 = vld [vmem:[#allocation2 + $0x520] ss:$16 sps:$4 sm:$0xff]   ;;  %v7764_v51 = vld [vmem:[#allocation2 + $0x544] ss:$16 sps:$4 sm:$0xff]  }
  0x9c   :  { %4900 = vmatpush1.bf16.msra.mxu1 %v7676_v46  ;;  %v7753_v46 = vld [vmem:[#allocation2 + $0x108] ss:$16 sps:$4 sm:$0xff]  }
  0x9d   :  { %4943 = vmatpush1.bf16.msra.mxu0 %v7677_v47  ;;  %4901 = vmatprep.subr.bf16.mxu1 %v7678_v52  ;;  %v7758_v47 = vld [vmem:[#allocation2 + $0x524] ss:$16 sps:$4 sm:$0xff]   ;;  %v7767_v52 = vld [vmem:[#allocation2 + $0x14c] ss:$16 sps:$4 sm:$0xff]  }
  0x9e   :  { %4944 = vmatprep.subr.bf16.mxu0 %v7680_v54  ;;  %v7765_v54 = vld [vmem:[#allocation2 + $0x148] ss:$16 sps:$4 sm:$0xff]  }
  0xa0   :  { %4902 = vmatpush1.bf16.msra.mxu1 %v7682_v56  ;;  %v7770_v56 = vld [vmem:[#allocation2 + $0x564] ss:$16 sps:$4 sm:$0xff]  }
  0xa1   :  { %4945 = vmatpush1.bf16.msra.mxu0 %v7683_v57  ;;  %4903 = vmatprep.subr.bf16.mxu1 %v7684_v58  ;;  %v7773_v57 = vld [vmem:[#allocation2 + $0x16c] ss:$16 sps:$4 sm:$0xff]   ;;  %v7768_v58 = vld [vmem:[#allocation2 + $0x560] ss:$16 sps:$4 sm:$0xff]  }
  0xa2   :  { %4946 = vmatprep.subr.bf16.mxu0 %v7686_v59  ;;  %v7771_v59 = vld [vmem:[#allocation2 + $0x168] ss:$16 sps:$4 sm:$0xff]  }
  0xa4   :  { %4904 = vmatpush1.bf16.msra.mxu1 %v7688_v60  ;;  %v7776_v60 = vld [vmem:[#allocation2 + $0x584] ss:$16 sps:$4 sm:$0xff]  }
  0xa5   :  { %4947 = vmatpush1.bf16.msra.mxu0 %v7689_v61  ;;  %4905 = vmatprep.subr.bf16.mxu1 %v7690_v62  ;;  %v7779_v61 = vld [vmem:[#allocation2 + $0x18c] ss:$16 sps:$4 sm:$0xff]   ;;  %v7774_v62 = vld [vmem:[#allocation2 + $0x580] ss:$16 sps:$4 sm:$0xff]  }
  0xa6   :  { %4948 = vmatprep.subr.bf16.mxu0 %v7692_v63  ;;  %v7777_v63 = vld [vmem:[#allocation2 + $0x188] ss:$16 sps:$4 sm:$0xff]  }
  0xa8   :  { %4906 = vmatpush1.bf16.msra.mxu1 %v7694_v0  ;;  %v7782_v0 = vld [vmem:[#allocation2 + $0x5a4] ss:$16 sps:$4 sm:$0xff]  }
  0xa9   :  { %4949 = vmatpush1.bf16.msra.mxu0 %v7695_v1  ;;  %4907 = vmatprep.subr.bf16.mxu1 %v7696_v2  ;;  %v7785_v1 = vld [vmem:[#allocation2 + $0x1ac] ss:$16 sps:$4 sm:$0xff]   ;;  %v7780_v2 = vld [vmem:[#allocation2 + $0x5a0] ss:$16 sps:$4 sm:$0xff]  }
  0xaa   :  { %4950 = vmatprep.subr.bf16.mxu0 %v7698_v3  ;;  %v7783_v3 = vld [vmem:[#allocation2 + $0x1a8] ss:$16 sps:$4 sm:$0xff]  }
  0xac   :  { %4908 = vmatpush1.bf16.msra.mxu1 %v7700_v4  ;;  %v7788_v4 = vld [vmem:[#allocation2 + $0x5c4] ss:$16 sps:$4 sm:$0xff]  }
  0xad   :  { %4951 = vmatpush1.bf16.msra.mxu0 %v7701_v5  ;;  %5393 = vmatprep.subr.bf16.mxu1 %v7707_v7  ;;  %v7791_v5 = vld [vmem:[#allocation2 + $0x1cc] ss:$16 sps:$4 sm:$0xff]   ;;  %v7789_v7 = vld [vmem:[#allocation2 + $0x1c8] ss:$16 sps:$4 sm:$0xff]  }
  0xae   :  { %4963 = vmatprep.subr.bf16.mxu0 %v7704_v6  ;;  %v7786_v6 = vld [vmem:[#allocation2 + $0x5c0] ss:$16 sps:$4 sm:$0xff]  }
  0xaf   :  { %4910 = vmatmul.mubr.bf16.vlgmr.msra.gmra.mrb[0].mxu1 %v9149_v8 }
  0xb0   :  { %4953 = vmatmul.mubr.bf16.vlgmr.msra.gmra.mrb[0].mxu0 %v9151_v9  ;;  %5394 = vmatpush1.bf16.msra.mxu1 %v7705_v11  ;;  %v7797_v11 = vld [vmem:[#allocation2 + $0x1ec] ss:$16 sps:$4 sm:$0xff]  }
  0xb1   :  { %4964 = vmatpush1.bf16.msra.mxu0 %v7702_v10  ;;  %5395 = vmatprep.subr.bf16.mxu1 %v7713_v13  ;;  %v7794_v10 = vld [vmem:[#allocation2 + $0x5e4] ss:$16 sps:$4 sm:$0xff]   ;;  %v7795_v13 = vld [vmem:[#allocation2 + $0x1e8] ss:$16 sps:$4 sm:$0xff]  }
  0xb2   :  { %4965 = vmatprep.subr.bf16.mxu0 %v7710_v12  ;;  %5425 = vmatprep.mubr.bf16.mxu1 %v6596_v53  ;;  %v7762_v53 = vld [vmem:[#allocation2 + $0x540] ss:$16 sps:$4 sm:$0xff]  }
  0xb3   :  { %4995 = vmatprep.mubr.bf16.mxu0 %v9167_v38  ;;  %v7792_v12 = vld [vmem:[#allocation2 + $0x5e0] ss:$16 sps:$4 sm:$0xff]  }
  0xb4   :  { %5396 = vmatpush1.bf16.msra.mxu1 %v7711_v15  ;;  %v7803_v15 = vld [vmem:[#allocation2 + $0x20c] ss:$16 sps:$4 sm:$0xff]  }
  0xb5   :  { %4966 = vmatpush1.bf16.msra.mxu0 %v7708_v14  ;;  %5397 = vmatprep.subr.bf16.mxu1 %v7719_v17  ;;  %v7800_v14 = vld [vmem:[#allocation2 + $0x604] ss:$16 sps:$4 sm:$0xff]   ;;  %v7798_v17 = vld [vmem:[#allocation2 + $0x600] ss:$16 sps:$4 sm:$0xff]  }
  0xb6   :  { %4967 = vmatprep.subr.bf16.mxu0 %v7716_v16  ;;  %v9172_v16 = vcombine.low %v9158_v34, %v9163_v35  ;;  %v7827_v34 = vld [vmem:[#allocation2 + $0x28c] ss:$16 sps:$4 sm:$0xff]   ;;  %v7822_v35 = vld [vmem:[#allocation2 + $0x680] ss:$16 sps:$4 sm:$0xff]  }
  0xb8   :  { %5398 = vmatpush1.bf16.msra.mxu1 %v7717_v19  ;;  %v7806_v19 = vld [vmem:[#allocation2 + $0x624] ss:$16 sps:$4 sm:$0xff]  }
  0xb9   :  { %4968 = vmatpush1.bf16.msra.mxu0 %v7714_v18  ;;  %5399 = vmatprep.subr.bf16.mxu1 %v7725_v21  ;;  %v7801_v18 = vld [vmem:[#allocation2 + $0x208] ss:$16 sps:$4 sm:$0xff]  }
  0xba   :  { %4969 = vmatprep.subr.bf16.mxu0 %v7722_v20  ;;  %v7809_v20 = vld [vmem:[#allocation2 + $0x22c] ss:$16 sps:$4 sm:$0xff]  }
  0xbb   :  { %v9177_v21 = vld [vmem:[%s9416_s0 + $0x18] sm:$0xff] }
  0xbc   :  { %5400 = vmatpush1.bf16.msra.mxu1 %v7723_v23  ;;  %v7804_v23 = vld [vmem:[#allocation2 + $0x620] ss:$16 sps:$4 sm:$0xff]  }
  0xbd   :  { %4970 = vmatpush1.bf16.msra.mxu0 %v7720_v22  ;;  %5401 = vmatprep.subr.bf16.mxu1 %v7731_v25  ;;  %v9182_v22 = vld [vmem:[%s9416_s0 + $0x78] sm:$0xff] }
  0xbe   :  { %4971 = vmatprep.subr.bf16.mxu0 %v7728_v24  ;;  %v7807_v24 = vld [vmem:[#allocation2 + $0x228] ss:$16 sps:$4 sm:$0xff]   ;;  %v9188_v25 = vcombine.high %v9177_v21, %v9182_v22 }
  0xc0   :  { %5402 = vmatpush1.bf16.msra.mxu1 %v7729_v27  ;;  %v7815_v27 = vld [vmem:[#allocation2 + $0x24c] ss:$16 sps:$4 sm:$0xff]  }
  0xc1   :  { %4972 = vmatpush1.bf16.msra.mxu0 %v7726_v26  ;;  %5403 = vmatprep.subr.bf16.mxu1 %v7737_v29  ;;  %v7812_v26 = vld [vmem:[#allocation2 + $0x644] ss:$16 sps:$4 sm:$0xff]   ;;  %v7813_v29 = vld [vmem:[#allocation2 + $0x248] ss:$16 sps:$4 sm:$0xff]  }
  0xc2   :  { %4973 = vmatprep.subr.bf16.mxu0 %v7734_v28  ;;  %v7810_v28 = vld [vmem:[#allocation2 + $0x640] ss:$16 sps:$4 sm:$0xff]  }
  0xc4   :  { %5404 = vmatpush1.bf16.msra.mxu1 %v7735_v31  ;;  %v7816_v31 = vld [vmem:[#allocation2 + $0x660] ss:$16 sps:$4 sm:$0xff]  }
  0xc5   :  { %4974 = vmatpush1.bf16.msra.mxu0 %v7732_v30  ;;  %5405 = vmatprep.subr.bf16.mxu1 %v7743_v33  ;;  %v7821_v30 = vld [vmem:[#allocation2 + $0x26c] ss:$16 sps:$4 sm:$0xff]   ;;  %v7824_v33 = vld [vmem:[#allocation2 + $0x684] ss:$16 sps:$4 sm:$0xff]  }
  0xc6   :  { %4975 = vmatprep.subr.bf16.mxu0 %v7740_v32  ;;  %v7819_v32 = vld [vmem:[#allocation2 + $0x268] ss:$16 sps:$4 sm:$0xff]  }
  0xc8   :  { %5406 = vmatpush1.bf16.msra.mxu1 %v7741_v37  ;;  %v7833_v37 = vld [vmem:[#allocation2 + $0x2ac] ss:$16 sps:$4 sm:$0xff]  }
  0xc9   :  { %4976 = vmatpush1.bf16.msra.mxu0 %v7738_v36  ;;  %5407 = vmatprep.subr.bf16.mxu1 %v7749_v40  ;;  %v7825_v36 = vld [vmem:[#allocation2 + $0x288] ss:$16 sps:$4 sm:$0xff]  }
  0xca   :  { %4977 = vmatprep.subr.bf16.mxu0 %v7746_v39  ;;  %v7828_v39 = vld [vmem:[#allocation2 + $0x6a0] ss:$16 sps:$4 sm:$0xff]   ;;  %v7831_v40 = vld [vmem:[#allocation2 + $0x2a8] ss:$16 sps:$4 sm:$0xff]  }
  0xcc   :  { %5408 = vmatpush1.bf16.msra.mxu1 %v7747_v42  ;;  %v7839_v42 = vld [vmem:[#allocation2 + $0x2cc] ss:$16 sps:$4 sm:$0xff]  }
  0xcd   :  { %4978 = vmatpush1.bf16.msra.mxu0 %v7744_v41  ;;  %5409 = vmatprep.subr.bf16.mxu1 %v7755_v44  ;;  %v7836_v41 = vld [vmem:[#allocation2 + $0x6c4] ss:$16 sps:$4 sm:$0xff]   ;;  %v7837_v44 = vld [vmem:[#allocation2 + $0x2c8] ss:$16 sps:$4 sm:$0xff]  }
  0xce   :  { %4979 = vmatprep.subr.bf16.mxu0 %v7752_v43  ;;  %v7834_v43 = vld [vmem:[#allocation2 + $0x6c0] ss:$16 sps:$4 sm:$0xff]  }
  0xd0   :  { %5410 = vmatpush1.bf16.msra.mxu1 %v7753_v46  ;;  %v7845_v46 = vld [vmem:[#allocation2 + $0x2ec] ss:$16 sps:$4 sm:$0xff]  }
  0xd1   :  { %4980 = vmatpush1.bf16.msra.mxu0 %v7750_v45  ;;  %5411 = vmatprep.subr.bf16.mxu1 %v7761_v48  ;;  %v7842_v45 = vld [vmem:[#allocation2 + $0x6e4] ss:$16 sps:$4 sm:$0xff]   ;;  %v7843_v48 = vld [vmem:[#allocation2 + $0x2e8] ss:$16 sps:$4 sm:$0xff]  }
  0xd2   :  { %4981 = vmatprep.subr.bf16.mxu0 %v7758_v47  ;;  %v7840_v47 = vld [vmem:[#allocation2 + $0x6e0] ss:$16 sps:$4 sm:$0xff]  }
  0xd4   :  { %5412 = vmatpush1.bf16.msra.mxu1 %v7759_v50  ;;  %v7851_v50 = vld [vmem:[#allocation2 + $0x30c] ss:$16 sps:$4 sm:$0xff]  }
  0xd5   :  { %4982 = vmatpush1.bf16.msra.mxu0 %v7756_v49  ;;  %5413 = vmatprep.subr.bf16.mxu1 %v7767_v52  ;;  %v7848_v49 = vld [vmem:[#allocation2 + $0x704] ss:$16 sps:$4 sm:$0xff]   ;;  %v7849_v52 = vld [vmem:[#allocation2 + $0x308] ss:$16 sps:$4 sm:$0xff]  }
  0xd6   :  { %4983 = vmatprep.subr.bf16.mxu0 %v7764_v51  ;;  %v7846_v51 = vld [vmem:[#allocation2 + $0x700] ss:$16 sps:$4 sm:$0xff]  }
  0xd8   :  { %5414 = vmatpush1.bf16.msra.mxu1 %v7765_v54  ;;  %v7857_v54 = vld [vmem:[#allocation2 + $0x32c] ss:$16 sps:$4 sm:$0xff]  }
  0xd9   :  { %4984 = vmatpush1.bf16.msra.mxu0 %v7762_v53  ;;  %5415 = vmatprep.subr.bf16.mxu1 %v7773_v57  ;;  %v7854_v53 = vld [vmem:[#allocation2 + $0x724] ss:$16 sps:$4 sm:$0xff]   ;;  %v7855_v57 = vld [vmem:[#allocation2 + $0x328] ss:$16 sps:$4 sm:$0xff]  }
  0xda   :  { %4985 = vmatprep.subr.bf16.mxu0 %v7770_v56  ;;  %v7852_v56 = vld [vmem:[#allocation2 + $0x720] ss:$16 sps:$4 sm:$0xff]  }
  0xdc   :  { %5416 = vmatpush1.bf16.msra.mxu1 %v7771_v59  ;;  %v7863_v59 = vld [vmem:[#allocation2 + $0x34c] ss:$16 sps:$4 sm:$0xff]  }
  0xdd   :  { %4986 = vmatpush1.bf16.msra.mxu0 %v7768_v58  ;;  %5417 = vmatprep.subr.bf16.mxu1 %v7779_v61  ;;  %v7860_v58 = vld [vmem:[#allocation2 + $0x744] ss:$16 sps:$4 sm:$0xff]   ;;  %v7861_v61 = vld [vmem:[#allocation2 + $0x348] ss:$16 sps:$4 sm:$0xff]  }
  0xde   :  { %4987 = vmatprep.subr.bf16.mxu0 %v7776_v60  ;;  %v7858_v60 = vld [vmem:[#allocation2 + $0x740] ss:$16 sps:$4 sm:$0xff]  }
  0xe0   :  { %5418 = vmatpush1.bf16.msra.mxu1 %v7777_v63  ;;  %v7869_v63 = vld [vmem:[#allocation2 + $0x36c] ss:$16 sps:$4 sm:$0xff]  }
  0xe1   :  { %4988 = vmatpush1.bf16.msra.mxu0 %v7774_v62  ;;  %5419 = vmatprep.subr.bf16.mxu1 %v7785_v1  ;;  %v7866_v62 = vld [vmem:[#allocation2 + $0x764] ss:$16 sps:$4 sm:$0xff]   ;;  %v7867_v1 = vld [vmem:[#allocation2 + $0x368] ss:$16 sps:$4 sm:$0xff]  }
  0xe2   :  { %4989 = vmatprep.subr.bf16.mxu0 %v7782_v0  ;;  %v7864_v0 = vld [vmem:[#allocation2 + $0x760] ss:$16 sps:$4 sm:$0xff]  }
  0xe4   :  { %5420 = vmatpush1.bf16.msra.mxu1 %v7783_v3  ;;  %v7875_v3 = vld [vmem:[#allocation2 + $0x38c] ss:$16 sps:$4 sm:$0xff]  }
  0xe5   :  { %4990 = vmatpush1.bf16.msra.mxu0 %v7780_v2  ;;  %5421 = vmatprep.subr.bf16.mxu1 %v7791_v5  ;;  %v7872_v2 = vld [vmem:[#allocation2 + $0x784] ss:$16 sps:$4 sm:$0xff]   ;;  %v7873_v5 = vld [vmem:[#allocation2 + $0x388] ss:$16 sps:$4 sm:$0xff]  }
  0xe6   :  { %4991 = vmatprep.subr.bf16.mxu0 %v7788_v4  ;;  %v7870_v4 = vld [vmem:[#allocation2 + $0x780] ss:$16 sps:$4 sm:$0xff]  }
  0xe8   :  { %5422 = vmatpush1.bf16.msra.mxu1 %v7789_v7  ;;  %v7881_v7 = vld [vmem:[#allocation2 + $0x3ac] ss:$16 sps:$4 sm:$0xff]  }
  0xe9   :  { %4992 = vmatpush1.bf16.msra.mxu0 %v7786_v6  ;;  %5423 = vmatprep.subr.bf16.mxu1 %v7797_v11  ;;  %v7878_v6 = vld [vmem:[#allocation2 + $0x7a4] ss:$16 sps:$4 sm:$0xff]   ;;  %v7879_v11 = vld [vmem:[#allocation2 + $0x3a8] ss:$16 sps:$4 sm:$0xff]  }
  0xea   :  { %4993 = vmatprep.subr.bf16.mxu0 %v7794_v10  ;;  %v7876_v10 = vld [vmem:[#allocation2 + $0x7a0] ss:$16 sps:$4 sm:$0xff]  }
  0xec   :  { %5424 = vmatpush1.bf16.msra.mxu1 %v7795_v13  ;;  %v7887_v13 = vld [vmem:[#allocation2 + $0x3cc] ss:$16 sps:$4 sm:$0xff]  }
  0xed   :  { %4994 = vmatpush1.bf16.msra.mxu0 %v7792_v12  ;;  %5436 = vmatprep.subr.bf16.mxu1 %v7803_v15  ;;  %v7884_v12 = vld [vmem:[#allocation2 + $0x7c4] ss:$16 sps:$4 sm:$0xff]   ;;  %v7885_v15 = vld [vmem:[#allocation2 + $0x3c8] ss:$16 sps:$4 sm:$0xff]  }
  0xee   :  { %5006 = vmatprep.subr.bf16.mxu0 %v7800_v14  ;;  %v7882_v14 = vld [vmem:[#allocation2 + $0x7c0] ss:$16 sps:$4 sm:$0xff]  }
  0xef   :  { %5426 = vmatmul.mubr.bf16.vlgmr.msra.gmra.mrb[4].mxu1 %v9149_v8  ;;  %v7818_v8 = vld [vmem:[#allocation2 + $0x664] ss:$16 sps:$4 sm:$0xff]  }
  0xf0   :  { %4996 = vmatmul.mubr.bf16.vlgmr.msra.gmra.mrb[0].mxu0 %v9172_v16  ;;  %5437 = vmatpush1.bf16.msra.mxu1 %v7801_v18  ;;  %v7893_v18 = vld [vmem:[#allocation2 + $0x3ec] ss:$16 sps:$4 sm:$0xff]  }
  0xf1   :  { %5007 = vmatpush1.bf16.msra.mxu0 %v7798_v17  ;;  %5438 = vmatprep.subr.bf16.mxu1 %v7809_v20  ;;  %v7890_v17 = vld [vmem:[#allocation2 + $0x7e4] ss:$16 sps:$4 sm:$0xff]   ;;  %v7891_v20 = vld [vmem:[#allocation2 + $0x3e8] ss:$16 sps:$4 sm:$0xff]  }
  0xf2   :  { %5008 = vmatprep.subr.bf16.mxu0 %v7806_v19  ;;  %5038 = vmatprep.mubr.bf16.mxu0 %v9188_v25  ;;  %v7888_v19 = vld [vmem:[#allocation2 + $0x7e0] ss:$16 sps:$4 sm:$0xff]  }
  0xf3   :  { %5468 = vmatprep.mubr.bf16.mxu1 %v9146_v55  ;;  %v7830_v55 = vld [vmem:[#allocation2 + $0x6a4] ss:$16 sps:$4 sm:$0xff]  }
  0xf4   :  { %5439 = vmatpush1.bf16.msra.mxu1 %v7807_v24  ;;  %v7899_v24 = vld [vmem:[#allocation2 + $0x40c] ss:$16 sps:$4 sm:$0xff]  }
  0xf5   :  { %5009 = vmatpush1.bf16.msra.mxu0 %v7804_v23  ;;  %5440 = vmatprep.subr.bf16.mxu1 %v7815_v27  ;;  %v7896_v23 = vld [vmem:[#allocation2 + $0x804] ss:$16 sps:$4 sm:$0xff]   ;;  %v9194_v27 = vcombine.low %v9177_v21, %v9182_v22  ;;  %v7900_v22 = vld [vmem:[#allocation2 + $0x820] ss:$16 sps:$4 sm:$0xff]  }
  0xf6   :  { %5010 = vmatprep.subr.bf16.mxu0 %v7812_v26  ;;  %v7894_v26 = vld [vmem:[#allocation2 + $0x800] ss:$16 sps:$4 sm:$0xff]  }
  0xf8   :  { %5441 = vmatpush1.bf16.msra.mxu1 %v7813_v29  ;;  %v9204_v29 = vld [vmem:[%s9416_s0 + $0x80] sm:$0xff] }
  0xf9   :  { %5011 = vmatpush1.bf16.msra.mxu0 %v7810_v28  ;;  %5442 = vmatprep.subr.bf16.mxu1 %v7821_v30  ;;  %v9199_v28 = vld [vmem:[%s9416_s0 + $0x20] sm:$0xff] }
  0xfa   :  { %5012 = vmatprep.subr.bf16.mxu0 %v7818_v8  ;;  %v7897_v8 = vld [vmem:[#allocation2 + $0x408] ss:$16 sps:$4 sm:$0xff]   ;;  %v7902_v30 = vld [vmem:[#allocation2 + $0x824] ss:$16 sps:$4 sm:$0xff]   ;;  %v9208_v21 = vcombine.high %v9199_v28, %v9204_v29 }
  0xfc   :  { %5443 = vmatpush1.bf16.msra.mxu1 %v7819_v32  ;;  %v7903_v32 = vld [vmem:[#allocation2 + $0x428] ss:$16 sps:$4 sm:$0xff]  }
  0xfd   :  { %5013 = vmatpush1.bf16.msra.mxu0 %v7816_v31  ;;  %5444 = vmatprep.subr.bf16.mxu1 %v7827_v34  ;;  %v7905_v31 = vld [vmem:[#allocation2 + $0x42c] ss:$16 sps:$4 sm:$0xff]  }
  0xfe   :  { %5014 = vmatprep.subr.bf16.mxu0 %v7824_v33  ;;  %v7908_v33 = vld [vmem:[#allocation2 + $0x844] ss:$16 sps:$4 sm:$0xff]   ;;  %v7911_v34 = vld [vmem:[#allocation2 + $0x44c] ss:$16 sps:$4 sm:$0xff]  }
 0x100   :  { %5445 = vmatpush1.bf16.msra.mxu1 %v7825_v36  ;;  %v7909_v36 = vld [vmem:[#allocation2 + $0x448] ss:$16 sps:$4 sm:$0xff]  }
 0x101   :  { %5015 = vmatpush1.bf16.msra.mxu0 %v7822_v35  ;;  %5446 = vmatprep.subr.bf16.mxu1 %v7833_v37  ;;  %v7906_v35 = vld [vmem:[#allocation2 + $0x840] ss:$16 sps:$4 sm:$0xff]  }
 0x102   :  { %5016 = vmatprep.subr.bf16.mxu0 %v7830_v55  ;;  %v7914_v55 = vld [vmem:[#allocation2 + $0x864] ss:$16 sps:$4 sm:$0xff]   ;;  %v7912_v37 = vld [vmem:[#allocation2 + $0x860] ss:$16 sps:$4 sm:$0xff]  }
 0x104   :  { %5447 = vmatpush1.bf16.msra.mxu1 %v7831_v40  ;;  %v7920_v40 = vld [vmem:[#allocation2 + $0x884] ss:$16 sps:$4 sm:$0xff]  }
 0x105   :  { %5017 = vmatpush1.bf16.msra.mxu0 %v7828_v39  ;;  %5448 = vmatprep.subr.bf16.mxu1 %v7839_v42  ;;  %v7915_v39 = vld [vmem:[#allocation2 + $0x468] ss:$16 sps:$4 sm:$0xff]   ;;  %v7918_v42 = vld [vmem:[#allocation2 + $0x880] ss:$16 sps:$4 sm:$0xff]  }
 0x106   :  { %5018 = vmatprep.subr.bf16.mxu0 %v7836_v41  ;;  %v7923_v41 = vld [vmem:[#allocation2 + $0x48c] ss:$16 sps:$4 sm:$0xff]  }
 0x108   :  { %5449 = vmatpush1.bf16.msra.mxu1 %v7837_v44  ;;  %v7929_v44 = vld [vmem:[#allocation2 + $0x4ac] ss:$16 sps:$4 sm:$0xff]  }
 0x109   :  { %5019 = vmatpush1.bf16.msra.mxu0 %v7834_v43  ;;  %5450 = vmatprep.subr.bf16.mxu1 %v7845_v46  ;;  %v7926_v43 = vld [vmem:[#allocation2 + $0x8a4] ss:$16 sps:$4 sm:$0xff]   ;;  %v7927_v46 = vld [vmem:[#allocation2 + $0x4a8] ss:$16 sps:$4 sm:$0xff]  }
 0x10a   :  { %5020 = vmatprep.subr.bf16.mxu0 %v7842_v45  ;;  %v7924_v45 = vld [vmem:[#allocation2 + $0x8a0] ss:$16 sps:$4 sm:$0xff]  }
 0x10c   :  { %5451 = vmatpush1.bf16.msra.mxu1 %v7843_v48  ;;  %v7935_v48 = vld [vmem:[#allocation2 + $0x4cc] ss:$16 sps:$4 sm:$0xff]  }
 0x10d   :  { %5021 = vmatpush1.bf16.msra.mxu0 %v7840_v47  ;;  %5452 = vmatprep.subr.bf16.mxu1 %v7851_v50  ;;  %v7932_v47 = vld [vmem:[#allocation2 + $0x8c4] ss:$16 sps:$4 sm:$0xff]   ;;  %v7933_v50 = vld [vmem:[#allocation2 + $0x4c8] ss:$16 sps:$4 sm:$0xff]  }
 0x10e   :  { %5022 = vmatprep.subr.bf16.mxu0 %v7848_v49  ;;  %v7930_v49 = vld [vmem:[#allocation2 + $0x8c0] ss:$16 sps:$4 sm:$0xff]  }
 0x110   :  { %5453 = vmatpush1.bf16.msra.mxu1 %v7849_v52  ;;  %v7941_v52 = vld [vmem:[#allocation2 + $0x4ec] ss:$16 sps:$4 sm:$0xff]  }
 0x111   :  { %5023 = vmatpush1.bf16.msra.mxu0 %v7846_v51  ;;  %5454 = vmatprep.subr.bf16.mxu1 %v7857_v54  ;;  %v7938_v51 = vld [vmem:[#allocation2 + $0x8e4] ss:$16 sps:$4 sm:$0xff]   ;;  %v7939_v54 = vld [vmem:[#allocation2 + $0x4e8] ss:$16 sps:$4 sm:$0xff]  }
 0x112   :  { %5024 = vmatprep.subr.bf16.mxu0 %v7854_v53  ;;  %v7936_v53 = vld [vmem:[#allocation2 + $0x8e0] ss:$16 sps:$4 sm:$0xff]  }
 0x114   :  { %5455 = vmatpush1.bf16.msra.mxu1 %v7855_v57  ;;  %v7947_v57 = vld [vmem:[#allocation2 + $0x50c] ss:$16 sps:$4 sm:$0xff]  }
 0x115   :  { %5025 = vmatpush1.bf16.msra.mxu0 %v7852_v56  ;;  %5456 = vmatprep.subr.bf16.mxu1 %v7863_v59  ;;  %v7944_v56 = vld [vmem:[#allocation2 + $0x904] ss:$16 sps:$4 sm:$0xff]   ;;  %v7945_v59 = vld [vmem:[#allocation2 + $0x508] ss:$16 sps:$4 sm:$0xff]  }
 0x116   :  { %5026 = vmatprep.subr.bf16.mxu0 %v7860_v58  ;;  %v7942_v58 = vld [vmem:[#allocation2 + $0x900] ss:$16 sps:$4 sm:$0xff]  }
 0x118   :  { %5457 = vmatpush1.bf16.msra.mxu1 %v7861_v61  ;;  %v7953_v61 = vld [vmem:[#allocation2 + $0x52c] ss:$16 sps:$4 sm:$0xff]  }
 0x119   :  { %5027 = vmatpush1.bf16.msra.mxu0 %v7858_v60  ;;  %5458 = vmatprep.subr.bf16.mxu1 %v7869_v63  ;;  %v7950_v60 = vld [vmem:[#allocation2 + $0x924] ss:$16 sps:$4 sm:$0xff]   ;;  %v7951_v63 = vld [vmem:[#allocation2 + $0x528] ss:$16 sps:$4 sm:$0xff]  }
 0x11a   :  { %5028 = vmatprep.subr.bf16.mxu0 %v7866_v62  ;;  %v7948_v62 = vld [vmem:[#allocation2 + $0x920] ss:$16 sps:$4 sm:$0xff]  }
 0x11c   :  { %5459 = vmatpush1.bf16.msra.mxu1 %v7867_v1  ;;  %v7959_v1 = vld [vmem:[#allocation2 + $0x54c] ss:$16 sps:$4 sm:$0xff]  }
 0x11d   :  { %5029 = vmatpush1.bf16.msra.mxu0 %v7864_v0  ;;  %5460 = vmatprep.subr.bf16.mxu1 %v7875_v3  ;;  %v7956_v0 = vld [vmem:[#allocation2 + $0x944] ss:$16 sps:$4 sm:$0xff]   ;;  %v7957_v3 = vld [vmem:[#allocation2 + $0x548] ss:$16 sps:$4 sm:$0xff]  }
 0x11e   :  { %5030 = vmatprep.subr.bf16.mxu0 %v7872_v2  ;;  %v7954_v2 = vld [vmem:[#allocation2 + $0x940] ss:$16 sps:$4 sm:$0xff]  }
 0x120   :  { %5461 = vmatpush1.bf16.msra.mxu1 %v7873_v5  ;;  %v7965_v5 = vld [vmem:[#allocation2 + $0x56c] ss:$16 sps:$4 sm:$0xff]  }
 0x121   :  { %5031 = vmatpush1.bf16.msra.mxu0 %v7870_v4  ;;  %5462 = vmatprep.subr.bf16.mxu1 %v7881_v7  ;;  %v7962_v4 = vld [vmem:[#allocation2 + $0x964] ss:$16 sps:$4 sm:$0xff]   ;;  %v7963_v7 = vld [vmem:[#allocation2 + $0x568] ss:$16 sps:$4 sm:$0xff]  }
 0x122   :  { %5032 = vmatprep.subr.bf16.mxu0 %v7878_v6  ;;  %v7960_v6 = vld [vmem:[#allocation2 + $0x960] ss:$16 sps:$4 sm:$0xff]  }
 0x124   :  { %5463 = vmatpush1.bf16.msra.mxu1 %v7879_v11  ;;  %v7971_v11 = vld [vmem:[#allocation2 + $0x58c] ss:$16 sps:$4 sm:$0xff]  }
 0x125   :  { %5033 = vmatpush1.bf16.msra.mxu0 %v7876_v10  ;;  %5464 = vmatprep.subr.bf16.mxu1 %v7887_v13  ;;  %v7968_v10 = vld [vmem:[#allocation2 + $0x984] ss:$16 sps:$4 sm:$0xff]   ;;  %v7969_v13 = vld [vmem:[#allocation2 + $0x588] ss:$16 sps:$4 sm:$0xff]  }
 0x126   :  { %5034 = vmatprep.subr.bf16.mxu0 %v7884_v12  ;;  %v7966_v12 = vld [vmem:[#allocation2 + $0x980] ss:$16 sps:$4 sm:$0xff]  }
 0x128   :  { %5465 = vmatpush1.bf16.msra.mxu1 %v7885_v15  ;;  %v7977_v15 = vld [vmem:[#allocation2 + $0x5ac] ss:$16 sps:$4 sm:$0xff]  }
 0x129   :  { %5035 = vmatpush1.bf16.msra.mxu0 %v7882_v14  ;;  %5466 = vmatprep.subr.bf16.mxu1 %v7893_v18  ;;  %v7974_v14 = vld [vmem:[#allocation2 + $0x9a4] ss:$16 sps:$4 sm:$0xff]   ;;  %v7975_v18 = vld [vmem:[#allocation2 + $0x5a8] ss:$16 sps:$4 sm:$0xff]  }
 0x12a   :  { %5036 = vmatprep.subr.bf16.mxu0 %v7890_v17  ;;  %v7972_v17 = vld [vmem:[#allocation2 + $0x9a0] ss:$16 sps:$4 sm:$0xff]  }
 0x12c   :  { %5467 = vmatpush1.bf16.msra.mxu1 %v7891_v20  ;;  %v7983_v20 = vld [vmem:[#allocation2 + $0x5cc] ss:$16 sps:$4 sm:$0xff]  }
 0x12d   :  { %5037 = vmatpush1.bf16.msra.mxu0 %v7888_v19  ;;  %5479 = vmatprep.subr.bf16.mxu1 %v7899_v24  ;;  %v7980_v19 = vld [vmem:[#allocation2 + $0x9c4] ss:$16 sps:$4 sm:$0xff]   ;;  %v7981_v24 = vld [vmem:[#allocation2 + $0x5c8] ss:$16 sps:$4 sm:$0xff]  }
 0x12e   :  { %5049 = vmatprep.subr.bf16.mxu0 %v7896_v23  ;;  %v7978_v23 = vld [vmem:[#allocation2 + $0x9c0] ss:$16 sps:$4 sm:$0xff]  }
 0x12f   :  { %5469 = vmatmul.mubr.bf16.vlgmr.msra.gmra.mrb[4].mxu1 %v9151_v9  ;;  %v7917_v9 = vld [vmem:[#allocation2 + $0x46c] ss:$16 sps:$4 sm:$0xff]  }
 0x130   :  { %5039 = vmatmul.mubr.bf16.vlgmr.msra.gmra.mrb[0].mxu0 %v9194_v27  ;;  %5480 = vmatpush1.bf16.msra.mxu1 %v7897_v8  ;;  %v7989_v8 = vld [vmem:[#allocation2 + $0x5ec] ss:$16 sps:$4 sm:$0xff]  }
 0x131   :  { %5050 = vmatpush1.bf16.msra.mxu0 %v7894_v26  ;;  %5481 = vmatprep.subr.bf16.mxu1 %v7905_v31  ;;  %v7986_v26 = vld [vmem:[#allocation2 + $0x9e4] ss:$16 sps:$4 sm:$0xff]   ;;  %v7987_v31 = vld [vmem:[#allocation2 + $0x5e8] ss:$16 sps:$4 sm:$0xff]  }
 0x132   :  { %5051 = vmatprep.subr.bf16.mxu0 %v7902_v30  ;;  %5081 = vmatprep.mubr.bf16.mxu0 %v9208_v21  ;;  %v7984_v30 = vld [vmem:[#allocation2 + $0x9e0] ss:$16 sps:$4 sm:$0xff]  }
 0x133   :  { %5511 = vmatprep.mubr.bf16.mxu1 %v9167_v38  ;;  %v7921_v38 = vld [vmem:[#allocation2 + $0x488] ss:$16 sps:$4 sm:$0xff]  }
 0x134   :  { %5482 = vmatpush1.bf16.msra.mxu1 %v7903_v32  ;;  %v7995_v32 = vld [vmem:[#allocation2 + $0x60c] ss:$16 sps:$4 sm:$0xff]  }
 0x135   :  { %5052 = vmatpush1.bf16.msra.mxu0 %v7900_v22  ;;  %5483 = vmatprep.subr.bf16.mxu1 %v7911_v34  ;;  %v7992_v22 = vld [vmem:[#allocation2 + $0xa04] ss:$16 sps:$4 sm:$0xff]   ;;  %v9217_v34 = vld [vmem:[%s9416_s0 + $0x28] sm:$0xff] }
 0x136   :  { %5053 = vmatprep.subr.bf16.mxu0 %v7908_v33  ;;  %v7990_v33 = vld [vmem:[#allocation2 + $0xa00] ss:$16 sps:$4 sm:$0xff]  }
 0x138   :  { %5484 = vmatpush1.bf16.msra.mxu1 %v7909_v36  ;;  %v9226_v36 = vld [vmem:[%s9416_s0 + $0x88] sm:$0xff] }
 0x139   :  { %5054 = vmatpush1.bf16.msra.mxu0 %v7906_v35  ;;  %5485 = vmatprep.subr.bf16.mxu1 %v7917_v9  ;;  %v9221_v35 = vcombine.low %v9199_v28, %v9204_v29  ;;  %v7998_v9 = vld [vmem:[#allocation2 + $0xa24] ss:$16 sps:$4 sm:$0xff]   ;;  %v7996_v28 = vld [vmem:[#allocation2 + $0xa20] ss:$16 sps:$4 sm:$0xff]   ;;  %v7999_v29 = vld [vmem:[#allocation2 + $0x628] ss:$16 sps:$4 sm:$0xff]  }
 0x13a   :  { %5055 = vmatprep.subr.bf16.mxu0 %v7914_v55  ;;  %v7993_v55 = vld [vmem:[#allocation2 + $0x608] ss:$16 sps:$4 sm:$0xff]  }
 0x13c   :  { %5486 = vmatpush1.bf16.msra.mxu1 %v7915_v39  ;;  %v9230_v39 = vcombine.high %v9217_v34, %v9226_v36 }
 0x13d   :  { %5056 = vmatpush1.bf16.msra.mxu0 %v7912_v37  ;;  %5487 = vmatprep.subr.bf16.mxu1 %v7923_v41  ;;  %v8001_v37 = vld [vmem:[#allocation2 + $0x62c] ss:$16 sps:$4 sm:$0xff]  }
 0x13e   :  { %5057 = vmatprep.subr.bf16.mxu0 %v7920_v40  ;;  %v8004_v40 = vld [vmem:[#allocation2 + $0xa44] ss:$16 sps:$4 sm:$0xff]   ;;  %v8007_v41 = vld [vmem:[#allocation2 + $0x64c] ss:$16 sps:$4 sm:$0xff]  }
 0x140   :  { %5488 = vmatpush1.bf16.msra.mxu1 %v7921_v38  ;;  %v8005_v38 = vld [vmem:[#allocation2 + $0x648] ss:$16 sps:$4 sm:$0xff]  }
 0x141   :  { %5058 = vmatpush1.bf16.msra.mxu0 %v7918_v42  ;;  %5489 = vmatprep.subr.bf16.mxu1 %v7929_v44  ;;  %v8002_v42 = vld [vmem:[#allocation2 + $0xa40] ss:$16 sps:$4 sm:$0xff]  }
 0x142   :  { %5059 = vmatprep.subr.bf16.mxu0 %v7926_v43  ;;  %v8010_v43 = vld [vmem:[#allocation2 + $0xa64] ss:$16 sps:$4 sm:$0xff]   ;;  %v8008_v44 = vld [vmem:[#allocation2 + $0xa60] ss:$16 sps:$4 sm:$0xff]  }
 0x144   :  { %5490 = vmatpush1.bf16.msra.mxu1 %v7927_v46  ;;  %v8016_v46 = vld [vmem:[#allocation2 + $0xa84] ss:$16 sps:$4 sm:$0xff]  }
 0x145   :  { %5060 = vmatpush1.bf16.msra.mxu0 %v7924_v45  ;;  %5491 = vmatprep.subr.bf16.mxu1 %v7935_v48  ;;  %v8011_v45 = vld [vmem:[#allocation2 + $0x668] ss:$16 sps:$4 sm:$0xff]   ;;  %v8014_v48 = vld [vmem:[#allocation2 + $0xa80] ss:$16 sps:$4 sm:$0xff]  }
 0x146   :  { %5061 = vmatprep.subr.bf16.mxu0 %v7932_v47  ;;  %v8019_v47 = vld [vmem:[#allocation2 + $0x68c] ss:$16 sps:$4 sm:$0xff]  }
 0x148   :  { %5492 = vmatpush1.bf16.msra.mxu1 %v7933_v50  ;;  %v8025_v50 = vld [vmem:[#allocation2 + $0x6ac] ss:$16 sps:$4 sm:$0xff]  }
 0x149   :  { %5062 = vmatpush1.bf16.msra.mxu0 %v7930_v49  ;;  %5493 = vmatprep.subr.bf16.mxu1 %v7941_v52  ;;  %v8022_v49 = vld [vmem:[#allocation2 + $0xaa4] ss:$16 sps:$4 sm:$0xff]   ;;  %v8023_v52 = vld [vmem:[#allocation2 + $0x6a8] ss:$16 sps:$4 sm:$0xff]  }
 0x14a   :  { %5063 = vmatprep.subr.bf16.mxu0 %v7938_v51  ;;  %v8020_v51 = vld [vmem:[#allocation2 + $0xaa0] ss:$16 sps:$4 sm:$0xff]  }
 0x14c   :  { %5494 = vmatpush1.bf16.msra.mxu1 %v7939_v54  ;;  %v8031_v54 = vld [vmem:[#allocation2 + $0x6cc] ss:$16 sps:$4 sm:$0xff]  }
 0x14d   :  { %5064 = vmatpush1.bf16.msra.mxu0 %v7936_v53  ;;  %5495 = vmatprep.subr.bf16.mxu1 %v7947_v57  ;;  %v8028_v53 = vld [vmem:[#allocation2 + $0xac4] ss:$16 sps:$4 sm:$0xff]  }
 0x14e   :  { %5065 = vmatprep.subr.bf16.mxu0 %v7944_v56 }
 0x150   :  { %5496 = vmatpush1.bf16.msra.mxu1 %v7945_v59  ;;  %v8026_v59 = vld [vmem:[#allocation2 + $0xac0] ss:$16 sps:$4 sm:$0xff]  }
 0x151   :  { %5066 = vmatpush1.bf16.msra.mxu0 %v7942_v58  ;;  %5497 = vmatprep.subr.bf16.mxu1 %v7953_v61 }
 0x152   :  { %5067 = vmatprep.subr.bf16.mxu0 %v7950_v60  ;;  %v8029_v60 = vld [vmem:[#allocation2 + $0x6c8] ss:$16 sps:$4 sm:$0xff]  }
 0x154   :  { %5498 = vmatpush1.bf16.msra.mxu1 %v7951_v63  ;;  %v8037_v63 = vld [vmem:[#allocation2 + $0x6ec] ss:$16 sps:$4 sm:$0xff]  }
 0x155   :  { %5068 = vmatpush1.bf16.msra.mxu0 %v7948_v62  ;;  %5499 = vmatprep.subr.bf16.mxu1 %v7959_v1  ;;  %v8034_v62 = vld [vmem:[#allocation2 + $0xae4] ss:$16 sps:$4 sm:$0xff]   ;;  %v8035_v1 = vld [vmem:[#allocation2 + $0x6e8] ss:$16 sps:$4 sm:$0xff]  }
 0x156   :  { %5069 = vmatprep.subr.bf16.mxu0 %v7956_v0  ;;  %v8032_v0 = vld [vmem:[#allocation2 + $0xae0] ss:$16 sps:$4 sm:$0xff]  }
 0x158   :  { %5500 = vmatpush1.bf16.msra.mxu1 %v7957_v3  ;;  %v8043_v3 = vld [vmem:[#allocation2 + $0x70c] ss:$16 sps:$4 sm:$0xff]  }
 0x159   :  { %5070 = vmatpush1.bf16.msra.mxu0 %v7954_v2  ;;  %5501 = vmatprep.subr.bf16.mxu1 %v7965_v5  ;;  %v8040_v2 = vld [vmem:[#allocation2 + $0xb04] ss:$16 sps:$4 sm:$0xff]   ;;  %v8041_v5 = vld [vmem:[#allocation2 + $0x708] ss:$16 sps:$4 sm:$0xff]  }
 0x15a   :  { %5071 = vmatprep.subr.bf16.mxu0 %v7962_v4  ;;  %v8038_v4 = vld [vmem:[#allocation2 + $0xb00] ss:$16 sps:$4 sm:$0xff]  }
 0x15c   :  { %5502 = vmatpush1.bf16.msra.mxu1 %v7963_v7  ;;  %v8049_v7 = vld [vmem:[#allocation2 + $0x72c] ss:$16 sps:$4 sm:$0xff]  }
 0x15d   :  { %5072 = vmatpush1.bf16.msra.mxu0 %v7960_v6  ;;  %5503 = vmatprep.subr.bf16.mxu1 %v7971_v11  ;;  %v8046_v6 = vld [vmem:[#allocation2 + $0xb24] ss:$16 sps:$4 sm:$0xff]   ;;  %v8047_v11 = vld [vmem:[#allocation2 + $0x728] ss:$16 sps:$4 sm:$0xff]  }
 0x15e   :  { %5073 = vmatprep.subr.bf16.mxu0 %v7968_v10  ;;  %v8044_v10 = vld [vmem:[#allocation2 + $0xb20] ss:$16 sps:$4 sm:$0xff]  }
 0x160   :  { %5504 = vmatpush1.bf16.msra.mxu1 %v7969_v13  ;;  %v8055_v13 = vld [vmem:[#allocation2 + $0x74c] ss:$16 sps:$4 sm:$0xff]  }
 0x161   :  { %5074 = vmatpush1.bf16.msra.mxu0 %v7966_v12  ;;  %5505 = vmatprep.subr.bf16.mxu1 %v7977_v15  ;;  %v8052_v12 = vld [vmem:[#allocation2 + $0xb44] ss:$16 sps:$4 sm:$0xff]   ;;  %v8053_v15 = vld [vmem:[#allocation2 + $0x748] ss:$16 sps:$4 sm:$0xff]  }
 0x162   :  { %5075 = vmatprep.subr.bf16.mxu0 %v7974_v14  ;;  %v8050_v14 = vld [vmem:[#allocation2 + $0xb40] ss:$16 sps:$4 sm:$0xff]  }
 0x164   :  { %5506 = vmatpush1.bf16.msra.mxu1 %v7975_v18  ;;  %v8061_v18 = vld [vmem:[#allocation2 + $0x76c] ss:$16 sps:$4 sm:$0xff]  }
 0x165   :  { %5076 = vmatpush1.bf16.msra.mxu0 %v7972_v17  ;;  %5507 = vmatprep.subr.bf16.mxu1 %v7983_v20  ;;  %v8058_v17 = vld [vmem:[#allocation2 + $0xb64] ss:$16 sps:$4 sm:$0xff]   ;;  %v8059_v20 = vld [vmem:[#allocation2 + $0x768] ss:$16 sps:$4 sm:$0xff]  }
 0x166   :  { %5077 = vmatprep.subr.bf16.mxu0 %v7980_v19  ;;  %v8056_v19 = vld [vmem:[#allocation2 + $0xb60] ss:$16 sps:$4 sm:$0xff]  }
 0x168   :  { %5508 = vmatpush1.bf16.msra.mxu1 %v7981_v24  ;;  %v8067_v24 = vld [vmem:[#allocation2 + $0x78c] ss:$16 sps:$4 sm:$0xff]  }
 0x169   :  { %5078 = vmatpush1.bf16.msra.mxu0 %v7978_v23  ;;  %5509 = vmatprep.subr.bf16.mxu1 %v7989_v8  ;;  %v8064_v23 = vld [vmem:[#allocation2 + $0xb84] ss:$16 sps:$4 sm:$0xff]   ;;  %v8065_v8 = vld [vmem:[#allocation2 + $0x788] ss:$16 sps:$4 sm:$0xff]  }
 0x16a   :  { %5079 = vmatprep.subr.bf16.mxu0 %v7986_v26  ;;  %v8062_v26 = vld [vmem:[#allocation2 + $0xb80] ss:$16 sps:$4 sm:$0xff]  }
 0x16c   :  { %5510 = vmatpush1.bf16.msra.mxu1 %v7987_v31  ;;  %v8073_v31 = vld [vmem:[#allocation2 + $0x7ac] ss:$16 sps:$4 sm:$0xff]  }
 0x16d   :  { %5080 = vmatpush1.bf16.msra.mxu0 %v7984_v30  ;;  %5522 = vmatprep.subr.bf16.mxu1 %v7995_v32  ;;  %v8070_v30 = vld [vmem:[#allocation2 + $0xba4] ss:$16 sps:$4 sm:$0xff]   ;;  %v8071_v32 = vld [vmem:[#allocation2 + $0x7a8] ss:$16 sps:$4 sm:$0xff]  }
 0x16e   :  { %5092 = vmatprep.subr.bf16.mxu0 %v7992_v22  ;;  %v8068_v22 = vld [vmem:[#allocation2 + $0xba0] ss:$16 sps:$4 sm:$0xff]  }
 0x16f   :  { %5512 = vmatmul.mubr.bf16.vlgmr.msra.gmra.mrb[4].mxu1 %v9172_v16  ;;  %v8013_v16 = vld [vmem:[#allocation2 + $0x66c] ss:$16 sps:$4 sm:$0xff]  }
 0x170   :  { %5082 = vmatmul.mubr.bf16.vlgmr.msra.gmra.mrb[0].mxu0 %v9221_v35  ;;  %5523 = vmatpush1.bf16.msra.mxu1 %v7993_v55  ;;  %v8079_v55 = vld [vmem:[#allocation2 + $0x7cc] ss:$16 sps:$4 sm:$0xff]  }
 0x171   :  { %5093 = vmatpush1.bf16.msra.mxu0 %v7990_v33  ;;  %5524 = vmatprep.subr.bf16.mxu1 %v8001_v37  ;;  %v8076_v33 = vld [vmem:[#allocation2 + $0xbc4] ss:$16 sps:$4 sm:$0xff]   ;;  %v8077_v37 = vld [vmem:[#allocation2 + $0x7c8] ss:$16 sps:$4 sm:$0xff]  }
 0x172   :  { %5094 = vmatprep.subr.bf16.mxu0 %v7998_v9  ;;  %5124 = vmatprep.mubr.bf16.mxu0 %v9230_v39  ;;  %v8074_v9 = vld [vmem:[#allocation2 + $0xbc0] ss:$16 sps:$4 sm:$0xff]  }
 0x173   :  { %5554 = vmatprep.mubr.bf16.mxu1 %v9188_v25  ;;  %v8017_v25 = vld [vmem:[#allocation2 + $0x688] ss:$16 sps:$4 sm:$0xff]  }
 0x174   :  { %5525 = vmatpush1.bf16.msra.mxu1 %v7999_v29  ;;  %v8085_v29 = vld [vmem:[#allocation2 + $0x7ec] ss:$16 sps:$4 sm:$0xff]  }
 0x175   :  { %5095 = vmatpush1.bf16.msra.mxu0 %v7996_v28  ;;  %5526 = vmatprep.subr.bf16.mxu1 %v8007_v41  ;;  %v8082_v28 = vld [vmem:[#allocation2 + $0xbe4] ss:$16 sps:$4 sm:$0xff]   ;;  %v8083_v41 = vld [vmem:[#allocation2 + $0x7e8] ss:$16 sps:$4 sm:$0xff]  }
 0x176   :  { %5096 = vmatprep.subr.bf16.mxu0 %v8004_v40  ;;  %v8080_v40 = vld [vmem:[#allocation2 + $0xbe0] ss:$16 sps:$4 sm:$0xff]  }
 0x178   :  { %5527 = vmatpush1.bf16.msra.mxu1 %v8005_v38  ;;  %v8091_v38 = vld [vmem:[#allocation2 + $0x80c] ss:$16 sps:$4 sm:$0xff]  }
 0x179   :  { %5097 = vmatpush1.bf16.msra.mxu0 %v8002_v42  ;;  %5528 = vmatprep.subr.bf16.mxu1 %v8013_v16  ;;  %v8088_v42 = vld [vmem:[#allocation2 + $0xc04] ss:$16 sps:$4 sm:$0xff]  }
 0x17a   :  { %5098 = vmatprep.subr.bf16.mxu0 %v8010_v43  ;;  %v9247_v43 = vld [vmem:[%s9416_s0 + $0x30] sm:$0xff] }
 0x17b   :  { %v9252_v16 = vld [vmem:[%s9416_s0 + $0x90] sm:$0xff] }
 0x17c   :  { %5529 = vmatpush1.bf16.msra.mxu1 %v8011_v45  ;;  %v8086_v45 = vld [vmem:[#allocation2 + $0xc00] ss:$16 sps:$4 sm:$0xff]  }
 0x17d   :  { %5099 = vmatpush1.bf16.msra.mxu0 %v8008_v44  ;;  %5530 = vmatprep.subr.bf16.mxu1 %v8019_v47  ;;  %v9256_v44 = vcombine.low %v9217_v34, %v9226_v36  ;;  %v8094_v47 = vld [vmem:[#allocation2 + $0xc24] ss:$16 sps:$4 sm:$0xff]   ;;  %v8092_v34 = vld [vmem:[#allocation2 + $0xc20] ss:$16 sps:$4 sm:$0xff]   ;;  %v8095_v36 = vld [vmem:[#allocation2 + $0x828] ss:$16 sps:$4 sm:$0xff]  }
 0x17e   :  { %5100 = vmatprep.subr.bf16.mxu0 %v8016_v46  ;;  %v8089_v46 = vld [vmem:[#allocation2 + $0x808] ss:$16 sps:$4 sm:$0xff]  }
 0x180   :  { %5531 = vmatpush1.bf16.msra.mxu1 %v8017_v25  ;;  %v9260_v25 = vcombine.high %v9247_v43, %v9252_v16 }
 0x181   :  { %5101 = vmatpush1.bf16.msra.mxu0 %v8014_v48  ;;  %5532 = vmatprep.subr.bf16.mxu1 %v8025_v50  ;;  %v8097_v48 = vld [vmem:[#allocation2 + $0x82c] ss:$16 sps:$4 sm:$0xff]  }
 0x182   :  { %5102 = vmatprep.subr.bf16.mxu0 %v8022_v49  ;;  %v9236_v56 = vpop.f32.mrb[0].mxu1  ;;  %v8100_v49 = vld [vmem:[#allocation2 + $0xc44] ss:$16 sps:$4 sm:$0xff]   ;;  %v8103_v50 = vld [vmem:[#allocation2 + $0x84c] ss:$16 sps:$4 sm:$0xff]  }
 0x183   :  { %v9238_v57 = vpop.f32.mrb[1].mxu1 }
 0x184   :  { %v9240_v58 = vpop.f32.mrb[2].mxu1  ;;  %5533 = vmatpush1.bf16.msra.mxu1 %v8023_v52  ;;  %v8101_v52 = vld [vmem:[#allocation2 + $0x848] ss:$16 sps:$4 sm:$0xff]  }
 0x185   :  { %5103 = vmatpush1.bf16.msra.mxu0 %v8020_v51  ;;  %v9242_v61 = vpop.f32.mrb[3].mxu1  ;;  %5534 = vmatprep.subr.bf16.mxu1 %v8031_v54  ;;  %v8098_v51 = vld [vmem:[#allocation2 + $0xc40] ss:$16 sps:$4 sm:$0xff]  }
 0x186   :  { %5104 = vmatprep.subr.bf16.mxu0 %v8028_v53  ;;  %v8106_v53 = vld [vmem:[#allocation2 + $0xc64] ss:$16 sps:$4 sm:$0xff]   ;;  %v8104_v54 = vld [vmem:[#allocation2 + $0xc60] ss:$16 sps:$4 sm:$0xff]  }
 0x188   :  { %5535 = vmatpush1.bf16.msra.mxu1 %v8029_v60  ;;  %v8112_v60 = vld [vmem:[#allocation2 + $0xc84] ss:$16 sps:$4 sm:$0xff]  }
 0x189   :  { %5105 = vmatpush1.bf16.msra.mxu0 %v8026_v59  ;;  %5536 = vmatprep.subr.bf16.mxu1 %v8037_v63  ;;  %v8107_v59 = vld [vmem:[#allocation2 + $0x868] ss:$16 sps:$4 sm:$0xff]   ;;  %v8110_v63 = vld [vmem:[#allocation2 + $0xc80] ss:$16 sps:$4 sm:$0xff]  }
 0x18a   :  { %5106 = vmatprep.subr.bf16.mxu0 %v8034_v62  ;;  %v8115_v62 = vld [vmem:[#allocation2 + $0x88c] ss:$16 sps:$4 sm:$0xff]  }
 0x18c   :  { %5537 = vmatpush1.bf16.msra.mxu1 %v8035_v1  ;;  %v8121_v1 = vld [vmem:[#allocation2 + $0x8ac] ss:$16 sps:$4 sm:$0xff]  }
 0x18d   :  { %5107 = vmatpush1.bf16.msra.mxu0 %v8032_v0  ;;  %5538 = vmatprep.subr.bf16.mxu1 %v8043_v3  ;;  %v8118_v0 = vld [vmem:[#allocation2 + $0xca4] ss:$16 sps:$4 sm:$0xff]   ;;  %v8119_v3 = vld [vmem:[#allocation2 + $0x8a8] ss:$16 sps:$4 sm:$0xff]  }
 0x18e   :  { %5108 = vmatprep.subr.bf16.mxu0 %v8040_v2  ;;  %v8116_v2 = vld [vmem:[#allocation2 + $0xca0] ss:$16 sps:$4 sm:$0xff]  }
 0x190   :  { %5539 = vmatpush1.bf16.msra.mxu1 %v8041_v5  ;;  %v8127_v5 = vld [vmem:[#allocation2 + $0x8cc] ss:$16 sps:$4 sm:$0xff]  }
 0x191   :  { %5109 = vmatpush1.bf16.msra.mxu0 %v8038_v4  ;;  %5540 = vmatprep.subr.bf16.mxu1 %v8049_v7  ;;  %v8124_v4 = vld [vmem:[#allocation2 + $0xcc4] ss:$16 sps:$4 sm:$0xff]   ;;  %v8125_v7 = vld [vmem:[#allocation2 + $0x8c8] ss:$16 sps:$4 sm:$0xff]  }
 0x192   :  { %5110 = vmatprep.subr.bf16.mxu0 %v8046_v6  ;;  %v8122_v6 = vld [vmem:[#allocation2 + $0xcc0] ss:$16 sps:$4 sm:$0xff]  }
 0x194   :  { %5541 = vmatpush1.bf16.msra.mxu1 %v8047_v11  ;;  %v8133_v11 = vld [vmem:[#allocation2 + $0x8ec] ss:$16 sps:$4 sm:$0xff]  }
 0x195   :  { %5111 = vmatpush1.bf16.msra.mxu0 %v8044_v10  ;;  %5542 = vmatprep.subr.bf16.mxu1 %v8055_v13  ;;  %v8130_v10 = vld [vmem:[#allocation2 + $0xce4] ss:$16 sps:$4 sm:$0xff]   ;;  %v8131_v13 = vld [vmem:[#allocation2 + $0x8e8] ss:$16 sps:$4 sm:$0xff]  }
 0x196   :  { %5112 = vmatprep.subr.bf16.mxu0 %v8052_v12  ;;  %v8128_v12 = vld [vmem:[#allocation2 + $0xce0] ss:$16 sps:$4 sm:$0xff]  }
 0x198   :  { %5543 = vmatpush1.bf16.msra.mxu1 %v8053_v15  ;;  %v8139_v15 = vld [vmem:[#allocation2 + $0x90c] ss:$16 sps:$4 sm:$0xff]  }
 0x199   :  { %5113 = vmatpush1.bf16.msra.mxu0 %v8050_v14  ;;  %5544 = vmatprep.subr.bf16.mxu1 %v8061_v18  ;;  %v8136_v14 = vld [vmem:[#allocation2 + $0xd04] ss:$16 sps:$4 sm:$0xff]   ;;  %v8137_v18 = vld [vmem:[#allocation2 + $0x908] ss:$16 sps:$4 sm:$0xff]  }
 0x19a   :  { %5114 = vmatprep.subr.bf16.mxu0 %v8058_v17  ;;  %v8134_v17 = vld [vmem:[#allocation2 + $0xd00] ss:$16 sps:$4 sm:$0xff]  }
 0x19c   :  { %5545 = vmatpush1.bf16.msra.mxu1 %v8059_v20  ;;  %v8145_v20 = vld [vmem:[#allocation2 + $0x92c] ss:$16 sps:$4 sm:$0xff]  }
 0x19d   :  { %5115 = vmatpush1.bf16.msra.mxu0 %v8056_v19  ;;  %5546 = vmatprep.subr.bf16.mxu1 %v8067_v24  ;;  %v8142_v19 = vld [vmem:[#allocation2 + $0xd24] ss:$16 sps:$4 sm:$0xff]   ;;  %v8143_v24 = vld [vmem:[#allocation2 + $0x928] ss:$16 sps:$4 sm:$0xff]  }
 0x19e   :  { %5116 = vmatprep.subr.bf16.mxu0 %v8064_v23  ;;  %v8140_v23 = vld [vmem:[#allocation2 + $0xd20] ss:$16 sps:$4 sm:$0xff]  }
 0x1a0   :  { %5547 = vmatpush1.bf16.msra.mxu1 %v8065_v8  ;;  %v8151_v8 = vld [vmem:[#allocation2 + $0x94c] ss:$16 sps:$4 sm:$0xff]  }
 0x1a1   :  { %5117 = vmatpush1.bf16.msra.mxu0 %v8062_v26  ;;  %5548 = vmatprep.subr.bf16.mxu1 %v8073_v31  ;;  %v8148_v26 = vld [vmem:[#allocation2 + $0xd44] ss:$16 sps:$4 sm:$0xff]   ;;  %v8149_v31 = vld [vmem:[#allocation2 + $0x948] ss:$16 sps:$4 sm:$0xff]  }
 0x1a2   :  { %5118 = vmatprep.subr.bf16.mxu0 %v8070_v30  ;;  %v8146_v30 = vld [vmem:[#allocation2 + $0xd40] ss:$16 sps:$4 sm:$0xff]  }
 0x1a4   :  { %5549 = vmatpush1.bf16.msra.mxu1 %v8071_v32  ;;  %v8157_v32 = vld [vmem:[#allocation2 + $0x96c] ss:$16 sps:$4 sm:$0xff]  }
 0x1a5   :  { %5119 = vmatpush1.bf16.msra.mxu0 %v8068_v22  ;;  %5550 = vmatprep.subr.bf16.mxu1 %v8079_v55  ;;  %v8154_v22 = vld [vmem:[#allocation2 + $0xd64] ss:$16 sps:$4 sm:$0xff]   ;;  %v8155_v55 = vld [vmem:[#allocation2 + $0x968] ss:$16 sps:$4 sm:$0xff]  }
 0x1a6   :  { %5120 = vmatprep.subr.bf16.mxu0 %v8076_v33  ;;  %v8152_v33 = vld [vmem:[#allocation2 + $0xd60] ss:$16 sps:$4 sm:$0xff]  }
 0x1a8   :  { %5551 = vmatpush1.bf16.msra.mxu1 %v8077_v37  ;;  %v8163_v37 = vld [vmem:[#allocation2 + $0x98c] ss:$16 sps:$4 sm:$0xff]  }
 0x1a9   :  { %5121 = vmatpush1.bf16.msra.mxu0 %v8074_v9  ;;  %5552 = vmatprep.subr.bf16.mxu1 %v8085_v29  ;;  %v8160_v9 = vld [vmem:[#allocation2 + $0xd84] ss:$16 sps:$4 sm:$0xff]   ;;  %v8161_v29 = vld [vmem:[#allocation2 + $0x988] ss:$16 sps:$4 sm:$0xff]  }
 0x1aa   :  { %5122 = vmatprep.subr.bf16.mxu0 %v8082_v28  ;;  %v8158_v28 = vld [vmem:[#allocation2 + $0xd80] ss:$16 sps:$4 sm:$0xff]  }
 0x1ac   :  { %5553 = vmatpush1.bf16.msra.mxu1 %v8083_v41  ;;  %v8169_v41 = vld [vmem:[#allocation2 + $0x9ac] ss:$16 sps:$4 sm:$0xff]  }
 0x1ad   :  { %5123 = vmatpush1.bf16.msra.mxu0 %v8080_v40  ;;  %5565 = vmatprep.subr.bf16.mxu1 %v8091_v38  ;;  %v8166_v40 = vld [vmem:[#allocation2 + $0xda4] ss:$16 sps:$4 sm:$0xff]   ;;  %v8167_v38 = vld [vmem:[#allocation2 + $0x9a8] ss:$16 sps:$4 sm:$0xff]  }
 0x1ae   :  { %5135 = vmatprep.subr.bf16.mxu0 %v8088_v42  ;;  %v8164_v42 = vld [vmem:[#allocation2 + $0xda0] ss:$16 sps:$4 sm:$0xff]  }
 0x1af   :  { %5555 = vmatmul.mubr.bf16.vlgmr.msra.gmra.mrb[4].mxu1 %v9194_v27  ;;  %v8109_v27 = vld [vmem:[#allocation2 + $0x86c] ss:$16 sps:$4 sm:$0xff]  }
 0x1b0   :  { %5125 = vmatmul.mubr.bf16.vlgmr.msra.gmra.mrb[0].mxu0 %v9256_v44  ;;  %5566 = vmatpush1.bf16.msra.mxu1 %v8089_v46  ;;  %v8175_v46 = vld [vmem:[#allocation2 + $0x9cc] ss:$16 sps:$4 sm:$0xff]  }
 0x1b1   :  { %5136 = vmatpush1.bf16.msra.mxu0 %v8086_v45  ;;  %5567 = vmatprep.subr.bf16.mxu1 %v8097_v48  ;;  %v8172_v45 = vld [vmem:[#allocation2 + $0xdc4] ss:$16 sps:$4 sm:$0xff]   ;;  %v8173_v48 = vld [vmem:[#allocation2 + $0x9c8] ss:$16 sps:$4 sm:$0xff]  }
 0x1b2   :  { %5137 = vmatprep.subr.bf16.mxu0 %v8094_v47  ;;  %5167 = vmatprep.mubr.bf16.mxu0 %v9260_v25  ;;  %v8170_v47 = vld [vmem:[#allocation2 + $0xdc0] ss:$16 sps:$4 sm:$0xff]  }
 0x1b3   :  { %5597 = vmatprep.mubr.bf16.mxu1 %v9208_v21  ;;  %v8113_v21 = vld [vmem:[#allocation2 + $0x888] ss:$16 sps:$4 sm:$0xff]  }
 0x1b4   :  { %5568 = vmatpush1.bf16.msra.mxu1 %v8095_v36  ;;  %v8181_v36 = vld [vmem:[#allocation2 + $0x9ec] ss:$16 sps:$4 sm:$0xff]  }
 0x1b5   :  { %5138 = vmatpush1.bf16.msra.mxu0 %v8092_v34  ;;  %5569 = vmatprep.subr.bf16.mxu1 %v8103_v50  ;;  %v8178_v34 = vld [vmem:[#allocation2 + $0xde4] ss:$16 sps:$4 sm:$0xff]   ;;  %v8179_v50 = vld [vmem:[#allocation2 + $0x9e8] ss:$16 sps:$4 sm:$0xff]  }
 0x1b6   :  { %5139 = vmatprep.subr.bf16.mxu0 %v8100_v49  ;;  %v8176_v49 = vld [vmem:[#allocation2 + $0xde0] ss:$16 sps:$4 sm:$0xff]  }
 0x1b8   :  { %5570 = vmatpush1.bf16.msra.mxu1 %v8101_v52  ;;  %v8187_v52 = vld [vmem:[#allocation2 + $0xa0c] ss:$16 sps:$4 sm:$0xff]  }
 0x1b9   :  { %5140 = vmatpush1.bf16.msra.mxu0 %v8098_v51  ;;  %5571 = vmatprep.subr.bf16.mxu1 %v8109_v27  ;;  %v8184_v51 = vld [vmem:[#allocation2 + $0xe04] ss:$16 sps:$4 sm:$0xff]   ;;  %v9274_v27 = vld [vmem:[%s9416_s0 + $0x98] sm:$0xff] }
 0x1ba   :  { %5141 = vmatprep.subr.bf16.mxu0 %v8106_v53  ;;  %v9269_v53 = vld [vmem:[%s9416_s0 + $0x38] sm:$0xff] }
 0x1bc   :  { %5572 = vmatpush1.bf16.msra.mxu1 %v8107_v59  ;;  %v8182_v59 = vld [vmem:[#allocation2 + $0xe00] ss:$16 sps:$4 sm:$0xff]  }
 0x1bd   :  { %5142 = vmatpush1.bf16.msra.mxu0 %v8104_v54  ;;  %5573 = vmatprep.subr.bf16.mxu1 %v8115_v62  ;;  %v9278_v54 = vcombine.low %v9247_v43, %v9252_v16  ;;  %v8190_v62 = vld [vmem:[#allocation2 + $0xe24] ss:$16 sps:$4 sm:$0xff]   ;;  %v8188_v43 = vld [vmem:[#allocation2 + $0xe20] ss:$16 sps:$4 sm:$0xff]   ;;  %v8191_v16 = vld [vmem:[#allocation2 + $0xa28] ss:$16 sps:$4 sm:$0xff]  }
 0x1be   :  { %5143 = vmatprep.subr.bf16.mxu0 %v8112_v60  ;;  %v8185_v60 = vld [vmem:[#allocation2 + $0xa08] ss:$16 sps:$4 sm:$0xff]  }
 0x1c0   :  { %5574 = vmatpush1.bf16.msra.mxu1 %v8113_v21  ;;  %v9282_v21 = vcombine.high %v9269_v53, %v9274_v27 }
 0x1c1   :  { %5144 = vmatpush1.bf16.msra.mxu0 %v8110_v63  ;;  %5575 = vmatprep.subr.bf16.mxu1 %v8121_v1  ;;  %v8193_v63 = vld [vmem:[#allocation2 + $0xa2c] ss:$16 sps:$4 sm:$0xff]  }
 0x1c2   :  { %5145 = vmatprep.subr.bf16.mxu0 %v8118_v0  ;;  %v8196_v0 = vld [vmem:[#allocation2 + $0xe44] ss:$16 sps:$4 sm:$0xff]   ;;  %v8199_v1 = vld [vmem:[#allocation2 + $0xa4c] ss:$16 sps:$4 sm:$0xff]  }
 0x1c4   :  { %5576 = vmatpush1.bf16.msra.mxu1 %v8119_v3  ;;  %v8197_v3 = vld [vmem:[#allocation2 + $0xa48] ss:$16 sps:$4 sm:$0xff]  }
 0x1c5   :  { %5146 = vmatpush1.bf16.msra.mxu0 %v8116_v2  ;;  %5577 = vmatprep.subr.bf16.mxu1 %v8127_v5  ;;  %v8194_v2 = vld [vmem:[#allocation2 + $0xe40] ss:$16 sps:$4 sm:$0xff]  }
 0x1c6   :  { %5147 = vmatprep.subr.bf16.mxu0 %v8124_v4  ;;  %v8202_v4 = vld [vmem:[#allocation2 + $0xe64] ss:$16 sps:$4 sm:$0xff]   ;;  %v8200_v5 = vld [vmem:[#allocation2 + $0xe60] ss:$16 sps:$4 sm:$0xff]  }
 0x1c8   :  { %5578 = vmatpush1.bf16.msra.mxu1 %v8125_v7  ;;  %v8208_v7 = vld [vmem:[#allocation2 + $0xe84] ss:$16 sps:$4 sm:$0xff]  }
 0x1c9   :  { %5148 = vmatpush1.bf16.msra.mxu0 %v8122_v6  ;;  %5579 = vmatprep.subr.bf16.mxu1 %v8133_v11  ;;  %v8203_v6 = vld [vmem:[#allocation2 + $0xa68] ss:$16 sps:$4 sm:$0xff]   ;;  %v8206_v11 = vld [vmem:[#allocation2 + $0xe80] ss:$16 sps:$4 sm:$0xff]  }
 0x1ca   :  { %5149 = vmatprep.subr.bf16.mxu0 %v8130_v10  ;;  %v8211_v10 = vld [vmem:[#allocation2 + $0xa8c] ss:$16 sps:$4 sm:$0xff]  }
 0x1cc   :  { %5580 = vmatpush1.bf16.msra.mxu1 %v8131_v13  ;;  %v8217_v13 = vld [vmem:[#allocation2 + $0xaac] ss:$16 sps:$4 sm:$0xff]  }
 0x1cd   :  { %5150 = vmatpush1.bf16.msra.mxu0 %v8128_v12  ;;  %5581 = vmatprep.subr.bf16.mxu1 %v8139_v15  ;;  %v8214_v12 = vld [vmem:[#allocation2 + $0xea4] ss:$16 sps:$4 sm:$0xff]   ;;  %v8215_v15 = vld [vmem:[#allocation2 + $0xaa8] ss:$16 sps:$4 sm:$0xff]  }
 0x1ce   :  { %5151 = vmatprep.subr.bf16.mxu0 %v8136_v14  ;;  %v8212_v14 = vld [vmem:[#allocation2 + $0xea0] ss:$16 sps:$4 sm:$0xff]  }
 0x1d0   :  { %5582 = vmatpush1.bf16.msra.mxu1 %v8137_v18  ;;  %v8223_v18 = vld [vmem:[#allocation2 + $0xacc] ss:$16 sps:$4 sm:$0xff]  }
 0x1d1   :  { %5152 = vmatpush1.bf16.msra.mxu0 %v8134_v17  ;;  %5583 = vmatprep.subr.bf16.mxu1 %v8145_v20  ;;  %v8220_v17 = vld [vmem:[#allocation2 + $0xec4] ss:$16 sps:$4 sm:$0xff]   ;;  %v8221_v20 = vld [vmem:[#allocation2 + $0xac8] ss:$16 sps:$4 sm:$0xff]  }
 0x1d2   :  { %5153 = vmatprep.subr.bf16.mxu0 %v8142_v19  ;;  %v8218_v19 = vld [vmem:[#allocation2 + $0xec0] ss:$16 sps:$4 sm:$0xff]  }
 0x1d4   :  { %5584 = vmatpush1.bf16.msra.mxu1 %v8143_v24  ;;  %v8229_v24 = vld [vmem:[#allocation2 + $0xaec] ss:$16 sps:$4 sm:$0xff]  }
 0x1d5   :  { %5154 = vmatpush1.bf16.msra.mxu0 %v8140_v23  ;;  %5585 = vmatprep.subr.bf16.mxu1 %v8151_v8  ;;  %v8226_v23 = vld [vmem:[#allocation2 + $0xee4] ss:$16 sps:$4 sm:$0xff]   ;;  %v8227_v8 = vld [vmem:[#allocation2 + $0xae8] ss:$16 sps:$4 sm:$0xff]  }
 0x1d6   :  { %5155 = vmatprep.subr.bf16.mxu0 %v8148_v26  ;;  %v8224_v26 = vld [vmem:[#allocation2 + $0xee0] ss:$16 sps:$4 sm:$0xff]  }
 0x1d8   :  { %5586 = vmatpush1.bf16.msra.mxu1 %v8149_v31  ;;  %v8235_v31 = vld [vmem:[#allocation2 + $0xb0c] ss:$16 sps:$4 sm:$0xff]  }
 0x1d9   :  { %5156 = vmatpush1.bf16.msra.mxu0 %v8146_v30  ;;  %5587 = vmatprep.subr.bf16.mxu1 %v8157_v32  ;;  %v8232_v30 = vld [vmem:[#allocation2 + $0xf04] ss:$16 sps:$4 sm:$0xff]   ;;  %v8233_v32 = vld [vmem:[#allocation2 + $0xb08] ss:$16 sps:$4 sm:$0xff]  }
 0x1da   :  { %5157 = vmatprep.subr.bf16.mxu0 %v8154_v22  ;;  %v8230_v22 = vld [vmem:[#allocation2 + $0xf00] ss:$16 sps:$4 sm:$0xff]  }
 0x1dc   :  { %5588 = vmatpush1.bf16.msra.mxu1 %v8155_v55  ;;  %v8241_v55 = vld [vmem:[#allocation2 + $0xb2c] ss:$16 sps:$4 sm:$0xff]  }
 0x1dd   :  { %5158 = vmatpush1.bf16.msra.mxu0 %v8152_v33  ;;  %5589 = vmatprep.subr.bf16.mxu1 %v8163_v37  ;;  %v8238_v33 = vld [vmem:[#allocation2 + $0xf24] ss:$16 sps:$4 sm:$0xff]   ;;  %v8239_v37 = vld [vmem:[#allocation2 + $0xb28] ss:$16 sps:$4 sm:$0xff]  }
 0x1de   :  { %5159 = vmatprep.subr.bf16.mxu0 %v8160_v9  ;;  %v8236_v9 = vld [vmem:[#allocation2 + $0xf20] ss:$16 sps:$4 sm:$0xff]  }
 0x1e0   :  { %5590 = vmatpush1.bf16.msra.mxu1 %v8161_v29  ;;  %v8247_v29 = vld [vmem:[#allocation2 + $0xb4c] ss:$16 sps:$4 sm:$0xff]  }
 0x1e1   :  { %5160 = vmatpush1.bf16.msra.mxu0 %v8158_v28  ;;  %5591 = vmatprep.subr.bf16.mxu1 %v8169_v41  ;;  %v8244_v28 = vld [vmem:[#allocation2 + $0xf44] ss:$16 sps:$4 sm:$0xff]   ;;  %v8245_v41 = vld [vmem:[#allocation2 + $0xb48] ss:$16 sps:$4 sm:$0xff]  }
 0x1e2   :  { %5161 = vmatprep.subr.bf16.mxu0 %v8166_v40  ;;  %v8242_v40 = vld [vmem:[#allocation2 + $0xf40] ss:$16 sps:$4 sm:$0xff]  }
 0x1e4   :  { %5592 = vmatpush1.bf16.msra.mxu1 %v8167_v38  ;;  %v8253_v38 = vld [vmem:[#allocation2 + $0xb6c] ss:$16 sps:$4 sm:$0xff]  }
 0x1e5   :  { %5162 = vmatpush1.bf16.msra.mxu0 %v8164_v42  ;;  %5593 = vmatprep.subr.bf16.mxu1 %v8175_v46  ;;  %v8250_v42 = vld [vmem:[#allocation2 + $0xf64] ss:$16 sps:$4 sm:$0xff]   ;;  %v8251_v46 = vld [vmem:[#allocation2 + $0xb68] ss:$16 sps:$4 sm:$0xff]  }
 0x1e6   :  { %5163 = vmatprep.subr.bf16.mxu0 %v8172_v45  ;;  %v8248_v45 = vld [vmem:[#allocation2 + $0xf60] ss:$16 sps:$4 sm:$0xff]  }
 0x1e8   :  { %5594 = vmatpush1.bf16.msra.mxu1 %v8173_v48  ;;  %v8259_v48 = vld [vmem:[#allocation2 + $0xb8c] ss:$16 sps:$4 sm:$0xff]  }
 0x1e9   :  { %5164 = vmatpush1.bf16.msra.mxu0 %v8170_v47  ;;  %5595 = vmatprep.subr.bf16.mxu1 %v8181_v36  ;;  %v8256_v47 = vld [vmem:[#allocation2 + $0xf84] ss:$16 sps:$4 sm:$0xff]   ;;  %v8257_v36 = vld [vmem:[#allocation2 + $0xb88] ss:$16 sps:$4 sm:$0xff]  }
 0x1ea   :  { %5165 = vmatprep.subr.bf16.mxu0 %v8178_v34  ;;  %v8254_v34 = vld [vmem:[#allocation2 + $0xf80] ss:$16 sps:$4 sm:$0xff]  }
 0x1ec   :  { %5596 = vmatpush1.bf16.msra.mxu1 %v8179_v50  ;;  %v8265_v50 = vld [vmem:[#allocation2 + $0xbac] ss:$16 sps:$4 sm:$0xff]  }
 0x1ed   :  { %5166 = vmatpush1.bf16.msra.mxu0 %v8176_v49  ;;  %5608 = vmatprep.subr.bf16.mxu1 %v8187_v52  ;;  %v8262_v49 = vld [vmem:[#allocation2 + $0xfa4] ss:$16 sps:$4 sm:$0xff]   ;;  %v8263_v52 = vld [vmem:[#allocation2 + $0xba8] ss:$16 sps:$4 sm:$0xff]  }
 0x1ee   :  { %5178 = vmatprep.subr.bf16.mxu0 %v8184_v51  ;;  %v8260_v51 = vld [vmem:[#allocation2 + $0xfa0] ss:$16 sps:$4 sm:$0xff]  }
 0x1ef   :  { %5598 = vmatmul.mubr.bf16.vlgmr.msra.gmra.mrb[4].mxu1 %v9221_v35  ;;  %v8205_v35 = vld [vmem:[#allocation2 + $0xa6c] ss:$16 sps:$4 sm:$0xff]  }
 0x1f0   :  { %5168 = vmatmul.mubr.bf16.vlgmr.msra.gmra.mrb[0].mxu0 %v9278_v54  ;;  %5609 = vmatpush1.bf16.msra.mxu1 %v8185_v60  ;;  %v8271_v60 = vld [vmem:[#allocation2 + $0xbcc] ss:$16 sps:$4 sm:$0xff]  }
 0x1f1   :  { %5179 = vmatpush1.bf16.msra.mxu0 %v8182_v59  ;;  %5610 = vmatprep.subr.bf16.mxu1 %v8193_v63  ;;  %v8268_v59 = vld [vmem:[#allocation2 + $0xfc4] ss:$16 sps:$4 sm:$0xff]   ;;  %v8269_v63 = vld [vmem:[#allocation2 + $0xbc8] ss:$16 sps:$4 sm:$0xff]  }
 0x1f2   :  { %5180 = vmatprep.subr.bf16.mxu0 %v8190_v62  ;;  %5210 = vmatprep.mubr.bf16.mxu0 %v9282_v21  ;;  %v8266_v62 = vld [vmem:[#allocation2 + $0xfc0] ss:$16 sps:$4 sm:$0xff]  }
 0x1f3   :  { %5640 = vmatprep.mubr.bf16.mxu1 %v9230_v39  ;;  %v8209_v39 = vld [vmem:[#allocation2 + $0xa88] ss:$16 sps:$4 sm:$0xff]  }
 0x1f4   :  { %5611 = vmatpush1.bf16.msra.mxu1 %v8191_v16  ;;  %v8277_v16 = vld [vmem:[#allocation2 + $0xbec] ss:$16 sps:$4 sm:$0xff]  }
 0x1f5   :  { %5181 = vmatpush1.bf16.msra.mxu0 %v8188_v43  ;;  %5612 = vmatprep.subr.bf16.mxu1 %v8199_v1  ;;  %v8274_v43 = vld [vmem:[#allocation2 + $0xfe4] ss:$16 sps:$4 sm:$0xff]   ;;  %v8275_v1 = vld [vmem:[#allocation2 + $0xbe8] ss:$16 sps:$4 sm:$0xff]  }
 0x1f6   :  { %5182 = vmatprep.subr.bf16.mxu0 %v8196_v0  ;;  %v8272_v0 = vld [vmem:[#allocation2 + $0xfe0] ss:$16 sps:$4 sm:$0xff]  }
 0x1f8   :  { %5613 = vmatpush1.bf16.msra.mxu1 %v8197_v3  ;;  %v8283_v3 = vld [vmem:[#allocation2 + $0xc0c] ss:$16 sps:$4 sm:$0xff]  }
 0x1f9   :  { %5183 = vmatpush1.bf16.msra.mxu0 %v8194_v2  ;;  %5614 = vmatprep.subr.bf16.mxu1 %v8205_v35  ;;  %v8280_v2 = vld [vmem:[#allocation2 + $0x1004] ss:$16 sps:$4 sm:$0xff]  }
 0x1fa   :  { %5184 = vmatprep.subr.bf16.mxu0 %v8202_v4  ;;  %v9291_v4 = vld [vmem:[%s9416_s0 + $0x40] sm:$0xff] }
 0x1fb   :  { %v9296_v35 = vld [vmem:[%s9416_s0 + $0xa0] sm:$0xff] }
 0x1fc   :  { %5615 = vmatpush1.bf16.msra.mxu1 %v8203_v6  ;;  %v8278_v6 = vld [vmem:[#allocation2 + $0x1000] ss:$16 sps:$4 sm:$0xff]  }
 0x1fd   :  { %5185 = vmatpush1.bf16.msra.mxu0 %v8200_v5  ;;  %5616 = vmatprep.subr.bf16.mxu1 %v8211_v10  ;;  %v9300_v5 = vcombine.low %v9269_v53, %v9274_v27  ;;  %v8286_v10 = vld [vmem:[#allocation2 + $0x1024] ss:$16 sps:$4 sm:$0xff]   ;;  %v8284_v53 = vld [vmem:[#allocation2 + $0x1020] ss:$16 sps:$4 sm:$0xff]   ;;  %v8287_v27 = vld [vmem:[#allocation2 + $0xc28] ss:$16 sps:$4 sm:$0xff]  }
 0x1fe   :  { %5186 = vmatprep.subr.bf16.mxu0 %v8208_v7  ;;  %v8281_v7 = vld [vmem:[#allocation2 + $0xc08] ss:$16 sps:$4 sm:$0xff]  }
 0x200   :  { %5617 = vmatpush1.bf16.msra.mxu1 %v8209_v39  ;;  %v9304_v39 = vcombine.high %v9291_v4, %v9296_v35 }
 0x201   :  { %5187 = vmatpush1.bf16.msra.mxu0 %v8206_v11  ;;  %5618 = vmatprep.subr.bf16.mxu1 %v8217_v13  ;;  %v8289_v11 = vld [vmem:[#allocation2 + $0xc2c] ss:$16 sps:$4 sm:$0xff]  }
 0x202   :  { %5188 = vmatprep.subr.bf16.mxu0 %v8214_v12  ;;  %v8292_v12 = vld [vmem:[#allocation2 + $0x1044] ss:$16 sps:$4 sm:$0xff]   ;;  %v8295_v13 = vld [vmem:[#allocation2 + $0xc4c] ss:$16 sps:$4 sm:$0xff]  }
 0x204   :  { %5619 = vmatpush1.bf16.msra.mxu1 %v8215_v15  ;;  %v8293_v15 = vld [vmem:[#allocation2 + $0xc48] ss:$16 sps:$4 sm:$0xff]  }
 0x205   :  { %5189 = vmatpush1.bf16.msra.mxu0 %v8212_v14  ;;  %5620 = vmatprep.subr.bf16.mxu1 %v8223_v18  ;;  %v8290_v14 = vld [vmem:[#allocation2 + $0x1040] ss:$16 sps:$4 sm:$0xff]  }
 0x206   :  { %5190 = vmatprep.subr.bf16.mxu0 %v8220_v17  ;;  %v8298_v17 = vld [vmem:[#allocation2 + $0x1064] ss:$16 sps:$4 sm:$0xff]   ;;  %v8296_v18 = vld [vmem:[#allocation2 + $0x1060] ss:$16 sps:$4 sm:$0xff]  }
 0x208   :  { %5621 = vmatpush1.bf16.msra.mxu1 %v8221_v20  ;;  %v8304_v20 = vld [vmem:[#allocation2 + $0x1084] ss:$16 sps:$4 sm:$0xff]  }
 0x209   :  { %5191 = vmatpush1.bf16.msra.mxu0 %v8218_v19  ;;  %5622 = vmatprep.subr.bf16.mxu1 %v8229_v24  ;;  %v8299_v19 = vld [vmem:[#allocation2 + $0xc68] ss:$16 sps:$4 sm:$0xff]   ;;  %v8302_v24 = vld [vmem:[#allocation2 + $0x1080] ss:$16 sps:$4 sm:$0xff]  }
 0x20a   :  { %5192 = vmatprep.subr.bf16.mxu0 %v8226_v23  ;;  %v8307_v23 = vld [vmem:[#allocation2 + $0xc8c] ss:$16 sps:$4 sm:$0xff]  }
 0x20c   :  { %5623 = vmatpush1.bf16.msra.mxu1 %v8227_v8  ;;  %v8313_v8 = vld [vmem:[#allocation2 + $0xcac] ss:$16 sps:$4 sm:$0xff]  }
 0x20d   :  { %5193 = vmatpush1.bf16.msra.mxu0 %v8224_v26  ;;  %5624 = vmatprep.subr.bf16.mxu1 %v8235_v31  ;;  %v8310_v26 = vld [vmem:[#allocation2 + $0x10a4] ss:$16 sps:$4 sm:$0xff]   ;;  %v8311_v31 = vld [vmem:[#allocation2 + $0xca8] ss:$16 sps:$4 sm:$0xff]  }
 0x20e   :  { %5194 = vmatprep.subr.bf16.mxu0 %v8232_v30  ;;  %v8308_v30 = vld [vmem:[#allocation2 + $0x10a0] ss:$16 sps:$4 sm:$0xff]  }
 0x210   :  { %5625 = vmatpush1.bf16.msra.mxu1 %v8233_v32  ;;  %v8319_v32 = vld [vmem:[#allocation2 + $0xccc] ss:$16 sps:$4 sm:$0xff]  }
 0x211   :  { %5195 = vmatpush1.bf16.msra.mxu0 %v8230_v22  ;;  %5626 = vmatprep.subr.bf16.mxu1 %v8241_v55  ;;  %v8316_v22 = vld [vmem:[#allocation2 + $0x10c4] ss:$16 sps:$4 sm:$0xff]   ;;  %v8317_v55 = vld [vmem:[#allocation2 + $0xcc8] ss:$16 sps:$4 sm:$0xff]  }
 0x212   :  { %5196 = vmatprep.subr.bf16.mxu0 %v8238_v33  ;;  %v8314_v33 = vld [vmem:[#allocation2 + $0x10c0] ss:$16 sps:$4 sm:$0xff]  }
 0x214   :  { %5627 = vmatpush1.bf16.msra.mxu1 %v8239_v37  ;;  %v8325_v37 = vld [vmem:[#allocation2 + $0xcec] ss:$16 sps:$4 sm:$0xff]  }
 0x215   :  { %5197 = vmatpush1.bf16.msra.mxu0 %v8236_v9  ;;  %5628 = vmatprep.subr.bf16.mxu1 %v8247_v29  ;;  %v8322_v9 = vld [vmem:[#allocation2 + $0x10e4] ss:$16 sps:$4 sm:$0xff]   ;;  %v8323_v29 = vld [vmem:[#allocation2 + $0xce8] ss:$16 sps:$4 sm:$0xff]  }
 0x216   :  { %5198 = vmatprep.subr.bf16.mxu0 %v8244_v28  ;;  %v8320_v28 = vld [vmem:[#allocation2 + $0x10e0] ss:$16 sps:$4 sm:$0xff]  }
 0x218   :  { %5629 = vmatpush1.bf16.msra.mxu1 %v8245_v41  ;;  %v8331_v41 = vld [vmem:[#allocation2 + $0xd0c] ss:$16 sps:$4 sm:$0xff]  }
 0x219   :  { %5199 = vmatpush1.bf16.msra.mxu0 %v8242_v40  ;;  %5630 = vmatprep.subr.bf16.mxu1 %v8253_v38  ;;  %v8328_v40 = vld [vmem:[#allocation2 + $0x1104] ss:$16 sps:$4 sm:$0xff]   ;;  %v8329_v38 = vld [vmem:[#allocation2 + $0xd08] ss:$16 sps:$4 sm:$0xff]  }
 0x21a   :  { %5200 = vmatprep.subr.bf16.mxu0 %v8250_v42  ;;  %v8326_v42 = vld [vmem:[#allocation2 + $0x1100] ss:$16 sps:$4 sm:$0xff]  }
 0x21c   :  { %5631 = vmatpush1.bf16.msra.mxu1 %v8251_v46  ;;  %v8337_v46 = vld [vmem:[#allocation2 + $0xd2c] ss:$16 sps:$4 sm:$0xff]  }
 0x21d   :  { %5201 = vmatpush1.bf16.msra.mxu0 %v8248_v45  ;;  %5632 = vmatprep.subr.bf16.mxu1 %v8259_v48  ;;  %v8334_v45 = vld [vmem:[#allocation2 + $0x1124] ss:$16 sps:$4 sm:$0xff]   ;;  %v8335_v48 = vld [vmem:[#allocation2 + $0xd28] ss:$16 sps:$4 sm:$0xff]  }
 0x21e   :  { %5202 = vmatprep.subr.bf16.mxu0 %v8256_v47  ;;  %v8332_v47 = vld [vmem:[#allocation2 + $0x1120] ss:$16 sps:$4 sm:$0xff]  }
 0x220   :  { %5633 = vmatpush1.bf16.msra.mxu1 %v8257_v36  ;;  %v8343_v36 = vld [vmem:[#allocation2 + $0xd4c] ss:$16 sps:$4 sm:$0xff]  }
 0x221   :  { %5203 = vmatpush1.bf16.msra.mxu0 %v8254_v34  ;;  %5634 = vmatprep.subr.bf16.mxu1 %v8265_v50  ;;  %v8340_v34 = vld [vmem:[#allocation2 + $0x1144] ss:$16 sps:$4 sm:$0xff]   ;;  %v8341_v50 = vld [vmem:[#allocation2 + $0xd48] ss:$16 sps:$4 sm:$0xff]  }
 0x222   :  { %5204 = vmatprep.subr.bf16.mxu0 %v8262_v49  ;;  %v8338_v49 = vld [vmem:[#allocation2 + $0x1140] ss:$16 sps:$4 sm:$0xff]  }
 0x224   :  { %5635 = vmatpush1.bf16.msra.mxu1 %v8263_v52  ;;  %v8349_v52 = vld [vmem:[#allocation2 + $0xd6c] ss:$16 sps:$4 sm:$0xff]  }
 0x225   :  { %5205 = vmatpush1.bf16.msra.mxu0 %v8260_v51  ;;  %5636 = vmatprep.subr.bf16.mxu1 %v8271_v60  ;;  %v8346_v51 = vld [vmem:[#allocation2 + $0x1164] ss:$16 sps:$4 sm:$0xff]   ;;  %v8347_v60 = vld [vmem:[#allocation2 + $0xd68] ss:$16 sps:$4 sm:$0xff]  }
 0x226   :  { %5206 = vmatprep.subr.bf16.mxu0 %v8268_v59  ;;  %v8344_v59 = vld [vmem:[#allocation2 + $0x1160] ss:$16 sps:$4 sm:$0xff]  }
 0x228   :  { %5637 = vmatpush1.bf16.msra.mxu1 %v8269_v63  ;;  %v8355_v63 = vld [vmem:[#allocation2 + $0xd8c] ss:$16 sps:$4 sm:$0xff]  }
 0x229   :  { %5207 = vmatpush1.bf16.msra.mxu0 %v8266_v62  ;;  %5638 = vmatprep.subr.bf16.mxu1 %v8277_v16  ;;  %v8352_v62 = vld [vmem:[#allocation2 + $0x1184] ss:$16 sps:$4 sm:$0xff]   ;;  %v8353_v16 = vld [vmem:[#allocation2 + $0xd88] ss:$16 sps:$4 sm:$0xff]  }
 0x22a   :  { %5208 = vmatprep.subr.bf16.mxu0 %v8274_v43  ;;  %v8350_v43 = vld [vmem:[#allocation2 + $0x1180] ss:$16 sps:$4 sm:$0xff]  }
 0x22c   :  { %5639 = vmatpush1.bf16.msra.mxu1 %v8275_v1  ;;  %v8361_v1 = vld [vmem:[#allocation2 + $0xdac] ss:$16 sps:$4 sm:$0xff]  }
 0x22d   :  { %5209 = vmatpush1.bf16.msra.mxu0 %v8272_v0  ;;  %5651 = vmatprep.subr.bf16.mxu1 %v8283_v3  ;;  %v8358_v0 = vld [vmem:[#allocation2 + $0x11a4] ss:$16 sps:$4 sm:$0xff]   ;;  %v8359_v3 = vld [vmem:[#allocation2 + $0xda8] ss:$16 sps:$4 sm:$0xff]  }
 0x22e   :  { %5221 = vmatprep.subr.bf16.mxu0 %v8280_v2  ;;  %v8356_v2 = vld [vmem:[#allocation2 + $0x11a0] ss:$16 sps:$4 sm:$0xff]  }
 0x22f   :  { %5641 = vmatmul.mubr.bf16.vlgmr.msra.gmra.mrb[4].mxu1 %v9256_v44  ;;  %v8301_v44 = vld [vmem:[#allocation2 + $0xc6c] ss:$16 sps:$4 sm:$0xff]  }
 0x230   :  { %5211 = vmatmul.mubr.bf16.vlgmr.msra.gmra.mrb[0].mxu0 %v9300_v5  ;;  %5652 = vmatpush1.bf16.msra.mxu1 %v8281_v7  ;;  %v8367_v7 = vld [vmem:[#allocation2 + $0xdcc] ss:$16 sps:$4 sm:$0xff]  }
 0x231   :  { %5222 = vmatpush1.bf16.msra.mxu0 %v8278_v6  ;;  %5653 = vmatprep.subr.bf16.mxu1 %v8289_v11  ;;  %v8364_v6 = vld [vmem:[#allocation2 + $0x11c4] ss:$16 sps:$4 sm:$0xff]   ;;  %v8365_v11 = vld [vmem:[#allocation2 + $0xdc8] ss:$16 sps:$4 sm:$0xff]  }
 0x232   :  { %5223 = vmatprep.subr.bf16.mxu0 %v8286_v10  ;;  %5253 = vmatprep.mubr.bf16.mxu0 %v9304_v39  ;;  %v8362_v10 = vld [vmem:[#allocation2 + $0x11c0] ss:$16 sps:$4 sm:$0xff]  }
 0x233   :  { %5683 = vmatprep.mubr.bf16.mxu1 %v9260_v25  ;;  %v8305_v25 = vld [vmem:[#allocation2 + $0xc88] ss:$16 sps:$4 sm:$0xff]  }
 0x234   :  { %5654 = vmatpush1.bf16.msra.mxu1 %v8287_v27  ;;  %v8373_v27 = vld [vmem:[#allocation2 + $0xdec] ss:$16 sps:$4 sm:$0xff]  }
 0x235   :  { %5224 = vmatpush1.bf16.msra.mxu0 %v8284_v53  ;;  %5655 = vmatprep.subr.bf16.mxu1 %v8295_v13  ;;  %v8370_v53 = vld [vmem:[#allocation2 + $0x11e4] ss:$16 sps:$4 sm:$0xff]   ;;  %v8371_v13 = vld [vmem:[#allocation2 + $0xde8] ss:$16 sps:$4 sm:$0xff]  }
 0x236   :  { %5225 = vmatprep.subr.bf16.mxu0 %v8292_v12  ;;  %v8368_v12 = vld [vmem:[#allocation2 + $0x11e0] ss:$16 sps:$4 sm:$0xff]  }
 0x238   :  { %5656 = vmatpush1.bf16.msra.mxu1 %v8293_v15  ;;  %v8379_v15 = vld [vmem:[#allocation2 + $0xe0c] ss:$16 sps:$4 sm:$0xff]  }
 0x239   :  { %5226 = vmatpush1.bf16.msra.mxu0 %v8290_v14  ;;  %5657 = vmatprep.subr.bf16.mxu1 %v8301_v44  ;;  %v8376_v14 = vld [vmem:[#allocation2 + $0x1204] ss:$16 sps:$4 sm:$0xff]   ;;  %v9317_v44 = vld [vmem:[%s9416_s0 + $0x48] sm:$0xff] }
 0x23a   :  { %5227 = vmatprep.subr.bf16.mxu0 %v8298_v17  ;;  %v9312_v17 = vcombine.low %v9291_v4, %v9296_v35  ;;  %v8380_v35 = vld [vmem:[#allocation2 + $0x1220] ss:$16 sps:$4 sm:$0xff]  }
 0x23c   :  { %5658 = vmatpush1.bf16.msra.mxu1 %v8299_v19  ;;  %v8374_v19 = vld [vmem:[#allocation2 + $0x1200] ss:$16 sps:$4 sm:$0xff]  }
 0x23d   :  { %5228 = vmatpush1.bf16.msra.mxu0 %v8296_v18  ;;  %5659 = vmatprep.subr.bf16.mxu1 %v8307_v23  ;;  %v9322_v18 = vld [vmem:[%s9416_s0 + $0xa8] sm:$0xff]  ;;  %v8382_v23 = vld [vmem:[#allocation2 + $0x1224] ss:$16 sps:$4 sm:$0xff]  }
 0x23e   :  { %5229 = vmatprep.subr.bf16.mxu0 %v8304_v20  ;;  %v8377_v20 = vld [vmem:[#allocation2 + $0xe08] ss:$16 sps:$4 sm:$0xff]   ;;  %v9326_v4 = vcombine.high %v9317_v44, %v9322_v18 }
 0x240   :  { %5660 = vmatpush1.bf16.msra.mxu1 %v8305_v25  ;;  %v8383_v25 = vld [vmem:[#allocation2 + $0xe28] ss:$16 sps:$4 sm:$0xff]  }
 0x241   :  { %5230 = vmatpush1.bf16.msra.mxu0 %v8302_v24  ;;  %5661 = vmatprep.subr.bf16.mxu1 %v8313_v8  ;;  %v8385_v24 = vld [vmem:[#allocation2 + $0xe2c] ss:$16 sps:$4 sm:$0xff]  }
 0x242   :  { %5231 = vmatprep.subr.bf16.mxu0 %v8310_v26  ;;  %v8388_v26 = vld [vmem:[#allocation2 + $0x1244] ss:$16 sps:$4 sm:$0xff]   ;;  %v8391_v8 = vld [vmem:[#allocation2 + $0xe4c] ss:$16 sps:$4 sm:$0xff]  }
 0x244   :  { %5662 = vmatpush1.bf16.msra.mxu1 %v8311_v31  ;;  %v8389_v31 = vld [vmem:[#allocation2 + $0xe48] ss:$16 sps:$4 sm:$0xff]  }
 0x245   :  { %5232 = vmatpush1.bf16.msra.mxu0 %v8308_v30  ;;  %5663 = vmatprep.subr.bf16.mxu1 %v8319_v32  ;;  %v8386_v30 = vld [vmem:[#allocation2 + $0x1240] ss:$16 sps:$4 sm:$0xff]  }
 0x246   :  { %5233 = vmatprep.subr.bf16.mxu0 %v8316_v22  ;;  %v8394_v22 = vld [vmem:[#allocation2 + $0x1264] ss:$16 sps:$4 sm:$0xff]   ;;  %v8392_v32 = vld [vmem:[#allocation2 + $0x1260] ss:$16 sps:$4 sm:$0xff]  }
 0x248   :  { %5664 = vmatpush1.bf16.msra.mxu1 %v8317_v55  ;;  %v8400_v55 = vld [vmem:[#allocation2 + $0x1284] ss:$16 sps:$4 sm:$0xff]  }
 0x249   :  { %5234 = vmatpush1.bf16.msra.mxu0 %v8314_v33  ;;  %5665 = vmatprep.subr.bf16.mxu1 %v8325_v37  ;;  %v8395_v33 = vld [vmem:[#allocation2 + $0xe68] ss:$16 sps:$4 sm:$0xff]   ;;  %v8398_v37 = vld [vmem:[#allocation2 + $0x1280] ss:$16 sps:$4 sm:$0xff]  }
 0x24a   :  { %5235 = vmatprep.subr.bf16.mxu0 %v8322_v9  ;;  %v8403_v9 = vld [vmem:[#allocation2 + $0xe8c] ss:$16 sps:$4 sm:$0xff]  }
 0x24c   :  { %5666 = vmatpush1.bf16.msra.mxu1 %v8323_v29  ;;  %v8409_v29 = vld [vmem:[#allocation2 + $0xeac] ss:$16 sps:$4 sm:$0xff]  }
 0x24d   :  { %5236 = vmatpush1.bf16.msra.mxu0 %v8320_v28  ;;  %5667 = vmatprep.subr.bf16.mxu1 %v8331_v41  ;;  %v8406_v28 = vld [vmem:[#allocation2 + $0x12a4] ss:$16 sps:$4 sm:$0xff]   ;;  %v8407_v41 = vld [vmem:[#allocation2 + $0xea8] ss:$16 sps:$4 sm:$0xff]  }
 0x24e   :  { %5237 = vmatprep.subr.bf16.mxu0 %v8328_v40  ;;  %v8404_v40 = vld [vmem:[#allocation2 + $0x12a0] ss:$16 sps:$4 sm:$0xff]  }
 0x250   :  { %5668 = vmatpush1.bf16.msra.mxu1 %v8329_v38  ;;  %v8415_v38 = vld [vmem:[#allocation2 + $0xecc] ss:$16 sps:$4 sm:$0xff]  }
 0x251   :  { %5238 = vmatpush1.bf16.msra.mxu0 %v8326_v42  ;;  %5669 = vmatprep.subr.bf16.mxu1 %v8337_v46  ;;  %v8412_v42 = vld [vmem:[#allocation2 + $0x12c4] ss:$16 sps:$4 sm:$0xff]   ;;  %v8413_v46 = vld [vmem:[#allocation2 + $0xec8] ss:$16 sps:$4 sm:$0xff]  }
 0x252   :  { %5239 = vmatprep.subr.bf16.mxu0 %v8334_v45  ;;  %v8410_v45 = vld [vmem:[#allocation2 + $0x12c0] ss:$16 sps:$4 sm:$0xff]  }
 0x254   :  { %5670 = vmatpush1.bf16.msra.mxu1 %v8335_v48  ;;  %v8421_v48 = vld [vmem:[#allocation2 + $0xeec] ss:$16 sps:$4 sm:$0xff]  }
 0x255   :  { %5240 = vmatpush1.bf16.msra.mxu0 %v8332_v47  ;;  %5671 = vmatprep.subr.bf16.mxu1 %v8343_v36  ;;  %v8418_v47 = vld [vmem:[#allocation2 + $0x12e4] ss:$16 sps:$4 sm:$0xff]   ;;  %v8419_v36 = vld [vmem:[#allocation2 + $0xee8] ss:$16 sps:$4 sm:$0xff]  }
 0x256   :  { %5241 = vmatprep.subr.bf16.mxu0 %v8340_v34  ;;  %v8416_v34 = vld [vmem:[#allocation2 + $0x12e0] ss:$16 sps:$4 sm:$0xff]  }
 0x258   :  { %5672 = vmatpush1.bf16.msra.mxu1 %v8341_v50  ;;  %v8427_v50 = vld [vmem:[#allocation2 + $0xf0c] ss:$16 sps:$4 sm:$0xff]  }
 0x259   :  { %5242 = vmatpush1.bf16.msra.mxu0 %v8338_v49  ;;  %5673 = vmatprep.subr.bf16.mxu1 %v8349_v52  ;;  %v8424_v49 = vld [vmem:[#allocation2 + $0x1304] ss:$16 sps:$4 sm:$0xff]   ;;  %v8425_v52 = vld [vmem:[#allocation2 + $0xf08] ss:$16 sps:$4 sm:$0xff]  }
 0x25a   :  { %5243 = vmatprep.subr.bf16.mxu0 %v8346_v51  ;;  %v8422_v51 = vld [vmem:[#allocation2 + $0x1300] ss:$16 sps:$4 sm:$0xff]  }
 0x25c   :  { %5674 = vmatpush1.bf16.msra.mxu1 %v8347_v60  ;;  %v8433_v60 = vld [vmem:[#allocation2 + $0xf2c] ss:$16 sps:$4 sm:$0xff]  }
 0x25d   :  { %5244 = vmatpush1.bf16.msra.mxu0 %v8344_v59  ;;  %5675 = vmatprep.subr.bf16.mxu1 %v8355_v63  ;;  %v8430_v59 = vld [vmem:[#allocation2 + $0x1324] ss:$16 sps:$4 sm:$0xff]   ;;  %v8431_v63 = vld [vmem:[#allocation2 + $0xf28] ss:$16 sps:$4 sm:$0xff]  }
 0x25e   :  { %5245 = vmatprep.subr.bf16.mxu0 %v8352_v62  ;;  %v8428_v62 = vld [vmem:[#allocation2 + $0x1320] ss:$16 sps:$4 sm:$0xff]  }
 0x260   :  { %5676 = vmatpush1.bf16.msra.mxu1 %v8353_v16  ;;  %v8439_v16 = vld [vmem:[#allocation2 + $0xf4c] ss:$16 sps:$4 sm:$0xff]  }
 0x261   :  { %5246 = vmatpush1.bf16.msra.mxu0 %v8350_v43  ;;  %5677 = vmatprep.subr.bf16.mxu1 %v8361_v1  ;;  %v8436_v43 = vld [vmem:[#allocation2 + $0x1344] ss:$16 sps:$4 sm:$0xff]   ;;  %v8437_v1 = vld [vmem:[#allocation2 + $0xf48] ss:$16 sps:$4 sm:$0xff]  }
 0x262   :  { %5247 = vmatprep.subr.bf16.mxu0 %v8358_v0  ;;  %v8434_v0 = vld [vmem:[#allocation2 + $0x1340] ss:$16 sps:$4 sm:$0xff]  }
 0x264   :  { %5678 = vmatpush1.bf16.msra.mxu1 %v8359_v3  ;;  %v8445_v3 = vld [vmem:[#allocation2 + $0xf6c] ss:$16 sps:$4 sm:$0xff]  }
 0x265   :  { %5248 = vmatpush1.bf16.msra.mxu0 %v8356_v2  ;;  %5679 = vmatprep.subr.bf16.mxu1 %v8367_v7  ;;  %v8442_v2 = vld [vmem:[#allocation2 + $0x1364] ss:$16 sps:$4 sm:$0xff]   ;;  %v8443_v7 = vld [vmem:[#allocation2 + $0xf68] ss:$16 sps:$4 sm:$0xff]  }
 0x266   :  { %5249 = vmatprep.subr.bf16.mxu0 %v8364_v6  ;;  %v8440_v6 = vld [vmem:[#allocation2 + $0x1360] ss:$16 sps:$4 sm:$0xff]  }
 0x268   :  { %5680 = vmatpush1.bf16.msra.mxu1 %v8365_v11  ;;  %v8451_v11 = vld [vmem:[#allocation2 + $0xf8c] ss:$16 sps:$4 sm:$0xff]  }
 0x269   :  { %5250 = vmatpush1.bf16.msra.mxu0 %v8362_v10  ;;  %5681 = vmatprep.subr.bf16.mxu1 %v8373_v27  ;;  %v8448_v10 = vld [vmem:[#allocation2 + $0x1384] ss:$16 sps:$4 sm:$0xff]   ;;  %v8449_v27 = vld [vmem:[#allocation2 + $0xf88] ss:$16 sps:$4 sm:$0xff]  }
 0x26a   :  { %5251 = vmatprep.subr.bf16.mxu0 %v8370_v53  ;;  %v8446_v53 = vld [vmem:[#allocation2 + $0x1380] ss:$16 sps:$4 sm:$0xff]  }
 0x26c   :  { %5682 = vmatpush1.bf16.msra.mxu1 %v8371_v13  ;;  %v8457_v13 = vld [vmem:[#allocation2 + $0xfac] ss:$16 sps:$4 sm:$0xff]  }
 0x26d   :  { %5252 = vmatpush1.bf16.msra.mxu0 %v8368_v12  ;;  %5694 = vmatprep.subr.bf16.mxu1 %v8379_v15  ;;  %v8454_v12 = vld [vmem:[#allocation2 + $0x13a4] ss:$16 sps:$4 sm:$0xff]   ;;  %v8455_v15 = vld [vmem:[#allocation2 + $0xfa8] ss:$16 sps:$4 sm:$0xff]  }
 0x26e   :  { %5264 = vmatprep.subr.bf16.mxu0 %v8376_v14  ;;  %v8452_v14 = vld [vmem:[#allocation2 + $0x13a0] ss:$16 sps:$4 sm:$0xff]  }
 0x26f   :  { %5684 = vmatmul.mubr.bf16.vlgmr.msra.gmra.mrb[4].mxu1 %v9278_v54  ;;  %v8397_v54 = vld [vmem:[#allocation2 + $0xe6c] ss:$16 sps:$4 sm:$0xff]  }
 0x270   :  { %5254 = vmatmul.mubr.bf16.vlgmr.msra.gmra.mrb[0].mxu0 %v9312_v17  ;;  %5695 = vmatpush1.bf16.msra.mxu1 %v8377_v20  ;;  %v8463_v20 = vld [vmem:[#allocation2 + $0xfcc] ss:$16 sps:$4 sm:$0xff]  }
 0x271   :  { %5265 = vmatpush1.bf16.msra.mxu0 %v8374_v19  ;;  %5696 = vmatprep.subr.bf16.mxu1 %v8385_v24  ;;  %v8460_v19 = vld [vmem:[#allocation2 + $0x13c4] ss:$16 sps:$4 sm:$0xff]   ;;  %v8461_v24 = vld [vmem:[#allocation2 + $0xfc8] ss:$16 sps:$4 sm:$0xff]  }
 0x272   :  { %5266 = vmatprep.subr.bf16.mxu0 %v8382_v23  ;;  %5296 = vmatprep.mubr.bf16.mxu0 %v9326_v4  ;;  %v8458_v23 = vld [vmem:[#allocation2 + $0x13c0] ss:$16 sps:$4 sm:$0xff]  }
 0x273   :  { %5726 = vmatprep.mubr.bf16.mxu1 %v9282_v21  ;;  %v8401_v21 = vld [vmem:[#allocation2 + $0xe88] ss:$16 sps:$4 sm:$0xff]  }
 0x274   :  { %5697 = vmatpush1.bf16.msra.mxu1 %v8383_v25  ;;  %v8469_v25 = vld [vmem:[#allocation2 + $0xfec] ss:$16 sps:$4 sm:$0xff]  }
 0x275   :  { %5267 = vmatpush1.bf16.msra.mxu0 %v8380_v35  ;;  %5698 = vmatprep.subr.bf16.mxu1 %v8391_v8  ;;  %v8466_v35 = vld [vmem:[#allocation2 + $0x13e4] ss:$16 sps:$4 sm:$0xff]   ;;  %v8467_v8 = vld [vmem:[#allocation2 + $0xfe8] ss:$16 sps:$4 sm:$0xff]  }
 0x276   :  { %5268 = vmatprep.subr.bf16.mxu0 %v8388_v26  ;;  %v8464_v26 = vld [vmem:[#allocation2 + $0x13e0] ss:$16 sps:$4 sm:$0xff]  }
 0x278   :  { %5699 = vmatpush1.bf16.msra.mxu1 %v8389_v31  ;;  %v8475_v31 = vld [vmem:[#allocation2 + $0x100c] ss:$16 sps:$4 sm:$0xff]  }
 0x279   :  { %5269 = vmatpush1.bf16.msra.mxu0 %v8386_v30  ;;  %5700 = vmatprep.subr.bf16.mxu1 %v8397_v54  ;;  %v8472_v30 = vld [vmem:[#allocation2 + $0x1404] ss:$16 sps:$4 sm:$0xff]  }
 0x27a   :  { %5270 = vmatprep.subr.bf16.mxu0 %v8394_v22  ;;  %v9334_v22 = vcombine.low %v9317_v44, %v9322_v18  ;;  %v9339_v54 = vld [vmem:[%s9416_s0 + $0x50] sm:$0xff] }
 0x27b   :  { %v8476_v18 = vld [vmem:[#allocation2 + $0x1420] ss:$16 sps:$4 sm:$0xff]  }
 0x27c   :  { %5701 = vmatpush1.bf16.msra.mxu1 %v8395_v33  ;;  %v8470_v33 = vld [vmem:[#allocation2 + $0x1400] ss:$16 sps:$4 sm:$0xff]  }
 0x27d   :  { %5271 = vmatpush1.bf16.msra.mxu0 %v8392_v32  ;;  %5702 = vmatprep.subr.bf16.mxu1 %v8403_v9  ;;  %v9344_v32 = vld [vmem:[%s9416_s0 + $0xb0] sm:$0xff] }
 0x27e   :  { %5272 = vmatprep.subr.bf16.mxu0 %v8400_v55  ;;  %v8473_v55 = vld [vmem:[#allocation2 + $0x1008] ss:$16 sps:$4 sm:$0xff]   ;;  %v8478_v9 = vld [vmem:[#allocation2 + $0x1424] ss:$16 sps:$4 sm:$0xff]   ;;  %v9348_v44 = vcombine.high %v9339_v54, %v9344_v32 }
 0x280   :  { %5703 = vmatpush1.bf16.msra.mxu1 %v8401_v21  ;;  %v8479_v21 = vld [vmem:[#allocation2 + $0x1028] ss:$16 sps:$4 sm:$0xff]  }
 0x281   :  { %5273 = vmatpush1.bf16.msra.mxu0 %v8398_v37  ;;  %5704 = vmatprep.subr.bf16.mxu1 %v8409_v29  ;;  %v8481_v37 = vld [vmem:[#allocation2 + $0x102c] ss:$16 sps:$4 sm:$0xff]  }
 0x282   :  { %5274 = vmatprep.subr.bf16.mxu0 %v8406_v28  ;;  %v8484_v28 = vld [vmem:[#allocation2 + $0x1444] ss:$16 sps:$4 sm:$0xff]   ;;  %v8487_v29 = vld [vmem:[#allocation2 + $0x104c] ss:$16 sps:$4 sm:$0xff]  }
 0x284   :  { %5705 = vmatpush1.bf16.msra.mxu1 %v8407_v41  ;;  %v8485_v41 = vld [vmem:[#allocation2 + $0x1048] ss:$16 sps:$4 sm:$0xff]  }
 0x285   :  { %5275 = vmatpush1.bf16.msra.mxu0 %v8404_v40  ;;  %5706 = vmatprep.subr.bf16.mxu1 %v8415_v38  ;;  %v8482_v40 = vld [vmem:[#allocation2 + $0x1440] ss:$16 sps:$4 sm:$0xff]  }
 0x286   :  { %5276 = vmatprep.subr.bf16.mxu0 %v8412_v42  ;;  %v8490_v42 = vld [vmem:[#allocation2 + $0x1464] ss:$16 sps:$4 sm:$0xff]   ;;  %v8488_v38 = vld [vmem:[#allocation2 + $0x1460] ss:$16 sps:$4 sm:$0xff]  }
 0x288   :  { %5707 = vmatpush1.bf16.msra.mxu1 %v8413_v46  ;;  %v8496_v46 = vld [vmem:[#allocation2 + $0x1484] ss:$16 sps:$4 sm:$0xff]  }
 0x289   :  { %5277 = vmatpush1.bf16.msra.mxu0 %v8410_v45  ;;  %5708 = vmatprep.subr.bf16.mxu1 %v8421_v48  ;;  %v8491_v45 = vld [vmem:[#allocation2 + $0x1068] ss:$16 sps:$4 sm:$0xff]   ;;  %v8494_v48 = vld [vmem:[#allocation2 + $0x1480] ss:$16 sps:$4 sm:$0xff]  }
 0x28a   :  { %5278 = vmatprep.subr.bf16.mxu0 %v8418_v47  ;;  %v8499_v47 = vld [vmem:[#allocation2 + $0x108c] ss:$16 sps:$4 sm:$0xff]  }
 0x28c   :  { %5709 = vmatpush1.bf16.msra.mxu1 %v8419_v36  ;;  %v8505_v36 = vld [vmem:[#allocation2 + $0x10ac] ss:$16 sps:$4 sm:$0xff]  }
 0x28d   :  { %5279 = vmatpush1.bf16.msra.mxu0 %v8416_v34  ;;  %5710 = vmatprep.subr.bf16.mxu1 %v8427_v50  ;;  %v8502_v34 = vld [vmem:[#allocation2 + $0x14a4] ss:$16 sps:$4 sm:$0xff]   ;;  %v8503_v50 = vld [vmem:[#allocation2 + $0x10a8] ss:$16 sps:$4 sm:$0xff]  }
 0x28e   :  { %5280 = vmatprep.subr.bf16.mxu0 %v8424_v49  ;;  %v8500_v49 = vld [vmem:[#allocation2 + $0x14a0] ss:$16 sps:$4 sm:$0xff]  }
 0x290   :  { %5711 = vmatpush1.bf16.msra.mxu1 %v8425_v52  ;;  %v8511_v52 = vld [vmem:[#allocation2 + $0x10cc] ss:$16 sps:$4 sm:$0xff]  }
 0x291   :  { %5281 = vmatpush1.bf16.msra.mxu0 %v8422_v51  ;;  %5712 = vmatprep.subr.bf16.mxu1 %v8433_v60  ;;  %v8508_v51 = vld [vmem:[#allocation2 + $0x14c4] ss:$16 sps:$4 sm:$0xff]   ;;  %v8509_v60 = vld [vmem:[#allocation2 + $0x10c8] ss:$16 sps:$4 sm:$0xff]  }
 0x292   :  { %5282 = vmatprep.subr.bf16.mxu0 %v8430_v59  ;;  %v8506_v59 = vld [vmem:[#allocation2 + $0x14c0] ss:$16 sps:$4 sm:$0xff]  }
 0x294   :  { %5713 = vmatpush1.bf16.msra.mxu1 %v8431_v63  ;;  %v8517_v63 = vld [vmem:[#allocation2 + $0x10ec] ss:$16 sps:$4 sm:$0xff]  }
 0x295   :  { %5283 = vmatpush1.bf16.msra.mxu0 %v8428_v62  ;;  %5714 = vmatprep.subr.bf16.mxu1 %v8439_v16  ;;  %v8514_v62 = vld [vmem:[#allocation2 + $0x14e4] ss:$16 sps:$4 sm:$0xff]   ;;  %v8515_v16 = vld [vmem:[#allocation2 + $0x10e8] ss:$16 sps:$4 sm:$0xff]  }
 0x296   :  { %5284 = vmatprep.subr.bf16.mxu0 %v8436_v43  ;;  %v8512_v43 = vld [vmem:[#allocation2 + $0x14e0] ss:$16 sps:$4 sm:$0xff]  }
 0x298   :  { %5715 = vmatpush1.bf16.msra.mxu1 %v8437_v1  ;;  %v8523_v1 = vld [vmem:[#allocation2 + $0x110c] ss:$16 sps:$4 sm:$0xff]  }
 0x299   :  { %5285 = vmatpush1.bf16.msra.mxu0 %v8434_v0  ;;  %5716 = vmatprep.subr.bf16.mxu1 %v8445_v3  ;;  %v8520_v0 = vld [vmem:[#allocation2 + $0x1504] ss:$16 sps:$4 sm:$0xff]   ;;  %v8521_v3 = vld [vmem:[#allocation2 + $0x1108] ss:$16 sps:$4 sm:$0xff]  }
 0x29a   :  { %5286 = vmatprep.subr.bf16.mxu0 %v8442_v2  ;;  %v8518_v2 = vld [vmem:[#allocation2 + $0x1500] ss:$16 sps:$4 sm:$0xff]  }
 0x29c   :  { %5717 = vmatpush1.bf16.msra.mxu1 %v8443_v7  ;;  %v8529_v7 = vld [vmem:[#allocation2 + $0x112c] ss:$16 sps:$4 sm:$0xff]  }
 0x29d   :  { %5287 = vmatpush1.bf16.msra.mxu0 %v8440_v6  ;;  %5718 = vmatprep.subr.bf16.mxu1 %v8451_v11  ;;  %v8526_v6 = vld [vmem:[#allocation2 + $0x1524] ss:$16 sps:$4 sm:$0xff]   ;;  %v8527_v11 = vld [vmem:[#allocation2 + $0x1128] ss:$16 sps:$4 sm:$0xff]  }
 0x29e   :  { %5288 = vmatprep.subr.bf16.mxu0 %v8448_v10  ;;  %v8524_v10 = vld [vmem:[#allocation2 + $0x1520] ss:$16 sps:$4 sm:$0xff]  }
 0x2a0   :  { %5719 = vmatpush1.bf16.msra.mxu1 %v8449_v27  ;;  %v8535_v27 = vld [vmem:[#allocation2 + $0x114c] ss:$16 sps:$4 sm:$0xff]  }
 0x2a1   :  { %5289 = vmatpush1.bf16.msra.mxu0 %v8446_v53  ;;  %5720 = vmatprep.subr.bf16.mxu1 %v8457_v13  ;;  %v8532_v53 = vld [vmem:[#allocation2 + $0x1544] ss:$16 sps:$4 sm:$0xff]   ;;  %v8533_v13 = vld [vmem:[#allocation2 + $0x1148] ss:$16 sps:$4 sm:$0xff]  }
 0x2a2   :  { %5290 = vmatprep.subr.bf16.mxu0 %v8454_v12  ;;  %v8530_v12 = vld [vmem:[#allocation2 + $0x1540] ss:$16 sps:$4 sm:$0xff]  }
 0x2a4   :  { %5721 = vmatpush1.bf16.msra.mxu1 %v8455_v15  ;;  %v8541_v15 = vld [vmem:[#allocation2 + $0x116c] ss:$16 sps:$4 sm:$0xff]  }
 0x2a5   :  { %5291 = vmatpush1.bf16.msra.mxu0 %v8452_v14  ;;  %5722 = vmatprep.subr.bf16.mxu1 %v8463_v20  ;;  %v8538_v14 = vld [vmem:[#allocation2 + $0x1564] ss:$16 sps:$4 sm:$0xff]   ;;  %v8539_v20 = vld [vmem:[#allocation2 + $0x1168] ss:$16 sps:$4 sm:$0xff]  }
 0x2a6   :  { %5292 = vmatprep.subr.bf16.mxu0 %v8460_v19  ;;  %v8536_v19 = vld [vmem:[#allocation2 + $0x1560] ss:$16 sps:$4 sm:$0xff]  }
 0x2a8   :  { %5723 = vmatpush1.bf16.msra.mxu1 %v8461_v24  ;;  %v8547_v24 = vld [vmem:[#allocation2 + $0x118c] ss:$16 sps:$4 sm:$0xff]  }
 0x2a9   :  { %5293 = vmatpush1.bf16.msra.mxu0 %v8458_v23  ;;  %5724 = vmatprep.subr.bf16.mxu1 %v8469_v25  ;;  %v8544_v23 = vld [vmem:[#allocation2 + $0x1584] ss:$16 sps:$4 sm:$0xff]   ;;  %v8545_v25 = vld [vmem:[#allocation2 + $0x1188] ss:$16 sps:$4 sm:$0xff]  }
 0x2aa   :  { %5294 = vmatprep.subr.bf16.mxu0 %v8466_v35  ;;  %v8542_v35 = vld [vmem:[#allocation2 + $0x1580] ss:$16 sps:$4 sm:$0xff]  }
 0x2ac   :  { %5725 = vmatpush1.bf16.msra.mxu1 %v8467_v8  ;;  %v8553_v8 = vld [vmem:[#allocation2 + $0x11ac] ss:$16 sps:$4 sm:$0xff]  }
 0x2ad   :  { %5295 = vmatpush1.bf16.msra.mxu0 %v8464_v26  ;;  %5737 = vmatprep.subr.bf16.mxu1 %v8475_v31  ;;  %v8550_v26 = vld [vmem:[#allocation2 + $0x15a4] ss:$16 sps:$4 sm:$0xff]   ;;  %v8551_v31 = vld [vmem:[#allocation2 + $0x11a8] ss:$16 sps:$4 sm:$0xff]  }
 0x2ae   :  { %5307 = vmatprep.subr.bf16.mxu0 %v8472_v30  ;;  %v8548_v30 = vld [vmem:[#allocation2 + $0x15a0] ss:$16 sps:$4 sm:$0xff]  }
 0x2af   :  { %5727 = vmatmul.mubr.bf16.vlgmr.msra.gmra.mrb[4].mxu1 %v9300_v5  ;;  %v8493_v5 = vld [vmem:[#allocation2 + $0x106c] ss:$16 sps:$4 sm:$0xff]  }
 0x2b0   :  { %5297 = vmatmul.mubr.bf16.vlgmr.msra.gmra.mrb[0].mxu0 %v9334_v22  ;;  %5738 = vmatpush1.bf16.msra.mxu1 %v8473_v55  ;;  %v8559_v55 = vld [vmem:[#allocation2 + $0x11cc] ss:$16 sps:$4 sm:$0xff]  }
 0x2b1   :  { %5308 = vmatpush1.bf16.msra.mxu0 %v8470_v33  ;;  %5739 = vmatprep.subr.bf16.mxu1 %v8481_v37  ;;  %v8556_v33 = vld [vmem:[#allocation2 + $0x15c4] ss:$16 sps:$4 sm:$0xff]   ;;  %v8557_v37 = vld [vmem:[#allocation2 + $0x11c8] ss:$16 sps:$4 sm:$0xff]  }
 0x2b2   :  { %5309 = vmatprep.subr.bf16.mxu0 %v8478_v9  ;;  %5339 = vmatprep.mubr.bf16.mxu0 %v9348_v44  ;;  %v8554_v9 = vld [vmem:[#allocation2 + $0x15c0] ss:$16 sps:$4 sm:$0xff]  }
 0x2b3   :  { %5769 = vmatprep.mubr.bf16.mxu1 %v9304_v39  ;;  %v8497_v39 = vld [vmem:[#allocation2 + $0x1088] ss:$16 sps:$4 sm:$0xff]  }
 0x2b4   :  { %5740 = vmatpush1.bf16.msra.mxu1 %v8479_v21  ;;  %v8565_v21 = vld [vmem:[#allocation2 + $0x11ec] ss:$16 sps:$4 sm:$0xff]  }
 0x2b5   :  { %5310 = vmatpush1.bf16.msra.mxu0 %v8476_v18  ;;  %5741 = vmatprep.subr.bf16.mxu1 %v8487_v29  ;;  %v8562_v18 = vld [vmem:[#allocation2 + $0x15e4] ss:$16 sps:$4 sm:$0xff]   ;;  %v8563_v29 = vld [vmem:[#allocation2 + $0x11e8] ss:$16 sps:$4 sm:$0xff]  }
 0x2b6   :  { %5311 = vmatprep.subr.bf16.mxu0 %v8484_v28  ;;  %v8560_v28 = vld [vmem:[#allocation2 + $0x15e0] ss:$16 sps:$4 sm:$0xff]  }
 0x2b8   :  { %5742 = vmatpush1.bf16.msra.mxu1 %v8485_v41  ;;  %v8571_v41 = vld [vmem:[#allocation2 + $0x120c] ss:$16 sps:$4 sm:$0xff]  }
 0x2b9   :  { %5312 = vmatpush1.bf16.msra.mxu0 %v8482_v40  ;;  %5743 = vmatprep.subr.bf16.mxu1 %v8493_v5  ;;  %v8568_v40 = vld [vmem:[#allocation2 + $0x1604] ss:$16 sps:$4 sm:$0xff]   ;;  %v9361_v5 = vld [vmem:[%s9416_s0 + $0x58] sm:$0xff] }
 0x2ba   :  { %5313 = vmatprep.subr.bf16.mxu0 %v8490_v42  ;;  %v9356_v42 = vcombine.low %v9339_v54, %v9344_v32  ;;  %v8572_v32 = vld [vmem:[#allocation2 + $0x1620] ss:$16 sps:$4 sm:$0xff]  }
 0x2bc   :  { %5744 = vmatpush1.bf16.msra.mxu1 %v8491_v45  ;;  %v8566_v45 = vld [vmem:[#allocation2 + $0x1600] ss:$16 sps:$4 sm:$0xff]  }
 0x2bd   :  { %5314 = vmatpush1.bf16.msra.mxu0 %v8488_v38  ;;  %5745 = vmatprep.subr.bf16.mxu1 %v8499_v47  ;;  %v9366_v38 = vld [vmem:[%s9416_s0 + $0xb8] sm:$0xff]  ;;  %v8574_v47 = vld [vmem:[#allocation2 + $0x1624] ss:$16 sps:$4 sm:$0xff]  }
 0x2be   :  { %5315 = vmatprep.subr.bf16.mxu0 %v8496_v46  ;;  %v8569_v46 = vld [vmem:[#allocation2 + $0x1208] ss:$16 sps:$4 sm:$0xff]   ;;  %v9370_v54 = vcombine.high %v9361_v5, %v9366_v38 }
 0x2c0   :  { %5746 = vmatpush1.bf16.msra.mxu1 %v8497_v39  ;;  %v8575_v39 = vld [vmem:[#allocation2 + $0x1228] ss:$16 sps:$4 sm:$0xff]  }
 0x2c1   :  { %5316 = vmatpush1.bf16.msra.mxu0 %v8494_v48  ;;  %5747 = vmatprep.subr.bf16.mxu1 %v8505_v36  ;;  %v8577_v48 = vld [vmem:[#allocation2 + $0x122c] ss:$16 sps:$4 sm:$0xff]  }
 0x2c2   :  { %5317 = vmatprep.subr.bf16.mxu0 %v8502_v34  ;;  %v8580_v34 = vld [vmem:[#allocation2 + $0x1644] ss:$16 sps:$4 sm:$0xff]   ;;  %v8583_v36 = vld [vmem:[#allocation2 + $0x124c] ss:$16 sps:$4 sm:$0xff]  }
 0x2c4   :  { %5748 = vmatpush1.bf16.msra.mxu1 %v8503_v50  ;;  %v8581_v50 = vld [vmem:[#allocation2 + $0x1248] ss:$16 sps:$4 sm:$0xff]  }
 0x2c5   :  { %5318 = vmatpush1.bf16.msra.mxu0 %v8500_v49  ;;  %5749 = vmatprep.subr.bf16.mxu1 %v8511_v52  ;;  %v8578_v49 = vld [vmem:[#allocation2 + $0x1640] ss:$16 sps:$4 sm:$0xff]  }
 0x2c6   :  { %5319 = vmatprep.subr.bf16.mxu0 %v8508_v51  ;;  %v8586_v51 = vld [vmem:[#allocation2 + $0x1664] ss:$16 sps:$4 sm:$0xff]   ;;  %v8584_v52 = vld [vmem:[#allocation2 + $0x1660] ss:$16 sps:$4 sm:$0xff]  }
 0x2c8   :  { %5750 = vmatpush1.bf16.msra.mxu1 %v8509_v60  ;;  %v8592_v60 = vld [vmem:[#allocation2 + $0x1684] ss:$16 sps:$4 sm:$0xff]  }
 0x2c9   :  { %5320 = vmatpush1.bf16.msra.mxu0 %v8506_v59  ;;  %5751 = vmatprep.subr.bf16.mxu1 %v8517_v63  ;;  %v8587_v59 = vld [vmem:[#allocation2 + $0x1268] ss:$16 sps:$4 sm:$0xff]   ;;  %v8590_v63 = vld [vmem:[#allocation2 + $0x1680] ss:$16 sps:$4 sm:$0xff]  }
 0x2ca   :  { %5321 = vmatprep.subr.bf16.mxu0 %v8514_v62  ;;  %v8595_v62 = vld [vmem:[#allocation2 + $0x128c] ss:$16 sps:$4 sm:$0xff]  }
 0x2cc   :  { %5752 = vmatpush1.bf16.msra.mxu1 %v8515_v16  ;;  %v8601_v16 = vld [vmem:[#allocation2 + $0x12ac] ss:$16 sps:$4 sm:$0xff]  }
 0x2cd   :  { %5322 = vmatpush1.bf16.msra.mxu0 %v8512_v43  ;;  %5753 = vmatprep.subr.bf16.mxu1 %v8523_v1  ;;  %v8598_v43 = vld [vmem:[#allocation2 + $0x16a4] ss:$16 sps:$4 sm:$0xff]   ;;  %v8599_v1 = vld [vmem:[#allocation2 + $0x12a8] ss:$16 sps:$4 sm:$0xff]  }
 0x2ce   :  { %5323 = vmatprep.subr.bf16.mxu0 %v8520_v0  ;;  %v8596_v0 = vld [vmem:[#allocation2 + $0x16a0] ss:$16 sps:$4 sm:$0xff]  }
 0x2d0   :  { %5754 = vmatpush1.bf16.msra.mxu1 %v8521_v3  ;;  %v8607_v3 = vld [vmem:[#allocation2 + $0x12cc] ss:$16 sps:$4 sm:$0xff]  }
 0x2d1   :  { %5324 = vmatpush1.bf16.msra.mxu0 %v8518_v2  ;;  %5755 = vmatprep.subr.bf16.mxu1 %v8529_v7  ;;  %v8604_v2 = vld [vmem:[#allocation2 + $0x16c4] ss:$16 sps:$4 sm:$0xff]   ;;  %v8605_v7 = vld [vmem:[#allocation2 + $0x12c8] ss:$16 sps:$4 sm:$0xff]  }
 0x2d2   :  { %5325 = vmatprep.subr.bf16.mxu0 %v8526_v6  ;;  %v8602_v6 = vld [vmem:[#allocation2 + $0x16c0] ss:$16 sps:$4 sm:$0xff]  }
 0x2d4   :  { %5756 = vmatpush1.bf16.msra.mxu1 %v8527_v11  ;;  %v8613_v11 = vld [vmem:[#allocation2 + $0x12ec] ss:$16 sps:$4 sm:$0xff]  }
 0x2d5   :  { %5326 = vmatpush1.bf16.msra.mxu0 %v8524_v10  ;;  %5757 = vmatprep.subr.bf16.mxu1 %v8535_v27  ;;  %v8610_v10 = vld [vmem:[#allocation2 + $0x16e4] ss:$16 sps:$4 sm:$0xff]   ;;  %v8611_v27 = vld [vmem:[#allocation2 + $0x12e8] ss:$16 sps:$4 sm:$0xff]  }
 0x2d6   :  { %5327 = vmatprep.subr.bf16.mxu0 %v8532_v53  ;;  %v8608_v53 = vld [vmem:[#allocation2 + $0x16e0] ss:$16 sps:$4 sm:$0xff]  }
 0x2d8   :  { %5758 = vmatpush1.bf16.msra.mxu1 %v8533_v13  ;;  %v8619_v13 = vld [vmem:[#allocation2 + $0x130c] ss:$16 sps:$4 sm:$0xff]  }
 0x2d9   :  { %5328 = vmatpush1.bf16.msra.mxu0 %v8530_v12  ;;  %5759 = vmatprep.subr.bf16.mxu1 %v8541_v15  ;;  %v8616_v12 = vld [vmem:[#allocation2 + $0x1704] ss:$16 sps:$4 sm:$0xff]   ;;  %v8617_v15 = vld [vmem:[#allocation2 + $0x1308] ss:$16 sps:$4 sm:$0xff]  }
 0x2da   :  { %5329 = vmatprep.subr.bf16.mxu0 %v8538_v14  ;;  %v8614_v14 = vld [vmem:[#allocation2 + $0x1700] ss:$16 sps:$4 sm:$0xff]  }
 0x2dc   :  { %5760 = vmatpush1.bf16.msra.mxu1 %v8539_v20  ;;  %v8625_v20 = vld [vmem:[#allocation2 + $0x132c] ss:$16 sps:$4 sm:$0xff]  }
 0x2dd   :  { %5330 = vmatpush1.bf16.msra.mxu0 %v8536_v19  ;;  %5761 = vmatprep.subr.bf16.mxu1 %v8547_v24  ;;  %v8622_v19 = vld [vmem:[#allocation2 + $0x1724] ss:$16 sps:$4 sm:$0xff]   ;;  %v8623_v24 = vld [vmem:[#allocation2 + $0x1328] ss:$16 sps:$4 sm:$0xff]  }
 0x2de   :  { %5331 = vmatprep.subr.bf16.mxu0 %v8544_v23  ;;  %v8620_v23 = vld [vmem:[#allocation2 + $0x1720] ss:$16 sps:$4 sm:$0xff]  }
 0x2e0   :  { %5762 = vmatpush1.bf16.msra.mxu1 %v8545_v25  ;;  %v8631_v25 = vld [vmem:[#allocation2 + $0x134c] ss:$16 sps:$4 sm:$0xff]  }
 0x2e1   :  { %5332 = vmatpush1.bf16.msra.mxu0 %v8542_v35  ;;  %5763 = vmatprep.subr.bf16.mxu1 %v8553_v8  ;;  %v8628_v35 = vld [vmem:[#allocation2 + $0x1744] ss:$16 sps:$4 sm:$0xff]   ;;  %v8629_v8 = vld [vmem:[#allocation2 + $0x1348] ss:$16 sps:$4 sm:$0xff]  }
 0x2e2   :  { %5333 = vmatprep.subr.bf16.mxu0 %v8550_v26  ;;  %v8626_v26 = vld [vmem:[#allocation2 + $0x1740] ss:$16 sps:$4 sm:$0xff]  }
 0x2e4   :  { %5764 = vmatpush1.bf16.msra.mxu1 %v8551_v31  ;;  %v8637_v31 = vld [vmem:[#allocation2 + $0x136c] ss:$16 sps:$4 sm:$0xff]  }
 0x2e5   :  { %5334 = vmatpush1.bf16.msra.mxu0 %v8548_v30  ;;  %5765 = vmatprep.subr.bf16.mxu1 %v8559_v55  ;;  %v8634_v30 = vld [vmem:[#allocation2 + $0x1764] ss:$16 sps:$4 sm:$0xff]   ;;  %v8635_v55 = vld [vmem:[#allocation2 + $0x1368] ss:$16 sps:$4 sm:$0xff]  }
 0x2e6   :  { %5335 = vmatprep.subr.bf16.mxu0 %v8556_v33  ;;  %v8632_v33 = vld [vmem:[#allocation2 + $0x1760] ss:$16 sps:$4 sm:$0xff]  }
 0x2e8   :  { %5766 = vmatpush1.bf16.msra.mxu1 %v8557_v37  ;;  %v8643_v37 = vld [vmem:[#allocation2 + $0x138c] ss:$16 sps:$4 sm:$0xff]  }
 0x2e9   :  { %5336 = vmatpush1.bf16.msra.mxu0 %v8554_v9  ;;  %5767 = vmatprep.subr.bf16.mxu1 %v8565_v21  ;;  %v8640_v9 = vld [vmem:[#allocation2 + $0x1784] ss:$16 sps:$4 sm:$0xff]   ;;  %v8641_v21 = vld [vmem:[#allocation2 + $0x1388] ss:$16 sps:$4 sm:$0xff]  }
 0x2ea   :  { %5337 = vmatprep.subr.bf16.mxu0 %v8562_v18  ;;  %v8638_v18 = vld [vmem:[#allocation2 + $0x1780] ss:$16 sps:$4 sm:$0xff]  }
 0x2ec   :  { %5768 = vmatpush1.bf16.msra.mxu1 %v8563_v29  ;;  %v8649_v29 = vld [vmem:[#allocation2 + $0x13ac] ss:$16 sps:$4 sm:$0xff]  }
 0x2ed   :  { %5338 = vmatpush1.bf16.msra.mxu0 %v8560_v28  ;;  %5780 = vmatprep.subr.bf16.mxu1 %v8571_v41  ;;  %v8646_v28 = vld [vmem:[#allocation2 + $0x17a4] ss:$16 sps:$4 sm:$0xff]   ;;  %v8647_v41 = vld [vmem:[#allocation2 + $0x13a8] ss:$16 sps:$4 sm:$0xff]  }
 0x2ee   :  { %5350 = vmatprep.subr.bf16.mxu0 %v8568_v40  ;;  %v8644_v40 = vld [vmem:[#allocation2 + $0x17a0] ss:$16 sps:$4 sm:$0xff]  }
 0x2ef   :  { %5770 = vmatmul.mubr.bf16.vlgmr.msra.gmra.mrb[4].mxu1 %v9312_v17  ;;  %v8589_v17 = vld [vmem:[#allocation2 + $0x126c] ss:$16 sps:$4 sm:$0xff]  }
 0x2f0   :  { %5340 = vmatmul.mubr.bf16.vlgmr.msra.gmra.mrb[0].mxu0 %v9356_v42  ;;  %5781 = vmatpush1.bf16.msra.mxu1 %v8569_v46  ;;  %v8655_v46 = vld [vmem:[#allocation2 + $0x13cc] ss:$16 sps:$4 sm:$0xff]  }
 0x2f1   :  { %5351 = vmatpush1.bf16.msra.mxu0 %v8566_v45  ;;  %5782 = vmatprep.subr.bf16.mxu1 %v8577_v48  ;;  %v8652_v45 = vld [vmem:[#allocation2 + $0x17c4] ss:$16 sps:$4 sm:$0xff]   ;;  %v8653_v48 = vld [vmem:[#allocation2 + $0x13c8] ss:$16 sps:$4 sm:$0xff]  }
 0x2f2   :  { %5352 = vmatprep.subr.bf16.mxu0 %v8574_v47  ;;  %5382 = vmatprep.mubr.bf16.mxu0 %v9370_v54  ;;  %v8650_v47 = vld [vmem:[#allocation2 + $0x17c0] ss:$16 sps:$4 sm:$0xff]  }
 0x2f3   :  { %5812 = vmatprep.mubr.bf16.mxu1 %v9326_v4  ;;  %v8593_v4 = vld [vmem:[#allocation2 + $0x1288] ss:$16 sps:$4 sm:$0xff]  }
 0x2f4   :  { %5783 = vmatpush1.bf16.msra.mxu1 %v8575_v39  ;;  %v8661_v39 = vld [vmem:[#allocation2 + $0x13ec] ss:$16 sps:$4 sm:$0xff]  }
 0x2f5   :  { %5353 = vmatpush1.bf16.msra.mxu0 %v8572_v32  ;;  %5784 = vmatprep.subr.bf16.mxu1 %v8583_v36  ;;  %v8658_v32 = vld [vmem:[#allocation2 + $0x17e4] ss:$16 sps:$4 sm:$0xff]   ;;  %v8659_v36 = vld [vmem:[#allocation2 + $0x13e8] ss:$16 sps:$4 sm:$0xff]  }
 0x2f6   :  { %5354 = vmatprep.subr.bf16.mxu0 %v8580_v34  ;;  %v8656_v34 = vld [vmem:[#allocation2 + $0x17e0] ss:$16 sps:$4 sm:$0xff]  }
 0x2f8   :  { %5785 = vmatpush1.bf16.msra.mxu1 %v8581_v50  ;;  %v9378_v50 = vcombine.low %v9361_v5, %v9366_v38  ;;  %v8761_v5 = vld [vmem:[#allocation6 + $0x10] ss:$8 sps:$4 sm:$0xff]   ;;  %v8766_v38 = vld [vmem:[#allocation6 + $0x24] ss:$8 sps:$4 sm:$0xff]  }
 0x2f9   :  { %5355 = vmatpush1.bf16.msra.mxu0 %v8578_v49  ;;  %5786 = vmatprep.subr.bf16.mxu1 %v8589_v17  ;;  %v8664_v49 = vld [vmem:[#allocation2 + $0x140c] ss:$16 sps:$4 sm:$0xff]  }
 0x2fa   :  { %5356 = vmatprep.subr.bf16.mxu0 %v8586_v51  ;;  %v8662_v51 = vld [vmem:[#allocation2 + $0x1408] ss:$16 sps:$4 sm:$0xff]   ;;  %v8667_v17 = vld [vmem:[#allocation2 + $0x142c] ss:$16 sps:$4 sm:$0xff]  }
 0x2fc   :  { %5787 = vmatpush1.bf16.msra.mxu1 %v8587_v59  ;;  %v8760_v59 = vld [vmem:[#allocation6 + $0x4] ss:$8 sps:$4 sm:$0xff]  }
 0x2fd   :  { %5357 = vmatpush1.bf16.msra.mxu0 %v8584_v52  ;;  %5788 = vmatprep.subr.bf16.mxu1 %v8595_v62  ;;  %v8758_v52 = vld [vmem:[#allocation6] ss:$8 sps:$4 sm:$0xff]   ;;  %v8763_v62 = vld [vmem:[#allocation6 + $0x14] ss:$8 sps:$4 sm:$0xff]  }
 0x2fe   :  { %5358 = vmatprep.subr.bf16.mxu0 %v8592_v60  ;;  %v8665_v60 = vld [vmem:[#allocation2 + $0x1428] ss:$16 sps:$4 sm:$0xff]  }
 0x300   :  { %5789 = vmatpush1.bf16.msra.mxu1 %v8593_v4  ;;  %v8668_v4 = vld [vmem:[#allocation2 + $0x1448] ss:$16 sps:$4 sm:$0xff]  }
 0x301   :  { %5359 = vmatpush1.bf16.msra.mxu0 %v8590_v63  ;;  %5790 = vmatprep.subr.bf16.mxu1 %v8601_v16  ;;  %v8670_v63 = vld [vmem:[#allocation2 + $0x144c] ss:$16 sps:$4 sm:$0xff]   ;;  %v8769_v16 = vld [vmem:[#allocation6 + $0x34] ss:$8 sps:$4 sm:$0xff]  }
 0x302   :  { %5360 = vmatprep.subr.bf16.mxu0 %v8598_v43  ;;  %v8673_v43 = vld [vmem:[#allocation2 + $0x146c] ss:$16 sps:$4 sm:$0xff]  }
 0x304   :  { %5791 = vmatpush1.bf16.msra.mxu1 %v8599_v1  ;;  %v8767_v1 = vld [vmem:[#allocation6 + $0x30] ss:$8 sps:$4 sm:$0xff]  }
 0x305   :  { %5361 = vmatpush1.bf16.msra.mxu0 %v8596_v0  ;;  %5792 = vmatprep.subr.bf16.mxu1 %v8607_v3  ;;  %v8671_v0 = vld [vmem:[#allocation2 + $0x1468] ss:$16 sps:$4 sm:$0xff]  }
 0x306   :  { %5362 = vmatprep.subr.bf16.mxu0 %v8604_v2  ;;  %v8772_v2 = vld [vmem:[#allocation6 + $0x44] ss:$8 sps:$4 sm:$0xff]  }
 0x307   :  { %v8674_v3 = vld [vmem:[#allocation2 + $0x1488] ss:$16 sps:$4 sm:$0xff]  }
 0x308   :  { %5793 = vmatpush1.bf16.msra.mxu1 %v8605_v7  ;;  %v8770_v7 = vld [vmem:[#allocation6 + $0x40] ss:$8 sps:$4 sm:$0xff]  }
 0x309   :  { %5363 = vmatpush1.bf16.msra.mxu0 %v8602_v6  ;;  %5794 = vmatprep.subr.bf16.mxu1 %v8613_v11  ;;  %v8679_v6 = vld [vmem:[#allocation2 + $0x14ac] ss:$16 sps:$4 sm:$0xff]   ;;  %v8677_v11 = vld [vmem:[#allocation2 + $0x14a8] ss:$16 sps:$4 sm:$0xff]  }
 0x30a   :  { %5364 = vmatprep.subr.bf16.mxu0 %v8610_v10  ;;  %v8775_v10 = vld [vmem:[#allocation6 + $0x54] ss:$8 sps:$4 sm:$0xff]  }
 0x30c   :  { %5795 = vmatpush1.bf16.msra.mxu1 %v8611_v27  ;;  %v8773_v27 = vld [vmem:[#allocation6 + $0x50] ss:$8 sps:$4 sm:$0xff]  }
 0x30d   :  { %5365 = vmatpush1.bf16.msra.mxu0 %v8608_v53  ;;  %5796 = vmatprep.subr.bf16.mxu1 %v8619_v13  ;;  %v8682_v53 = vld [vmem:[#allocation2 + $0x14cc] ss:$16 sps:$4 sm:$0xff]   ;;  %v8680_v13 = vld [vmem:[#allocation2 + $0x14c8] ss:$16 sps:$4 sm:$0xff]  }
 0x30e   :  { %5366 = vmatprep.subr.bf16.mxu0 %v8616_v12  ;;  %v8778_v12 = vld [vmem:[#allocation6 + $0x64] ss:$8 sps:$4 sm:$0xff]  }
 0x310   :  { %5797 = vmatpush1.bf16.msra.mxu1 %v8617_v15  ;;  %v8776_v15 = vld [vmem:[#allocation6 + $0x60] ss:$8 sps:$4 sm:$0xff]  }
 0x311   :  { %5367 = vmatpush1.bf16.msra.mxu0 %v8614_v14  ;;  %5798 = vmatprep.subr.bf16.mxu1 %v8625_v20  ;;  %v8685_v14 = vld [vmem:[#allocation2 + $0x14ec] ss:$16 sps:$4 sm:$0xff]   ;;  %v8683_v20 = vld [vmem:[#allocation2 + $0x14e8] ss:$16 sps:$4 sm:$0xff]  }
 0x312   :  { %5368 = vmatprep.subr.bf16.mxu0 %v8622_v19  ;;  %v8781_v19 = vld [vmem:[#allocation6 + $0x74] ss:$8 sps:$4 sm:$0xff]  }
 0x314   :  { %5799 = vmatpush1.bf16.msra.mxu1 %v8623_v24  ;;  %v8779_v24 = vld [vmem:[#allocation6 + $0x70] ss:$8 sps:$4 sm:$0xff]  }
 0x315   :  { %5369 = vmatpush1.bf16.msra.mxu0 %v8620_v23  ;;  %5800 = vmatprep.subr.bf16.mxu1 %v8631_v25  ;;  %v8688_v23 = vld [vmem:[#allocation2 + $0x150c] ss:$16 sps:$4 sm:$0xff]   ;;  %v8686_v25 = vld [vmem:[#allocation2 + $0x1508] ss:$16 sps:$4 sm:$0xff]  }
 0x316   :  { %5370 = vmatprep.subr.bf16.mxu0 %v8628_v35  ;;  %v8784_v35 = vld [vmem:[#allocation6 + $0x84] ss:$8 sps:$4 sm:$0xff]  }
 0x318   :  { %5801 = vmatpush1.bf16.msra.mxu1 %v8629_v8  ;;  %v8782_v8 = vld [vmem:[#allocation6 + $0x80] ss:$8 sps:$4 sm:$0xff]  }
 0x319   :  { %5371 = vmatpush1.bf16.msra.mxu0 %v8626_v26  ;;  %5802 = vmatprep.subr.bf16.mxu1 %v8637_v31  ;;  %v8691_v26 = vld [vmem:[#allocation2 + $0x152c] ss:$16 sps:$4 sm:$0xff]   ;;  %v8689_v31 = vld [vmem:[#allocation2 + $0x1528] ss:$16 sps:$4 sm:$0xff]  }
 0x31a   :  { %5372 = vmatprep.subr.bf16.mxu0 %v8634_v30  ;;  %v8787_v30 = vld [vmem:[#allocation6 + $0x94] ss:$8 sps:$4 sm:$0xff]  }
 0x31c   :  { %5803 = vmatpush1.bf16.msra.mxu1 %v8635_v55  ;;  %v8785_v55 = vld [vmem:[#allocation6 + $0x90] ss:$8 sps:$4 sm:$0xff]  }
 0x31d   :  { %5373 = vmatpush1.bf16.msra.mxu0 %v8632_v33  ;;  %5804 = vmatprep.subr.bf16.mxu1 %v8643_v37  ;;  %v8694_v33 = vld [vmem:[#allocation2 + $0x154c] ss:$16 sps:$4 sm:$0xff]   ;;  %v8692_v37 = vld [vmem:[#allocation2 + $0x1548] ss:$16 sps:$4 sm:$0xff]  }
 0x31e   :  { %5374 = vmatprep.subr.bf16.mxu0 %v8640_v9  ;;  %v8790_v9 = vld [vmem:[#allocation6 + $0xa4] ss:$8 sps:$4 sm:$0xff]  }
 0x320   :  { %5805 = vmatpush1.bf16.msra.mxu1 %v8641_v21  ;;  %v8788_v21 = vld [vmem:[#allocation6 + $0xa0] ss:$8 sps:$4 sm:$0xff]  }
 0x321   :  { %5375 = vmatpush1.bf16.msra.mxu0 %v8638_v18  ;;  %5806 = vmatprep.subr.bf16.mxu1 %v8649_v29  ;;  %v8697_v18 = vld [vmem:[#allocation2 + $0x156c] ss:$16 sps:$4 sm:$0xff]   ;;  %v8695_v29 = vld [vmem:[#allocation2 + $0x1568] ss:$16 sps:$4 sm:$0xff]  }
 0x322   :  { %5376 = vmatprep.subr.bf16.mxu0 %v8646_v28  ;;  %v8793_v28 = vld [vmem:[#allocation6 + $0xb4] ss:$8 sps:$4 sm:$0xff]  }
 0x324   :  { %5807 = vmatpush1.bf16.msra.mxu1 %v8647_v41  ;;  %v8791_v41 = vld [vmem:[#allocation6 + $0xb0] ss:$8 sps:$4 sm:$0xff]  }
 0x325   :  { %5377 = vmatpush1.bf16.msra.mxu0 %v8644_v40  ;;  %5808 = vmatprep.subr.bf16.mxu1 %v8655_v46  ;;  %v8700_v40 = vld [vmem:[#allocation2 + $0x158c] ss:$16 sps:$4 sm:$0xff]   ;;  %v8698_v46 = vld [vmem:[#allocation2 + $0x1588] ss:$16 sps:$4 sm:$0xff]  }
 0x326   :  { %5378 = vmatprep.subr.bf16.mxu0 %v8652_v45  ;;  %v8796_v45 = vld [vmem:[#allocation6 + $0xc4] ss:$8 sps:$4 sm:$0xff]  }
 0x328   :  { %5809 = vmatpush1.bf16.msra.mxu1 %v8653_v48  ;;  %v8794_v48 = vld [vmem:[#allocation6 + $0xc0] ss:$8 sps:$4 sm:$0xff]  }
 0x329   :  { %5379 = vmatpush1.bf16.msra.mxu0 %v8650_v47  ;;  %5810 = vmatprep.subr.bf16.mxu1 %v8661_v39  ;;  %v8703_v47 = vld [vmem:[#allocation2 + $0x15ac] ss:$16 sps:$4 sm:$0xff]   ;;  %v8701_v39 = vld [vmem:[#allocation2 + $0x15a8] ss:$16 sps:$4 sm:$0xff]  }
 0x32a   :  { %5380 = vmatprep.subr.bf16.mxu0 %v8658_v32  ;;  %v8799_v32 = vld [vmem:[#allocation6 + $0xd4] ss:$8 sps:$4 sm:$0xff]  }
 0x32c   :  { %5811 = vmatpush1.bf16.msra.mxu1 %v8659_v36  ;;  %v8797_v36 = vld [vmem:[#allocation6 + $0xd0] ss:$8 sps:$4 sm:$0xff]  }
 0x32d   :  { %5381 = vmatpush1.bf16.msra.mxu0 %v8656_v34  ;;  %5823 = vmatprep.subr.bf16.mxu1 %v8664_v49  ;;  %v8706_v34 = vld [vmem:[#allocation2 + $0x15cc] ss:$16 sps:$4 sm:$0xff]   ;;  %v8704_v49 = vld [vmem:[#allocation2 + $0x15c8] ss:$16 sps:$4 sm:$0xff]  }
 0x32e   :  { %6317 = vmatprep.subr.bf16.mxu0 %v8760_v59  ;;  %v8710_v59 = vld [vmem:[#allocation2 + $0x1608] ss:$16 sps:$4 sm:$0xff]  }
 0x32f   :  { %5813 = vmatmul.mubr.bf16.vlgmr.msra.gmra.mrb[4].mxu1 %v9334_v22  ;;  %v8764_v22 = vld [vmem:[#allocation6 + $0x20] ss:$8 sps:$4 sm:$0xff]  }
 0x330   :  { %5383 = vmatmul.mubr.bf16.vlgmr.msra.gmra.mrb[0].mxu0 %v9378_v50  ;;  %5824 = vmatpush1.bf16.msra.mxu1 %v8662_v51  ;;  %v8709_v51 = vld [vmem:[#allocation2 + $0x15ec] ss:$16 sps:$4 sm:$0xff]  }
 0x331   :  { %5855 = vmatprep.mubr.bf16.mxu1 %v9348_v44  ;;  %5825 = vmatprep.subr.bf16.mxu1 %v8667_v17  ;;  %v8676_v44 = vld [vmem:[#allocation2 + $0x148c] ss:$16 sps:$4 sm:$0xff]   ;;  %v8707_v17 = vld [vmem:[#allocation2 + $0x15e8] ss:$16 sps:$4 sm:$0xff]  }
 0x332   :  { %6318 = vmatpush1.bf16.msra.mxu0 %v8758_v52  ;;  %v8712_v52 = vld [vmem:[#allocation2 + $0x160c] ss:$16 sps:$4 sm:$0xff]  }
 0x333   :  { %6319 = vmatprep.subr.bf16.mxu0 %v8763_v62  ;;  %v8713_v62 = vld [vmem:[#allocation2 + $0x1628] ss:$16 sps:$4 sm:$0xff]  }
 0x334   :  { %5826 = vmatpush1.bf16.msra.mxu1 %v8665_v60  ;;  %v8715_v60 = vld [vmem:[#allocation2 + $0x162c] ss:$16 sps:$4 sm:$0xff]  }
 0x335   :  { %5827 = vmatprep.subr.bf16.mxu1 %v8670_v63  ;;  %v8718_v63 = vld [vmem:[#allocation2 + $0x164c] ss:$16 sps:$4 sm:$0xff]  }
 0x336   :  { %6320 = vmatpush1.bf16.msra.mxu0 %v8761_v5  ;;  %v8716_v5 = vld [vmem:[#allocation2 + $0x1648] ss:$16 sps:$4 sm:$0xff]  }
 0x337   :  { %6321 = vmatprep.subr.bf16.mxu0 %v8766_v38  ;;  %v8721_v38 = vld [vmem:[#allocation2 + $0x166c] ss:$16 sps:$4 sm:$0xff]  }
 0x338   :  { %5828 = vmatpush1.bf16.msra.mxu1 %v8668_v4  ;;  %v8719_v4 = vld [vmem:[#allocation2 + $0x1668] ss:$16 sps:$4 sm:$0xff]  }
 0x339   :  { %5829 = vmatprep.subr.bf16.mxu1 %v8673_v43  ;;  %v8724_v43 = vld [vmem:[#allocation2 + $0x168c] ss:$16 sps:$4 sm:$0xff]  }
 0x33a   :  { %6322 = vmatpush1.bf16.msra.mxu0 %v8764_v22  ;;  %v8722_v22 = vld [vmem:[#allocation2 + $0x1688] ss:$16 sps:$4 sm:$0xff]  }
 0x33b   :  { %6323 = vmatprep.subr.bf16.mxu0 %v8769_v16  ;;  %v8727_v16 = vld [vmem:[#allocation2 + $0x16ac] ss:$16 sps:$4 sm:$0xff]  }
 0x33c   :  { %5830 = vmatpush1.bf16.msra.mxu1 %v8671_v0  ;;  %v8730_v0 = vld [vmem:[#allocation2 + $0x16cc] ss:$16 sps:$4 sm:$0xff]  }
 0x33d   :  { %5831 = vmatprep.subr.bf16.mxu1 %v8676_v44  ;;  %v8802_v44 = vld [vmem:[#allocation6 + $0xe4] ss:$8 sps:$4 sm:$0xff]  }
 0x33e   :  { %6324 = vmatpush1.bf16.msra.mxu0 %v8767_v1  ;;  %v8800_v1 = vld [vmem:[#allocation6 + $0xe0] ss:$8 sps:$4 sm:$0xff]  }
 0x33f   :  { %6325 = vmatprep.subr.bf16.mxu0 %v8772_v2  ;;  %v8733_v2 = vld [vmem:[#allocation2 + $0x16ec] ss:$16 sps:$4 sm:$0xff]  }
 0x340   :  { %5832 = vmatpush1.bf16.msra.mxu1 %v8674_v3  ;;  %v8805_v3 = vld [vmem:[#allocation6 + $0xf4] ss:$8 sps:$4 sm:$0xff]  }
 0x341   :  { %5833 = vmatprep.subr.bf16.mxu1 %v8679_v6  ;;  %v8731_v6 = vld [vmem:[#allocation2 + $0x16e8] ss:$16 sps:$4 sm:$0xff]  }
 0x342   :  { %6326 = vmatpush1.bf16.msra.mxu0 %v8770_v7  ;;  %v8803_v7 = vld [vmem:[#allocation6 + $0xf0] ss:$8 sps:$4 sm:$0xff]  }
 0x343   :  { %6327 = vmatprep.subr.bf16.mxu0 %v8775_v10  ;;  %v8736_v10 = vld [vmem:[#allocation2 + $0x170c] ss:$16 sps:$4 sm:$0xff]  }
 0x344   :  { %5834 = vmatpush1.bf16.msra.mxu1 %v8677_v11  ;;  %v8734_v11 = vld [vmem:[#allocation2 + $0x1708] ss:$16 sps:$4 sm:$0xff]  }
 0x345   :  { %5835 = vmatprep.subr.bf16.mxu1 %v8682_v53  ;;  %v8739_v53 = vld [vmem:[#allocation2 + $0x172c] ss:$16 sps:$4 sm:$0xff]  }
 0x346   :  { %6328 = vmatpush1.bf16.msra.mxu0 %v8773_v27  ;;  %v8808_v27 = vld [vmem:[#allocation6 + $0x104] ss:$8 sps:$4 sm:$0xff]  }
 0x347   :  { %6329 = vmatprep.subr.bf16.mxu0 %v8778_v12  ;;  %v8737_v12 = vld [vmem:[#allocation2 + $0x1728] ss:$16 sps:$4 sm:$0xff]  }
 0x348   :  { %5836 = vmatpush1.bf16.msra.mxu1 %v8680_v13  ;;  %v8742_v13 = vld [vmem:[#allocation2 + $0x174c] ss:$16 sps:$4 sm:$0xff]  }
 0x349   :  { %5837 = vmatprep.subr.bf16.mxu1 %v8685_v14  ;;  %v8740_v14 = vld [vmem:[#allocation2 + $0x1748] ss:$16 sps:$4 sm:$0xff]  }
 0x34a   :  { %6330 = vmatpush1.bf16.msra.mxu0 %v8776_v15  ;;  %v8745_v15 = vld [vmem:[#allocation2 + $0x176c] ss:$16 sps:$4 sm:$0xff]  }
 0x34b   :  { %6331 = vmatprep.subr.bf16.mxu0 %v8781_v19  ;;  %v8743_v19 = vld [vmem:[#allocation2 + $0x1768] ss:$16 sps:$4 sm:$0xff]  }
 0x34c   :  { %5838 = vmatpush1.bf16.msra.mxu1 %v8683_v20  ;;  %v8748_v20 = vld [vmem:[#allocation2 + $0x178c] ss:$16 sps:$4 sm:$0xff]  }
 0x34d   :  { %5839 = vmatprep.subr.bf16.mxu1 %v8688_v23  ;;  %v8746_v23 = vld [vmem:[#allocation2 + $0x1788] ss:$16 sps:$4 sm:$0xff]  }
 0x34e   :  { %6332 = vmatpush1.bf16.msra.mxu0 %v8779_v24  ;;  %v8751_v24 = vld [vmem:[#allocation2 + $0x17ac] ss:$16 sps:$4 sm:$0xff]  }
 0x34f   :  { %6333 = vmatprep.subr.bf16.mxu0 %v8784_v35  ;;  %v8749_v35 = vld [vmem:[#allocation2 + $0x17a8] ss:$16 sps:$4 sm:$0xff]  }
 0x350   :  { %5840 = vmatpush1.bf16.msra.mxu1 %v8686_v25  ;;  %v8754_v25 = vld [vmem:[#allocation2 + $0x17cc] ss:$16 sps:$4 sm:$0xff]  }
 0x351   :  { %5841 = vmatprep.subr.bf16.mxu1 %v8691_v26  ;;  %v8752_v26 = vld [vmem:[#allocation2 + $0x17c8] ss:$16 sps:$4 sm:$0xff]  }
 0x352   :  { %6334 = vmatpush1.bf16.msra.mxu0 %v8782_v8  ;;  %v8757_v8 = vld [vmem:[#allocation2 + $0x17ec] ss:$16 sps:$4 sm:$0xff]  }
 0x353   :  { %6335 = vmatprep.subr.bf16.mxu0 %v8787_v30  ;;  %v8755_v30 = vld [vmem:[#allocation2 + $0x17e8] ss:$16 sps:$4 sm:$0xff]  }
 0x354   :  { %5842 = vmatpush1.bf16.msra.mxu1 %v8689_v31  ;;  %v897_v31 = vlaneseq }
 0x355   :  { %5843 = vmatprep.subr.bf16.mxu1 %v8694_v33 }
 0x356   :  { %6336 = vmatpush1.bf16.msra.mxu0 %v8785_v55  ;;  %v9386_v33 = vshrl.u32 %v897_v31, 7  ;;  %v8848_v31 = vld [vmem:[#allocation6 + $0x1e0] ss:$8 sps:$4 sm:$0xff]  }
 0x357   :  { %6337 = vmatprep.subr.bf16.mxu0 %v8790_v9  ;;  %v9389_v9 = vld [vmem:[#allocation4] sm:$0xf] }
 0x358   :  { %5844 = vmatpush1.bf16.msra.mxu1 %v8692_v37  ;;  %v899_v55 = vsub.s32 0, %v9386_v33  ;;  %v903_v37 = vsub.s32 1, %v9386_v33 }
 0x359   :  { %5845 = vmatprep.subr.bf16.mxu1 %v8697_v18 }
 0x35a   :  { %6338 = vmatpush1.bf16.msra.mxu0 %v8788_v21  ;;  %v900_v18 = vrot.slane %v9389_v9, %v899_v55  ;;  %v904_v21 = vrot.slane %v9389_v9, %v903_v37 }
 0x35b   :  { %6339 = vmatprep.subr.bf16.mxu0 %v8793_v28 }
 0x35c   :  { %5846 = vmatpush1.bf16.msra.mxu1 %v8695_v29  ;;  %v4912_v28 = vadd.f32 %v9236_v56, %v900_v18 }
 0x35d   :  { %5847 = vmatprep.subr.bf16.mxu1 %v8700_v40  ;;  %v4916_v40 = vadd.f32 %v9240_v58, %v900_v18  ;;  %v8854_v58 = vld [vmem:[#allocation9 + $0x40] sm:$0xff]   ;;  %v8853_v18 = vld [vmem:[#allocation6 + $0x1f4] ss:$8 sps:$4 sm:$0xff]  }
 0x35e   :  { %6340 = vmatpush1.bf16.msra.mxu0 %v8791_v41 }
 0x35f   :  { %6341 = vmatprep.subr.bf16.mxu0 %v8796_v45 }
 0x360   :  { %5848 = vmatpush1.bf16.msra.mxu1 %v8698_v46  ;;  %v4918_v46 = vadd.f32 %v9242_v61, %v904_v21  ;;  %v8809_v61 = vld [vmem:[#allocation6 + $0x110] ss:$8 sps:$4 sm:$0xff]  }
 0x361   :  { %5849 = vmatprep.subr.bf16.mxu1 %v8703_v47 }
 0x362   :  { %6342 = vmatpush1.bf16.msra.mxu0 %v8794_v48 }
 0x363   :  { %6343 = vmatprep.subr.bf16.mxu0 %v8799_v32 }
 0x364   :  { %5850 = vmatpush1.bf16.msra.mxu1 %v8701_v39 }
 0x365   :  { %5851 = vmatprep.subr.bf16.mxu1 %v8706_v34 }
 0x366   :  { %6344 = vmatpush1.bf16.msra.mxu0 %v8797_v36 }
 0x367   :  { %6345 = vmatprep.subr.bf16.mxu0 %v8802_v44  ;;  %v8861_v44 = vld [vmem:[#allocation9 + $0x18] sm:$0xff]  }
 0x368   :  { %5852 = vmatpush1.bf16.msra.mxu1 %v8704_v49 }
 0x369   :  { %5853 = vmatprep.subr.bf16.mxu1 %v8709_v51 }
 0x36a   :  { %6346 = vmatpush1.bf16.msra.mxu0 %v8800_v1  ;;  %v8818_v1 = vld [vmem:[#allocation6 + $0x140] ss:$8 sps:$4 sm:$0xff]  }
 0x36b   :  { %6347 = vmatprep.subr.bf16.mxu0 %v8805_v3  ;;  %v8863_v3 = vld [vmem:[#allocation9 + $0x20] sm:$0xff]  }
 0x36c   :  { %5854 = vmatpush1.bf16.msra.mxu1 %v8707_v17 }
 0x36d   :  { %5866 = vmatprep.subr.bf16.mxu1 %v8712_v52 }
 0x36e   :  { %6348 = vmatpush1.bf16.msra.mxu0 %v8803_v7  ;;  %v8821_v7 = vld [vmem:[#allocation6 + $0x150] ss:$8 sps:$4 sm:$0xff]  }
 0x36f   :  { %5856 = vmatmul.mubr.bf16.vlgmr.msra.gmra.mrb[4].mxu1 %v9356_v42  ;;  %v8725_v42 = vld [vmem:[#allocation2 + $0x16a8] ss:$16 sps:$4 sm:$0xff]   ;;  %6360 = vmatprep.subr.bf16.mxu0 %v8808_v27  ;;  %v8827_v27 = vld [vmem:[#allocation6 + $0x170] ss:$8 sps:$4 sm:$0xff]  }
 0x370   :  { %5867 = vmatpush1.bf16.msra.mxu1 %v8710_v59  ;;  %5898 = vmatprep.mubr.bf16.mxu1 %v9370_v54  ;;  %v8728_v54 = vld [vmem:[#allocation2 + $0x16c8] ss:$16 sps:$4 sm:$0xff]   ;;  %v8806_v59 = vld [vmem:[#allocation6 + $0x100] ss:$8 sps:$4 sm:$0xff]  }
 0x371   :  { %5868 = vmatprep.subr.bf16.mxu1 %v8715_v60  ;;  %v8855_v60 = vld [vmem:[#allocation9] sm:$0xff]  }
 0x374   :  { %5869 = vmatpush1.bf16.msra.mxu1 %v8713_v62  ;;  %v8856_v62 = vld [vmem:[#allocation9 + $0x48] sm:$0xff]  }
 0x375   :  { %5870 = vmatprep.subr.bf16.mxu1 %v8718_v63  ;;  %v8814_v63 = vld [vmem:[#allocation6 + $0x124] ss:$8 sps:$4 sm:$0xff]  }
 0x378   :  { %5871 = vmatpush1.bf16.msra.mxu1 %v8716_v5  ;;  %v8857_v5 = vld [vmem:[#allocation9 + $0x8] sm:$0xff]  }
 0x379   :  { %5872 = vmatprep.subr.bf16.mxu1 %v8721_v38  ;;  %v8858_v38 = vld [vmem:[#allocation9 + $0x50] sm:$0xff]  }
 0x37c   :  { %5873 = vmatpush1.bf16.msra.mxu1 %v8719_v4  ;;  %v8812_v4 = vld [vmem:[#allocation6 + $0x120] ss:$8 sps:$4 sm:$0xff]  }
 0x37d   :  { %5874 = vmatprep.subr.bf16.mxu1 %v8724_v43  ;;  %v8817_v43 = vld [vmem:[#allocation6 + $0x134] ss:$8 sps:$4 sm:$0xff]  }
 0x380   :  { %5875 = vmatpush1.bf16.msra.mxu1 %v8722_v22  ;;  %v8859_v22 = vld [vmem:[#allocation9 + $0x10] sm:$0xff]  }
 0x381   :  { %5876 = vmatprep.subr.bf16.mxu1 %v8727_v16  ;;  %v8860_v16 = vld [vmem:[#allocation9 + $0x58] sm:$0xff]  }
 0x384   :  { %5877 = vmatpush1.bf16.msra.mxu1 %v8725_v42  ;;  %v8815_v42 = vld [vmem:[#allocation6 + $0x130] ss:$8 sps:$4 sm:$0xff]  }
 0x385   :  { %5878 = vmatprep.subr.bf16.mxu1 %v8730_v0  ;;  %v8820_v0 = vld [vmem:[#allocation6 + $0x144] ss:$8 sps:$4 sm:$0xff]  }
 0x388   :  { %5879 = vmatpush1.bf16.msra.mxu1 %v8728_v54  ;;  %v8862_v54 = vld [vmem:[#allocation9 + $0x60] sm:$0xff]  }
 0x389   :  { %5880 = vmatprep.subr.bf16.mxu1 %v8733_v2  ;;  %v8823_v2 = vld [vmem:[#allocation6 + $0x154] ss:$8 sps:$4 sm:$0xff]  }
 0x38c   :  { %5881 = vmatpush1.bf16.msra.mxu1 %v8731_v6  ;;  %v8864_v6 = vld [vmem:[#allocation9 + $0x68] sm:$0xff]  }
 0x38d   :  { %5882 = vmatprep.subr.bf16.mxu1 %v8736_v10  ;;  %v8826_v10 = vld [vmem:[#allocation6 + $0x164] ss:$8 sps:$4 sm:$0xff]  }
 0x390   :  { %5883 = vmatpush1.bf16.msra.mxu1 %v8734_v11  ;;  %v8824_v11 = vld [vmem:[#allocation6 + $0x160] ss:$8 sps:$4 sm:$0xff]  }
 0x391   :  { %5884 = vmatprep.subr.bf16.mxu1 %v8739_v53  ;;  %v8829_v53 = vld [vmem:[#allocation6 + $0x174] ss:$8 sps:$4 sm:$0xff]  }
 0x394   :  { %5885 = vmatpush1.bf16.msra.mxu1 %v8737_v12  ;;  %v8832_v12 = vld [vmem:[#allocation6 + $0x184] ss:$8 sps:$4 sm:$0xff]  }
 0x395   :  { %5886 = vmatprep.subr.bf16.mxu1 %v8742_v13  ;;  %v8830_v13 = vld [vmem:[#allocation6 + $0x180] ss:$8 sps:$4 sm:$0xff]  }
 0x398   :  { %5887 = vmatpush1.bf16.msra.mxu1 %v8740_v14  ;;  %v8835_v14 = vld [vmem:[#allocation6 + $0x194] ss:$8 sps:$4 sm:$0xff]  }
 0x399   :  { %5888 = vmatprep.subr.bf16.mxu1 %v8745_v15  ;;  %v8833_v15 = vld [vmem:[#allocation6 + $0x190] ss:$8 sps:$4 sm:$0xff]  }
 0x39c   :  { %5889 = vmatpush1.bf16.msra.mxu1 %v8743_v19  ;;  %v8838_v19 = vld [vmem:[#allocation6 + $0x1a4] ss:$8 sps:$4 sm:$0xff]  }
 0x39d   :  { %5890 = vmatprep.subr.bf16.mxu1 %v8748_v20  ;;  %v8836_v20 = vld [vmem:[#allocation6 + $0x1a0] ss:$8 sps:$4 sm:$0xff]  }
 0x3a0   :  { %5891 = vmatpush1.bf16.msra.mxu1 %v8746_v23  ;;  %v8841_v23 = vld [vmem:[#allocation6 + $0x1b4] ss:$8 sps:$4 sm:$0xff]  }
 0x3a1   :  { %5892 = vmatprep.subr.bf16.mxu1 %v8751_v24  ;;  %v8839_v24 = vld [vmem:[#allocation6 + $0x1b0] ss:$8 sps:$4 sm:$0xff]  }
 0x3a4   :  { %5893 = vmatpush1.bf16.msra.mxu1 %v8749_v35  ;;  %v8844_v35 = vld [vmem:[#allocation6 + $0x1c4] ss:$8 sps:$4 sm:$0xff]  }
 0x3a5   :  { %5894 = vmatprep.subr.bf16.mxu1 %v8754_v25  ;;  %v8842_v25 = vld [vmem:[#allocation6 + $0x1c0] ss:$8 sps:$4 sm:$0xff]  }
 0x3a8   :  { %5895 = vmatpush1.bf16.msra.mxu1 %v8752_v26  ;;  %v8847_v26 = vld [vmem:[#allocation6 + $0x1d4] ss:$8 sps:$4 sm:$0xff]  }
 0x3a9   :  { %5896 = vmatprep.subr.bf16.mxu1 %v8757_v8  ;;  %v8845_v8 = vld [vmem:[#allocation6 + $0x1d0] ss:$8 sps:$4 sm:$0xff]  }
 0x3ac   :  { %5897 = vmatpush1.bf16.msra.mxu1 %v8755_v30  ;;  %v8850_v30 = vld [vmem:[#allocation6 + $0x1e4] ss:$8 sps:$4 sm:$0xff]  }
 0x3ad   :  { %7468 = vmatprep.subr.bf16.mxu1 %v8854_v58  ;;  %v8868_v58 = vld [vmem:[#allocation9 + $0x78] sm:$0xff]  }
 0x3af   :  { %5899 = vmatmul.mubr.bf16.vlgmr.msra.gmra.mrb[4].mxu1 %v9378_v50  ;;  %v4914_v50 = vadd.f32 %v9238_v57, %v904_v21  ;;  %v8811_v57 = vld [vmem:[#allocation6 + $0x114] ss:$8 sps:$4 sm:$0xff]   ;;  %v8851_v21 = vld [vmem:[#allocation6 + $0x1f0] ss:$8 sps:$4 sm:$0xff]  }
 0x3b0   :  { %7469 = vmatpush3.bf16.msra.mxu1 %v8855_v60  ;;  %v8869_v60 = vld [vmem:[#allocation9 + $0x38] sm:$0xff]  }
 0x3b1   :  { %7470 = vmatprep.subr.bf16.mxu1 %v8856_v62  ;;  %v5985_v62 = vld [vmem:[#allocation7] sm:$0x3] }
 0x3b4   :  { %7471 = vmatpush3.bf16.msra.mxu1 %v8857_v5 }
 0x3b5   :  { %7472 = vmatprep.subr.bf16.mxu1 %v8858_v38 }
 0x3b8   :  { %7473 = vmatpush3.bf16.msra.mxu1 %v8859_v22 }
 0x3b9   :  { %7474 = vmatprep.subr.bf16.mxu1 %v8860_v16 }
 0x3bc   :  { %7475 = vmatpush3.bf16.msra.mxu1 %v8861_v44 }
 0x3bd   :  { %7476 = vmatprep.subr.bf16.mxu1 %v8862_v54 }
 0x3c0   :  { %7477 = vmatpush3.bf16.msra.mxu1 %v8863_v3 }
 0x3c1   :  { %7478 = vmatprep.subr.bf16.mxu1 %v8864_v6 }
 0x403   :  { %v5384_v29 = vpop.f32.mrb[0].mxu0 }
 0x404   :  { %v7491_v41 = vadd.f32 %v5384_v29, %v4912_v28  ;;  %v5386_v45 = vpop.f32.mrb[1].mxu0  ;;  %v907_v28 = vsub.s32 2, %v9386_v33 }
 0x405   :  { %v7493_v47 = vadd.f32 %v5386_v45, %v4914_v50  ;;  %v5388_v48 = vpop.f32.mrb[2].mxu0  ;;  %v911_v50 = vsub.s32 3, %v9386_v33 }
 0x406   :  { %v7495_v32 = vadd.f32 %v5388_v48, %v4916_v40  ;;  %v5390_v39 = vpop.f32.mrb[3].mxu0  ;;  %v5909_v36 = vmax.f32 %v7491_v41, 0.0  ;;  %v908_v29 = vrot.slane %v9389_v9, %v907_v28 }
 0x407   :  { %v7497_v34 = vadd.f32 %v5390_v39, %v4918_v46  ;;  %v5910_v51 = vmax.f32 %v7493_v47, 0.0  ;;  %v912_v40 = vrot.slane %v9389_v9, %v911_v50  ;;  %v8867_v9 = vld [vmem:[#allocation9 + $0x30] sm:$0xff]  }
 0x408   :  { %v5913_v49 = vmax.f32 %v7495_v32, 0.0 }
 0x409   :  { %v5914_v17 = vmax.f32 %v7497_v34, 0.0 }
 0x40a   :  { %v5917_v52 = vpack.c.bf16 %v5913_v49, %v5909_v36 }
 0x40b   :  { %v5918_v56 = vpack.c.bf16 %v5914_v17, %v5910_v51 }
 0x40d   :  { %6349 = vmatprep.mubr.bf16.mxu0 %v5918_v56 }
 0x40e   :  { %6350 = vmatmul.mubr.bf16.vlgmr.msra.gmra.mrb[4].mxu0 %v5917_v52 }
 0x40f   :  { %6361 = vmatpush1.bf16.msra.mxu0 %v8806_v59  ;;  %v8865_v59 = vld [vmem:[#allocation9 + $0x28] sm:$0xff]  }
 0x410   :  { %6362 = vmatprep.subr.bf16.mxu0 %v8811_v57  ;;  %7479 = vmatpush3.bf16.msra.mxu1 %v8865_v59  ;;  %v8866_v57 = vld [vmem:[#allocation9 + $0x70] sm:$0xff]  }
 0x411   :  { %7480 = vmatprep.subr.bf16.mxu1 %v8866_v57 }
 0x413   :  { %6363 = vmatpush1.bf16.msra.mxu0 %v8809_v61  ;;  %v5990_v61 = vrot.slane %v5985_v62, %v899_v55 }
 0x414   :  { %6364 = vmatprep.subr.bf16.mxu0 %v8814_v63  ;;  %7481 = vmatpush3.bf16.msra.mxu1 %v8867_v9  ;;  %v5994_v63 = vrot.slane %v5985_v62, %v903_v37 }
 0x415   :  { %7482 = vmatprep.subr.bf16.mxu1 %v8868_v58 }
 0x417   :  { %6365 = vmatpush1.bf16.msra.mxu0 %v8812_v4 }
 0x418   :  { %6366 = vmatprep.subr.bf16.mxu0 %v8817_v43  ;;  %7483 = vmatpush3.bf16.msra.mxu1 %v8869_v60 }
 0x41b   :  { %6367 = vmatpush1.bf16.msra.mxu0 %v8815_v42 }
 0x41c   :  { %6368 = vmatprep.subr.bf16.mxu0 %v8820_v0 }
 0x41f   :  { %6369 = vmatpush1.bf16.msra.mxu0 %v8818_v1 }
 0x420   :  { %6370 = vmatprep.subr.bf16.mxu0 %v8823_v2 }
 0x423   :  { %6371 = vmatpush1.bf16.msra.mxu0 %v8821_v7  ;;  %v7451_v7 = vld [vmem:[#allocation10] ss:$0 sm:$0xff] }
 0x424   :  { %6372 = vmatprep.subr.bf16.mxu0 %v8826_v10 }
 0x427   :  { %6373 = vmatpush1.bf16.msra.mxu0 %v8824_v11 }
 0x428   :  { %6374 = vmatprep.subr.bf16.mxu0 %v8829_v53 }
 0x42b   :  { %6375 = vmatpush1.bf16.msra.mxu0 %v8827_v27 }
 0x42c   :  { %6376 = vmatprep.subr.bf16.mxu0 %v8832_v12 }
 0x42f   :  { %6377 = vmatpush1.bf16.msra.mxu0 %v8830_v13 }
 0x430   :  { %6378 = vmatprep.subr.bf16.mxu0 %v8835_v14 }
 0x433   :  { %6379 = vmatpush1.bf16.msra.mxu0 %v8833_v15 }
 0x434   :  { %6380 = vmatprep.subr.bf16.mxu0 %v8838_v19 }
 0x437   :  { %6381 = vmatpush1.bf16.msra.mxu0 %v8836_v20 }
 0x438   :  { %6382 = vmatprep.subr.bf16.mxu0 %v8841_v23 }
 0x43b   :  { %6383 = vmatpush1.bf16.msra.mxu0 %v8839_v24 }
 0x43c   :  { %6384 = vmatprep.subr.bf16.mxu0 %v8844_v35 }
 0x43f   :  { %6385 = vmatpush1.bf16.msra.mxu0 %v8842_v25 }
 0x440   :  { %6386 = vmatprep.subr.bf16.mxu0 %v8847_v26 }
 0x443   :  { %6387 = vmatpush1.bf16.msra.mxu0 %v8845_v8 }
 0x444   :  { %6388 = vmatprep.subr.bf16.mxu0 %v8850_v30 }
 0x447   :  { %6389 = vmatpush1.bf16.msra.mxu0 %v8848_v31 }
 0x448   :  { %6390 = vmatprep.subr.bf16.mxu0 %v8853_v18 }
 0x44b   :  { %6391 = vmatpush1.bf16.msra.mxu0 %v8851_v21 }
 0x482   :  { %v5900_v41 = vpop.f32.mrb[4].mxu1 }
 0x483   :  { %v7498_v45 = vadd.f32 %v5900_v41, %v908_v29  ;;  %v5902_v46 = vpop.f32.mrb[5].mxu1 }
 0x484   :  { %v7499_v47 = vadd.f32 %v5902_v46, %v912_v40  ;;  %v5904_v48 = vpop.f32.mrb[6].mxu1 }
 0x485   :  { %v7500_v32 = vadd.f32 %v5904_v48, %v908_v29  ;;  %v5906_v39 = vpop.f32.mrb[7].mxu1  ;;  %v5911_v36 = vmax.f32 %v7498_v45, 0.0 }
 0x486   :  { %v7501_v34 = vadd.f32 %v5906_v39, %v912_v40  ;;  %v5912_v51 = vmax.f32 %v7499_v47, 0.0 }
 0x487   :  { %v5915_v49 = vmax.f32 %v7500_v32, 0.0 }
 0x488   :  { %v5916_v17 = vmax.f32 %v7501_v34, 0.0 }
 0x489   :  { %v5919_v52 = vpack.c.bf16 %v5915_v49, %v5911_v36 }
 0x48a   :  { %v5920_v56 = vpack.c.bf16 %v5916_v17, %v5912_v51 }
 0x48c   :  { %6392 = vmatprep.mubr.bf16.mxu0 %v5920_v56 }
 0x48d   :  { %6393 = vmatmul.mubr.bf16.vlgmr.msra.gmra.mrb[4].mxu0 %v5919_v52 }
 0x560   :  { %v6394_v5 = vpop.f32.mrb[4].mxu0 }
 0x561   :  { %v7502_v38 = vadd.f32 %v6394_v5, %v5990_v61  ;;  %v6396_v4 = vpop.f32.mrb[5].mxu0 }
 0x562   :  { %v7503_v43 = vadd.f32 %v6396_v4, %v5994_v63  ;;  %v6398_v22 = vpop.f32.mrb[6].mxu0 }
 0x563   :  { %v7504_v16 = vadd.f32 %v6398_v22, %v5990_v61  ;;  %v6400_v42 = vpop.f32.mrb[7].mxu0  ;;  %v6403_v44 = vmax.f32 %v7502_v38, 0.0 }
 0x564   :  { %v7505_v0 = vadd.f32 %v6400_v42, %v5994_v63  ;;  %v6404_v1 = vmax.f32 %v7503_v43, 0.0 }
 0x565   :  { %v6405_v54 = vmax.f32 %v7504_v16, 0.0 }
 0x566   :  { %v6406_v2 = vmax.f32 %v7505_v0, 0.0 }
 0x567   :  { %v6407_v3 = vpack.c.bf16 %v6405_v54, %v6403_v44 }
 0x568   :  { %v6408_v6 = vpack.c.bf16 %v6406_v2, %v6404_v1 }
 0x56a   :  { %6576 = vmatprep.mubr.bf16.mxu1 %v6408_v6 }
 0x56b   :  { %6577 = vmatmul.mubr.bf16.vlgmr.msra.gmra.mrb[8].mxu1 %v6407_v3 }
 0x63e   :  { %v7484_v55 = vpop.f32.mrb[8].mxu1 }
 0x63f   :  { %v7485_v33 = vpop.f32.mrb[9].mxu1 }
 0x640   :  { %v7486_v37 = vadd.f32 %v7485_v33, %v7484_v55  ;;  %v7487_v10 = vpop.f32.mrb[10].mxu1 }
 0x641   :  { %v7488_v11 = vpop.f32.mrb[11].mxu1 }
 0x642   :  { %v6579_v53 = vadd.f32 %v7486_v37, %v7451_v7  ;;  %v7489_v27 = vadd.f32 %v7488_v11, %v7487_v10 }
 0x644   :  { %6585 = vst [vmem:[%s9423_s7] sm:$0xff] %v6579_v53  ;;  %v6582_v12 = vadd.f32 %v7489_v27, %v7451_v7 }
 0x646   :  { %6586 = vst [vmem:[%s9423_s7 + $0x8] sm:$0xff] %v6582_v12 }
 0x647   :  { %6591 = vsyncpa [#allocation3], 1 }
 0x648   :  { %6592 = vsyncpa [#allocation5], 1 }
 0x649   :  { %6593 = vsyncpa [#allocation8], 1 }
 0x64a   :  { %6594 = vsyncpa [#allocation11], 1 }

</bundles_post_ra>
